<compile_context>
chip_gen: v7x
topology: tpu7x:2x2x1
jax: 0.10.0
libtpu: 0.0.40
codegen_flags: <defaults>
</compile_context>

<pallas_src>
import jax
import jax.numpy as jnp
from jax.experimental import pallas as pl
from jax.experimental.pallas import tpu as pltpu

EPS = 1e-5
LANES = 128


def residual_kernel(x_ref, w1_ref, g1_ref, be1_ref,
                    w2_ref, g2_ref, be2_ref, out_ref):
    """One channel block of relu(bn2(conv2(relu(bn1(conv1(x))))) + x).

    x_ref  : (N, H, W, Cb)  input block (no spatial padding)
    w*_ref : (9, Cb)        depthwise 3x3 taps, row k = kh*3 + kw
    g*/be* : (1, Cb)        BN gamma / beta
    out_ref: (N, H, W, Cb)
    """
    N, H, W, C = x_ref.shape
    inv_count = 1.0 / float(N * H * W)

    x = x_ref[...]                      # one aligned load of the whole block
    w1 = w1_ref[...]                    # hoisted tap-weight reads (9, Cb)
    w2 = w2_ref[...]
    g1, be1 = g1_ref[0, :], be1_ref[0, :]
    g2, be2 = g2_ref[0, :], be2_ref[0, :]

    zcol = jnp.zeros((N, H, 1, C), jnp.float32)
    zrow = jnp.zeros((N, 1, W, C), jnp.float32)

    def dw3x3(v, w):
        """Depthwise 3x3 conv, padding=1, on a (N,H,W,C) value.

        The two column-shifted copies (one sublane shift each) are built once
        and reused by all three kh taps; the kh shifts are major-dim row moves
        of the per-kh partial sums — no halo buffer, nothing re-read from VMEM.
        """
        vl = jnp.concatenate([zcol, v[:, :, :W - 1, :]], axis=2)   # v[.., w-1, :]
        vr = jnp.concatenate([v[:, :, 1:, :], zcol], axis=2)       # v[.., w+1, :]
        s0 = vl * w[0] + v * w[1] + vr * w[2]      # taps read from row h-1
        s1 = vl * w[3] + v * w[4] + vr * w[5]      # taps read from row h
        s2 = vl * w[6] + v * w[7] + vr * w[8]      # taps read from row h+1
        top = jnp.concatenate([zrow, s0[:, :H - 1]], axis=1)       # -> position h
        bot = jnp.concatenate([s2[:, 1:], zrow], axis=1)           # -> position h
        return s1 + top + bot

    def bn_train(v, gamma, beta):
        """Training-mode BatchNorm: biased batch stats over (N,H,W), one pass."""
        m = jnp.sum(v, axis=(0, 1, 2), keepdims=True) * inv_count
        q = jnp.sum(v * v, axis=(0, 1, 2), keepdims=True) * inv_count
        var = jnp.maximum(q - m * m, 0.0)          # guard E[x^2]-E[x]^2 >= 0
        return (v - m) * jax.lax.rsqrt(var + EPS) * gamma + beta

    # Conv biases are dropped on purpose: a per-channel bias only shifts the
    # per-channel batch mean, so it cancels exactly inside training-mode BN.
    y = dw3x3(x, w1)
    y = jnp.maximum(bn_train(y, g1, be1), 0.0)
    y = dw3x3(y, w2)
    y = bn_train(y, g2, be2)

    # Skip connection (conv3 is None at module defaults) + final ReLU.
    out_ref[...] = jnp.maximum(x + y, 0.0)


# ----------------------------- wrapper ---------------------------------------
def _packing(C):
    """Split C channels into ceil(C/128) near-equal groups, each padded to 128
    lanes, so a multi-TensorCore channel grid gets balanced real work (instead
    of one block carrying all the zero padding)."""
    n_blocks = max(1, (C + LANES - 1) // LANES)
    chunk = (C + n_blocks - 1) // n_blocks
    return n_blocks, chunk


def _pack_channels(a, C, n_blocks, chunk):
    """Pack the last (channel) axis: C -> n_blocks * 128 (balanced groups)."""
    a = jnp.pad(a, [(0, 0)] * (a.ndim - 1) + [(0, n_blocks * chunk - C)])
    a = a.reshape(a.shape[:-1] + (n_blocks, chunk))
    a = jnp.pad(a, [(0, 0)] * (a.ndim - 1) + [(0, LANES - chunk)])
    return a.reshape(a.shape[:-2] + (n_blocks * LANES,))


def _unpack_channels(a, C, n_blocks, chunk):
    a = a.reshape(a.shape[:-1] + (n_blocks, LANES))[..., :chunk]
    a = a.reshape(a.shape[:-2] + (n_blocks * chunk,))
    return a[..., :C]


def _num_channel_programs(n_blocks):
    """v7x has two TensorCores per chip -> keep a parallel channel grid there;
    single-TC chips (v5e/v6e) run one program to halve fixed grid overhead."""
    try:
        kind = jax.devices()[0].device_kind.lower()
    except Exception:
        kind = ""
    multi_tc = any(t in kind for t in ("v7", "7x"))
    return n_blocks if (multi_tc and n_blocks > 1) else 1


def residual_forward(x_nchw, params):
    N, C, H, W = x_nchw.shape
    n_blocks, chunk = _packing(C)
    Cp = n_blocks * LANES
    n_prog = _num_channel_programs(n_blocks)
    cb = Cp // n_prog

    # NCHW -> NHWC + balanced channel packing: one fused relayout copy under
    # jit.  No spatial padding pass, no extra padded-input HBM round trip.
    # TODO(synk): keep activations NHWC model-wide to drop this transpose too.
    x = _pack_channels(jnp.transpose(x_nchw, (0, 2, 3, 1)).astype(jnp.float32),
                       C, n_blocks, chunk)

    def dw_weight(w_oihw):      # (C,1,3,3) -> (9, Cp), row k = kh*3 + kw
        w = jnp.transpose(w_oihw[:, 0], (1, 2, 0)).reshape(9, C)
        return _pack_channels(w, C, n_blocks, chunk)

    def chan_vec(v):            # (C,) -> (1, Cp)
        return _pack_channels(v.reshape(1, C), C, n_blocks, chunk)

    w1, w2 = dw_weight(params["w1"]), dw_weight(params["w2"])
    g1, be1 = chan_vec(params["g1"]), chan_vec(params["be1"])
    g2, be2 = chan_vec(params["g2"]), chan_vec(params["be2"])

    img_spec = pl.BlockSpec((N, H, W, cb), lambda c: (0, 0, 0, c))
    wt_spec = pl.BlockSpec((9, cb), lambda c: (0, c))
    cv_spec = pl.BlockSpec((1, cb), lambda c: (0, c))

    # TODO(synk): for large N*H*W add a spatial grid axis ("arbitrary") with a
    # two-pass BN (per-channel sum/sumsq scratch) so blocks fit v7x's 64MiB VMEM.
    out = pl.pallas_call(
        residual_kernel,
        out_shape=jax.ShapeDtypeStruct((N, H, W, Cp), jnp.float32),
        grid=(n_prog,),
        in_specs=[img_spec, wt_spec, cv_spec, cv_spec, wt_spec, cv_spec, cv_spec],
        out_specs=pl.BlockSpec((N, H, W, cb), lambda c: (0, 0, 0, c)),
        compiler_params=pltpu.CompilerParams(
            dimension_semantics=("parallel",)),
    )(x, w1, g1, be1, w2, g2, be2)

    out = _unpack_channels(out, C, n_blocks, chunk)
    return jnp.transpose(out, (0, 3, 1, 2))                         # back to NCHW


# ------------------------- pure-JAX reference --------------------------------
def _dw_conv_ref(x_nhwc, w_oihw, b):
    C = x_nhwc.shape[-1]
    w_hwio = jnp.transpose(w_oihw, (2, 3, 1, 0))                    # (3,3,1,C)
    y = jax.lax.conv_general_dilated(
        x_nhwc, w_hwio, window_strides=(1, 1), padding=((1, 1), (1, 1)),
        dimension_numbers=("NHWC", "HWIO", "NHWC"), feature_group_count=C)
    return y + b


def _bn_train_ref(x_nhwc, gamma, beta):
    mean = jnp.mean(x_nhwc, axis=(0, 1, 2), keepdims=True)
    var = jnp.mean((x_nhwc - mean) ** 2, axis=(0, 1, 2), keepdims=True)
    return (x_nhwc - mean) * jax.lax.rsqrt(var + EPS) * gamma + beta


def residual_ref(x_nchw, p):
    x = jnp.transpose(x_nchw, (0, 2, 3, 1)).astype(jnp.float32)
    y = jax.nn.relu(_bn_train_ref(_dw_conv_ref(x, p["w1"], p["b1"]), p["g1"], p["be1"]))
    y = _bn_train_ref(_dw_conv_ref(y, p["w2"], p["b2"]), p["g2"], p["be2"])
    out = jax.nn.relu(x + y)
    return jnp.transpose(out, (0, 3, 1, 2))


# ------------------------------ main ------------------------------------------
if __name__ == "__main__":
    N, C, H, W = 2, 150, 8, 8          # groups=150 forces C % 150 == 0
    key = jax.random.PRNGKey(0)
    kx, k1, k2, k3, k4 = jax.random.split(key, 5)

    x = jax.random.normal(kx, (N, C, H, W), dtype=jnp.float32)

    # deterministic parameter init (PyTorch shapes: grouped conv -> (C,1,3,3))
    bound = 1.0 / 3.0                   # 1/sqrt(fan_in), fan_in = 1*3*3 = 9
    params = {
        "w1": jax.random.uniform(k1, (C, 1, 3, 3), minval=-bound, maxval=bound).astype(jnp.float32),
        "b1": jax.random.uniform(k2, (C,), minval=-bound, maxval=bound).astype(jnp.float32),
        "w2": jax.random.uniform(k3, (C, 1, 3, 3), minval=-bound, maxval=bound).astype(jnp.float32),
        "b2": jax.random.uniform(k4, (C,), minval=-bound, maxval=bound).astype(jnp.float32),
        "g1": jnp.ones((C,), jnp.float32), "be1": jnp.zeros((C,), jnp.float32),
        "g2": jnp.ones((C,), jnp.float32), "be2": jnp.zeros((C,), jnp.float32),
    }

    fwd = jax.jit(residual_forward)
    out = jax.block_until_ready(fwd(x, params))
    ref = jax.block_until_ready(residual_ref(x, params))

    assert out.shape == (N, C, H, W), out.shape
    err = float(jnp.max(jnp.abs(out - ref)))
    assert jnp.allclose(out, ref, rtol=1e-4, atol=1e-3), err
    print("KERNEL_OK")
</pallas_src>

<mosaic_0001>
module attributes {stable_mosaic.version = 11 : i64} {
  func.func @residual_kernel(%arg0: i32, %arg1: memref<2x8x8x256xf32, #tpu.memory_space<vmem>>, %arg2: memref<9x256xf32, #tpu.memory_space<vmem>>, %arg3: memref<1x256xf32, #tpu.memory_space<vmem>>, %arg4: memref<1x256xf32, #tpu.memory_space<vmem>>, %arg5: memref<9x256xf32, #tpu.memory_space<vmem>>, %arg6: memref<1x256xf32, #tpu.memory_space<vmem>>, %arg7: memref<1x256xf32, #tpu.memory_space<vmem>>, %arg8: memref<2x8x8x256xf32, #tpu.memory_space<vmem>>) attributes {dimension_semantics = [#tpu.dimension_semantics<parallel>], iteration_bounds = array<i64: 1>, scalar_prefetch = 0 : i64, scratch_operands = 0 : i64, tpu.core_type = #tpu.core_type<tc>, window_params = [{transform_indices = @transform_0, window_bounds = array<i64: 2, 8, 8, 256>}, {transform_indices = @transform_1, window_bounds = array<i64: 9, 256>}, {transform_indices = @transform_2, window_bounds = array<i64: 1, 256>}, {transform_indices = @transform_3, window_bounds = array<i64: 1, 256>}, {transform_indices = @transform_4, window_bounds = array<i64: 9, 256>}, {transform_indices = @transform_5, window_bounds = array<i64: 1, 256>}, {transform_indices = @transform_6, window_bounds = array<i64: 1, 256>}, {transform_indices = @transform_7, window_bounds = array<i64: 2, 8, 8, 256>}]} {
    %c0 = arith.constant 0 : index
    %c0_0 = arith.constant 0 : index
    %c0_1 = arith.constant 0 : index
    %c0_2 = arith.constant 0 : index
    %0 = vector.load %arg1[%c0, %c0_0, %c0_1, %c0_2] : memref<2x8x8x256xf32, #tpu.memory_space<vmem>>, vector<2x8x8x256xf32>
    %c0_3 = arith.constant 0 : index
    %c0_4 = arith.constant 0 : index
    %1 = vector.load %arg2[%c0_3, %c0_4] : memref<9x256xf32, #tpu.memory_space<vmem>>, vector<9x256xf32>
    %c0_5 = arith.constant 0 : index
    %c0_6 = arith.constant 0 : index
    %2 = vector.load %arg5[%c0_5, %c0_6] : memref<9x256xf32, #tpu.memory_space<vmem>>, vector<9x256xf32>
    %c0_7 = arith.constant 0 : index
    %c0_8 = arith.constant 0 : index
    %3 = vector.load %arg3[%c0_7, %c0_8] : memref<1x256xf32, #tpu.memory_space<vmem>>, vector<1x256xf32>
    %4 = vector.shape_cast %3 : vector<1x256xf32> to vector<256xf32>
    %c0_9 = arith.constant 0 : index
    %c0_10 = arith.constant 0 : index
    %5 = vector.load %arg4[%c0_9, %c0_10] : memref<1x256xf32, #tpu.memory_space<vmem>>, vector<1x256xf32>
    %6 = vector.shape_cast %5 : vector<1x256xf32> to vector<256xf32>
    %c0_11 = arith.constant 0 : index
    %c0_12 = arith.constant 0 : index
    %7 = vector.load %arg6[%c0_11, %c0_12] : memref<1x256xf32, #tpu.memory_space<vmem>>, vector<1x256xf32>
    %8 = vector.shape_cast %7 : vector<1x256xf32> to vector<256xf32>
    %c0_13 = arith.constant 0 : index
    %c0_14 = arith.constant 0 : index
    %9 = vector.load %arg7[%c0_13, %c0_14] : memref<1x256xf32, #tpu.memory_space<vmem>>, vector<1x256xf32>
    %10 = vector.shape_cast %9 : vector<1x256xf32> to vector<256xf32>
    %cst = arith.constant 0.000000e+00 : f32
    %11 = vector.broadcast %cst : f32 to vector<2x8x1x256xf32>
    %cst_15 = arith.constant 0.000000e+00 : f32
    %12 = vector.broadcast %cst_15 : f32 to vector<2x1x8x256xf32>
    %13 = vector.extract_strided_slice %0 {offsets = [0, 0, 0, 0], sizes = [2, 8, 7, 256], strides = [1, 1, 1, 1]} : vector<2x8x8x256xf32> to vector<2x8x7x256xf32>
    %14 = tpu.concatenate %11, %13 in 2 : vector<2x8x1x256xf32>, vector<2x8x7x256xf32> -> vector<2x8x8x256xf32>
    %15 = vector.extract_strided_slice %0 {offsets = [0, 0, 1, 0], sizes = [2, 8, 7, 256], strides = [1, 1, 1, 1]} : vector<2x8x8x256xf32> to vector<2x8x7x256xf32>
    %16 = tpu.concatenate %15, %11 in 2 : vector<2x8x7x256xf32>, vector<2x8x1x256xf32> -> vector<2x8x8x256xf32>
    %17 = vector.extract_strided_slice %1 {offsets = [0, 0], sizes = [1, 256], strides = [1, 1]} : vector<9x256xf32> to vector<1x256xf32>
    %18 = vector.shape_cast %17 : vector<1x256xf32> to vector<256xf32>
    %19 = vector.shape_cast %18 : vector<256xf32> to vector<1x1x1x256xf32>
    %20 = vector.broadcast %19 : vector<1x1x1x256xf32> to vector<2x8x8x256xf32>
    %21 = arith.mulf %14, %20 : vector<2x8x8x256xf32>
    %22 = vector.extract_strided_slice %1 {offsets = [1, 0], sizes = [1, 256], strides = [1, 1]} : vector<9x256xf32> to vector<1x256xf32>
    %23 = vector.shape_cast %22 : vector<1x256xf32> to vector<256xf32>
    %24 = vector.shape_cast %23 : vector<256xf32> to vector<1x1x1x256xf32>
    %25 = vector.broadcast %24 : vector<1x1x1x256xf32> to vector<2x8x8x256xf32>
    %26 = arith.mulf %0, %25 : vector<2x8x8x256xf32>
    %27 = arith.addf %21, %26 : vector<2x8x8x256xf32>
    %28 = vector.extract_strided_slice %1 {offsets = [2, 0], sizes = [1, 256], strides = [1, 1]} : vector<9x256xf32> to vector<1x256xf32>
    %29 = vector.shape_cast %28 : vector<1x256xf32> to vector<256xf32>
    %30 = vector.shape_cast %29 : vector<256xf32> to vector<1x1x1x256xf32>
    %31 = vector.broadcast %30 : vector<1x1x1x256xf32> to vector<2x8x8x256xf32>
    %32 = arith.mulf %16, %31 : vector<2x8x8x256xf32>
    %33 = arith.addf %27, %32 : vector<2x8x8x256xf32>
    %34 = vector.extract_strided_slice %1 {offsets = [3, 0], sizes = [1, 256], strides = [1, 1]} : vector<9x256xf32> to vector<1x256xf32>
    %35 = vector.shape_cast %34 : vector<1x256xf32> to vector<256xf32>
    %36 = vector.shape_cast %35 : vector<256xf32> to vector<1x1x1x256xf32>
    %37 = vector.broadcast %36 : vector<1x1x1x256xf32> to vector<2x8x8x256xf32>
    %38 = arith.mulf %14, %37 : vector<2x8x8x256xf32>
    %39 = vector.extract_strided_slice %1 {offsets = [4, 0], sizes = [1, 256], strides = [1, 1]} : vector<9x256xf32> to vector<1x256xf32>
    %40 = vector.shape_cast %39 : vector<1x256xf32> to vector<256xf32>
    %41 = vector.shape_cast %40 : vector<256xf32> to vector<1x1x1x256xf32>
    %42 = vector.broadcast %41 : vector<1x1x1x256xf32> to vector<2x8x8x256xf32>
    %43 = arith.mulf %0, %42 : vector<2x8x8x256xf32>
    %44 = arith.addf %38, %43 : vector<2x8x8x256xf32>
    %45 = vector.extract_strided_slice %1 {offsets = [5, 0], sizes = [1, 256], strides = [1, 1]} : vector<9x256xf32> to vector<1x256xf32>
    %46 = vector.shape_cast %45 : vector<1x256xf32> to vector<256xf32>
    %47 = vector.shape_cast %46 : vector<256xf32> to vector<1x1x1x256xf32>
    %48 = vector.broadcast %47 : vector<1x1x1x256xf32> to vector<2x8x8x256xf32>
    %49 = arith.mulf %16, %48 : vector<2x8x8x256xf32>
    %50 = arith.addf %44, %49 : vector<2x8x8x256xf32>
    %51 = vector.extract_strided_slice %1 {offsets = [6, 0], sizes = [1, 256], strides = [1, 1]} : vector<9x256xf32> to vector<1x256xf32>
    %52 = vector.shape_cast %51 : vector<1x256xf32> to vector<256xf32>
    %53 = vector.shape_cast %52 : vector<256xf32> to vector<1x1x1x256xf32>
    %54 = vector.broadcast %53 : vector<1x1x1x256xf32> to vector<2x8x8x256xf32>
    %55 = arith.mulf %14, %54 : vector<2x8x8x256xf32>
    %56 = vector.extract_strided_slice %1 {offsets = [7, 0], sizes = [1, 256], strides = [1, 1]} : vector<9x256xf32> to vector<1x256xf32>
    %57 = vector.shape_cast %56 : vector<1x256xf32> to vector<256xf32>
    %58 = vector.shape_cast %57 : vector<256xf32> to vector<1x1x1x256xf32>
    %59 = vector.broadcast %58 : vector<1x1x1x256xf32> to vector<2x8x8x256xf32>
    %60 = arith.mulf %0, %59 : vector<2x8x8x256xf32>
    %61 = arith.addf %55, %60 : vector<2x8x8x256xf32>
    %62 = vector.extract_strided_slice %1 {offsets = [8, 0], sizes = [1, 256], strides = [1, 1]} : vector<9x256xf32> to vector<1x256xf32>
    %63 = vector.shape_cast %62 : vector<1x256xf32> to vector<256xf32>
    %64 = vector.shape_cast %63 : vector<256xf32> to vector<1x1x1x256xf32>
    %65 = vector.broadcast %64 : vector<1x1x1x256xf32> to vector<2x8x8x256xf32>
    %66 = arith.mulf %16, %65 : vector<2x8x8x256xf32>
    %67 = arith.addf %61, %66 : vector<2x8x8x256xf32>
    %68 = vector.extract_strided_slice %33 {offsets = [0, 0, 0, 0], sizes = [2, 7, 8, 256], strides = [1, 1, 1, 1]} : vector<2x8x8x256xf32> to vector<2x7x8x256xf32>
    %69 = tpu.concatenate %12, %68 in 1 : vector<2x1x8x256xf32>, vector<2x7x8x256xf32> -> vector<2x8x8x256xf32>
    %70 = vector.extract_strided_slice %67 {offsets = [0, 1, 0, 0], sizes = [2, 7, 8, 256], strides = [1, 1, 1, 1]} : vector<2x8x8x256xf32> to vector<2x7x8x256xf32>
    %71 = tpu.concatenate %70, %12 in 1 : vector<2x7x8x256xf32>, vector<2x1x8x256xf32> -> vector<2x8x8x256xf32>
    %72 = arith.addf %50, %69 : vector<2x8x8x256xf32>
    %73 = arith.addf %72, %71 : vector<2x8x8x256xf32>
    %cst_16 = arith.constant dense<0.000000e+00> : vector<256xf32>
    %74 = vector.multi_reduction <add>, %73, %cst_16 [0, 1, 2] : vector<2x8x8x256xf32> to vector<256xf32>
    %75 = vector.shape_cast %74 : vector<256xf32> to vector<1x1x1x256xf32>
    %cst_17 = arith.constant 7.812500e-03 : f32
    %76 = vector.broadcast %cst_17 : f32 to vector<1x1x1x256xf32>
    %77 = arith.mulf %75, %76 : vector<1x1x1x256xf32>
    %78 = arith.mulf %73, %73 : vector<2x8x8x256xf32>
    %cst_18 = arith.constant dense<0.000000e+00> : vector<256xf32>
    %79 = vector.multi_reduction <add>, %78, %cst_18 [0, 1, 2] : vector<2x8x8x256xf32> to vector<256xf32>
    %80 = vector.shape_cast %79 : vector<256xf32> to vector<1x1x1x256xf32>
    %cst_19 = arith.constant 7.812500e-03 : f32
    %81 = vector.broadcast %cst_19 : f32 to vector<1x1x1x256xf32>
    %82 = arith.mulf %80, %81 : vector<1x1x1x256xf32>
    %83 = arith.mulf %77, %77 : vector<1x1x1x256xf32>
    %84 = arith.subf %82, %83 : vector<1x1x1x256xf32>
    %cst_20 = arith.constant 0.000000e+00 : f32
    %85 = vector.broadcast %cst_20 : f32 to vector<1x1x1x256xf32>
    %86 = arith.maximumf %84, %85 : vector<1x1x1x256xf32>
    %87 = vector.broadcast %77 : vector<1x1x1x256xf32> to vector<2x8x8x256xf32>
    %88 = arith.subf %73, %87 : vector<2x8x8x256xf32>
    %cst_21 = arith.constant 9.99999974E-6 : f32
    %89 = vector.broadcast %cst_21 : f32 to vector<1x1x1x256xf32>
    %90 = arith.addf %86, %89 : vector<1x1x1x256xf32>
    %91 = math.rsqrt %90 : vector<1x1x1x256xf32>
    %92 = vector.broadcast %91 : vector<1x1x1x256xf32> to vector<2x8x8x256xf32>
    %93 = arith.mulf %88, %92 : vector<2x8x8x256xf32>
    %94 = vector.shape_cast %4 : vector<256xf32> to vector<1x1x1x256xf32>
    %95 = vector.broadcast %94 : vector<1x1x1x256xf32> to vector<2x8x8x256xf32>
    %96 = arith.mulf %93, %95 : vector<2x8x8x256xf32>
    %97 = vector.shape_cast %6 : vector<256xf32> to vector<1x1x1x256xf32>
    %98 = vector.broadcast %97 : vector<1x1x1x256xf32> to vector<2x8x8x256xf32>
    %99 = arith.addf %96, %98 : vector<2x8x8x256xf32>
    %cst_22 = arith.constant 0.000000e+00 : f32
    %100 = vector.broadcast %cst_22 : f32 to vector<2x8x8x256xf32>
    %101 = arith.maximumf %99, %100 : vector<2x8x8x256xf32>
    %102 = vector.extract_strided_slice %101 {offsets = [0, 0, 0, 0], sizes = [2, 8, 7, 256], strides = [1, 1, 1, 1]} : vector<2x8x8x256xf32> to vector<2x8x7x256xf32>
    %103 = tpu.concatenate %11, %102 in 2 : vector<2x8x1x256xf32>, vector<2x8x7x256xf32> -> vector<2x8x8x256xf32>
    %104 = vector.extract_strided_slice %101 {offsets = [0, 0, 1, 0], sizes = [2, 8, 7, 256], strides = [1, 1, 1, 1]} : vector<2x8x8x256xf32> to vector<2x8x7x256xf32>
    %105 = tpu.concatenate %104, %11 in 2 : vector<2x8x7x256xf32>, vector<2x8x1x256xf32> -> vector<2x8x8x256xf32>
    %106 = vector.extract_strided_slice %2 {offsets = [0, 0], sizes = [1, 256], strides = [1, 1]} : vector<9x256xf32> to vector<1x256xf32>
    %107 = vector.shape_cast %106 : vector<1x256xf32> to vector<256xf32>
    %108 = vector.shape_cast %107 : vector<256xf32> to vector<1x1x1x256xf32>
    %109 = vector.broadcast %108 : vector<1x1x1x256xf32> to vector<2x8x8x256xf32>
    %110 = arith.mulf %103, %109 : vector<2x8x8x256xf32>
    %111 = vector.extract_strided_slice %2 {offsets = [1, 0], sizes = [1, 256], strides = [1, 1]} : vector<9x256xf32> to vector<1x256xf32>
    %112 = vector.shape_cast %111 : vector<1x256xf32> to vector<256xf32>
    %113 = vector.shape_cast %112 : vector<256xf32> to vector<1x1x1x256xf32>
    %114 = vector.broadcast %113 : vector<1x1x1x256xf32> to vector<2x8x8x256xf32>
    %115 = arith.mulf %101, %114 : vector<2x8x8x256xf32>
    %116 = arith.addf %110, %115 : vector<2x8x8x256xf32>
    %117 = vector.extract_strided_slice %2 {offsets = [2, 0], sizes = [1, 256], strides = [1, 1]} : vector<9x256xf32> to vector<1x256xf32>
    %118 = vector.shape_cast %117 : vector<1x256xf32> to vector<256xf32>
    %119 = vector.shape_cast %118 : vector<256xf32> to vector<1x1x1x256xf32>
    %120 = vector.broadcast %119 : vector<1x1x1x256xf32> to vector<2x8x8x256xf32>
    %121 = arith.mulf %105, %120 : vector<2x8x8x256xf32>
    %122 = arith.addf %116, %121 : vector<2x8x8x256xf32>
    %123 = vector.extract_strided_slice %2 {offsets = [3, 0], sizes = [1, 256], strides = [1, 1]} : vector<9x256xf32> to vector<1x256xf32>
    %124 = vector.shape_cast %123 : vector<1x256xf32> to vector<256xf32>
    %125 = vector.shape_cast %124 : vector<256xf32> to vector<1x1x1x256xf32>
    %126 = vector.broadcast %125 : vector<1x1x1x256xf32> to vector<2x8x8x256xf32>
    %127 = arith.mulf %103, %126 : vector<2x8x8x256xf32>
    %128 = vector.extract_strided_slice %2 {offsets = [4, 0], sizes = [1, 256], strides = [1, 1]} : vector<9x256xf32> to vector<1x256xf32>
    %129 = vector.shape_cast %128 : vector<1x256xf32> to vector<256xf32>
    %130 = vector.shape_cast %129 : vector<256xf32> to vector<1x1x1x256xf32>
    %131 = vector.broadcast %130 : vector<1x1x1x256xf32> to vector<2x8x8x256xf32>
    %132 = arith.mulf %101, %131 : vector<2x8x8x256xf32>
    %133 = arith.addf %127, %132 : vector<2x8x8x256xf32>
    %134 = vector.extract_strided_slice %2 {offsets = [5, 0], sizes = [1, 256], strides = [1, 1]} : vector<9x256xf32> to vector<1x256xf32>
    %135 = vector.shape_cast %134 : vector<1x256xf32> to vector<256xf32>
    %136 = vector.shape_cast %135 : vector<256xf32> to vector<1x1x1x256xf32>
    %137 = vector.broadcast %136 : vector<1x1x1x256xf32> to vector<2x8x8x256xf32>
    %138 = arith.mulf %105, %137 : vector<2x8x8x256xf32>
    %139 = arith.addf %133, %138 : vector<2x8x8x256xf32>
    %140 = vector.extract_strided_slice %2 {offsets = [6, 0], sizes = [1, 256], strides = [1, 1]} : vector<9x256xf32> to vector<1x256xf32>
    %141 = vector.shape_cast %140 : vector<1x256xf32> to vector<256xf32>
    %142 = vector.shape_cast %141 : vector<256xf32> to vector<1x1x1x256xf32>
    %143 = vector.broadcast %142 : vector<1x1x1x256xf32> to vector<2x8x8x256xf32>
    %144 = arith.mulf %103, %143 : vector<2x8x8x256xf32>
    %145 = vector.extract_strided_slice %2 {offsets = [7, 0], sizes = [1, 256], strides = [1, 1]} : vector<9x256xf32> to vector<1x256xf32>
    %146 = vector.shape_cast %145 : vector<1x256xf32> to vector<256xf32>
    %147 = vector.shape_cast %146 : vector<256xf32> to vector<1x1x1x256xf32>
    %148 = vector.broadcast %147 : vector<1x1x1x256xf32> to vector<2x8x8x256xf32>
    %149 = arith.mulf %101, %148 : vector<2x8x8x256xf32>
    %150 = arith.addf %144, %149 : vector<2x8x8x256xf32>
    %151 = vector.extract_strided_slice %2 {offsets = [8, 0], sizes = [1, 256], strides = [1, 1]} : vector<9x256xf32> to vector<1x256xf32>
    %152 = vector.shape_cast %151 : vector<1x256xf32> to vector<256xf32>
    %153 = vector.shape_cast %152 : vector<256xf32> to vector<1x1x1x256xf32>
    %154 = vector.broadcast %153 : vector<1x1x1x256xf32> to vector<2x8x8x256xf32>
    %155 = arith.mulf %105, %154 : vector<2x8x8x256xf32>
    %156 = arith.addf %150, %155 : vector<2x8x8x256xf32>
    %157 = vector.extract_strided_slice %122 {offsets = [0, 0, 0, 0], sizes = [2, 7, 8, 256], strides = [1, 1, 1, 1]} : vector<2x8x8x256xf32> to vector<2x7x8x256xf32>
    %158 = tpu.concatenate %12, %157 in 1 : vector<2x1x8x256xf32>, vector<2x7x8x256xf32> -> vector<2x8x8x256xf32>
    %159 = vector.extract_strided_slice %156 {offsets = [0, 1, 0, 0], sizes = [2, 7, 8, 256], strides = [1, 1, 1, 1]} : vector<2x8x8x256xf32> to vector<2x7x8x256xf32>
    %160 = tpu.concatenate %159, %12 in 1 : vector<2x7x8x256xf32>, vector<2x1x8x256xf32> -> vector<2x8x8x256xf32>
    %161 = arith.addf %139, %158 : vector<2x8x8x256xf32>
    %162 = arith.addf %161, %160 : vector<2x8x8x256xf32>
    %cst_23 = arith.constant dense<0.000000e+00> : vector<256xf32>
    %163 = vector.multi_reduction <add>, %162, %cst_23 [0, 1, 2] : vector<2x8x8x256xf32> to vector<256xf32>
    %164 = vector.shape_cast %163 : vector<256xf32> to vector<1x1x1x256xf32>
    %cst_24 = arith.constant 7.812500e-03 : f32
    %165 = vector.broadcast %cst_24 : f32 to vector<1x1x1x256xf32>
    %166 = arith.mulf %164, %165 : vector<1x1x1x256xf32>
    %167 = arith.mulf %162, %162 : vector<2x8x8x256xf32>
    %cst_25 = arith.constant dense<0.000000e+00> : vector<256xf32>
    %168 = vector.multi_reduction <add>, %167, %cst_25 [0, 1, 2] : vector<2x8x8x256xf32> to vector<256xf32>
    %169 = vector.shape_cast %168 : vector<256xf32> to vector<1x1x1x256xf32>
    %cst_26 = arith.constant 7.812500e-03 : f32
    %170 = vector.broadcast %cst_26 : f32 to vector<1x1x1x256xf32>
    %171 = arith.mulf %169, %170 : vector<1x1x1x256xf32>
    %172 = arith.mulf %166, %166 : vector<1x1x1x256xf32>
    %173 = arith.subf %171, %172 : vector<1x1x1x256xf32>
    %cst_27 = arith.constant 0.000000e+00 : f32
    %174 = vector.broadcast %cst_27 : f32 to vector<1x1x1x256xf32>
    %175 = arith.maximumf %173, %174 : vector<1x1x1x256xf32>
    %176 = vector.broadcast %166 : vector<1x1x1x256xf32> to vector<2x8x8x256xf32>
    %177 = arith.subf %162, %176 : vector<2x8x8x256xf32>
    %cst_28 = arith.constant 9.99999974E-6 : f32
    %178 = vector.broadcast %cst_28 : f32 to vector<1x1x1x256xf32>
    %179 = arith.addf %175, %178 : vector<1x1x1x256xf32>
    %180 = math.rsqrt %179 : vector<1x1x1x256xf32>
    %181 = vector.broadcast %180 : vector<1x1x1x256xf32> to vector<2x8x8x256xf32>
    %182 = arith.mulf %177, %181 : vector<2x8x8x256xf32>
    %183 = vector.shape_cast %8 : vector<256xf32> to vector<1x1x1x256xf32>
    %184 = vector.broadcast %183 : vector<1x1x1x256xf32> to vector<2x8x8x256xf32>
    %185 = arith.mulf %182, %184 : vector<2x8x8x256xf32>
    %186 = vector.shape_cast %10 : vector<256xf32> to vector<1x1x1x256xf32>
    %187 = vector.broadcast %186 : vector<1x1x1x256xf32> to vector<2x8x8x256xf32>
    %188 = arith.addf %185, %187 : vector<2x8x8x256xf32>
    %189 = arith.addf %0, %188 : vector<2x8x8x256xf32>
    %cst_29 = arith.constant 0.000000e+00 : f32
    %190 = vector.broadcast %cst_29 : f32 to vector<2x8x8x256xf32>
    %191 = arith.maximumf %189, %190 : vector<2x8x8x256xf32>
    %c0_30 = arith.constant 0 : index
    %c0_31 = arith.constant 0 : index
    %c0_32 = arith.constant 0 : index
    %c0_33 = arith.constant 0 : index
    %192 = vector.load %arg8[%c0_30, %c0_31, %c0_32, %c0_33] : memref<2x8x8x256xf32, #tpu.memory_space<vmem>>, vector<2x8x8x256xf32>
    tpu.vector_store %arg8[%c0_30, %c0_31, %c0_32, %c0_33], %191 {strides = array<i32>} : memref<2x8x8x256xf32, #tpu.memory_space<vmem>>, vector<2x8x8x256xf32>,
    return
  }
  func.func @transform_0(%arg0: i32) -> (i32, i32, i32, i32) {
    %c0_i32 = arith.constant 0 : i32
    %c0_i32_0 = arith.constant 0 : i32
    %c0_i32_1 = arith.constant 0 : i32
    %c0_i32_2 = arith.constant 0 : i32
    return %c0_i32, %c0_i32_0, %c0_i32_1, %arg0 : i32, i32, i32, i32
  }
  func.func @transform_1(%arg0: i32) -> (i32, i32) {
    %c0_i32 = arith.constant 0 : i32
    %c0_i32_0 = arith.constant 0 : i32
    return %c0_i32, %arg0 : i32, i32
  }
  func.func @transform_2(%arg0: i32) -> (i32, i32) {
    %c0_i32 = arith.constant 0 : i32
    %c0_i32_0 = arith.constant 0 : i32
    return %c0_i32, %arg0 : i32, i32
  }
  func.func @transform_3(%arg0: i32) -> (i32, i32) {
    %c0_i32 = arith.constant 0 : i32
    %c0_i32_0 = arith.constant 0 : i32
    return %c0_i32, %arg0 : i32, i32
  }
  func.func @transform_4(%arg0: i32) -> (i32, i32) {
    %c0_i32 = arith.constant 0 : i32
    %c0_i32_0 = arith.constant 0 : i32
    return %c0_i32, %arg0 : i32, i32
  }
  func.func @transform_5(%arg0: i32) -> (i32, i32) {
    %c0_i32 = arith.constant 0 : i32
    %c0_i32_0 = arith.constant 0 : i32
    return %c0_i32, %arg0 : i32, i32
  }
  func.func @transform_6(%arg0: i32) -> (i32, i32) {
    %c0_i32 = arith.constant 0 : i32
    %c0_i32_0 = arith.constant 0 : i32
    return %c0_i32, %arg0 : i32, i32
  }
  func.func @transform_7(%arg0: i32) -> (i32, i32, i32, i32) {
    %c0_i32 = arith.constant 0 : i32
    %c0_i32_0 = arith.constant 0 : i32
    %c0_i32_1 = arith.constant 0 : i32
    %c0_i32_2 = arith.constant 0 : i32
    return %c0_i32, %c0_i32_0, %c0_i32_1, %arg0 : i32, i32, i32, i32
  }
}

</mosaic_0001>

<bundles_post_ra>
// kernel: residual_forward.1
= control target key start
LH: loop header
LB: loop body
LE: loop exit
PB: predicated region body
PF: predicated region fallthrough
CT: control target
= control target key end

     0   :  { %vm166_vm0 = vcmask 1040384   ;;  %v296_v16 = vlaneseq  ;;  %vm263_vm1 = vcmask 1046528   ;;  %s5741_s0 = inlined_call_operand.vmem [shape: f32[2,8,8,256], index: 0, kind: input, shape index: {}]   ;;  %s5742_s1 = inlined_call_operand.vmem [shape: f32[9,256], index: 1, kind: input, shape index: {}]   ;;  %s5743_s2 = inlined_call_operand.vmem [shape: f32[1,256], index: 2, kind: input, shape index: {}]   ;;  %s5744_s3 = inlined_call_operand.vmem [shape: f32[1,256], index: 3, kind: input, shape index: {}]   ;;  %s5745_s4 = inlined_call_operand.vmem [shape: f32[9,256], index: 4, kind: input, shape index: {}]   ;;  %s5746_s5 = inlined_call_operand.vmem [shape: f32[1,256], index: 5, kind: input, shape index: {}]   ;;  %s5747_s6 = inlined_call_operand.vmem [shape: f32[1,256], index: 6, kind: input, shape index: {}]   ;;  %s5748_s7 = inlined_call_operand.vmem [shape: f32[2,8,8,256], index: 7, kind: output, shape index: {}]  }
   0x1   :  { %v2469_v0 = vld [vmem:[%s5741_s0] sm:$0xff]  ;;  %v2474_v1 = vld [vmem:[%s5741_s0 + $0x10] sm:$0xff] }
   0x2   :  { %6090 = vst [vmem:[#allocation2_spill] sm:$0xff] %v2469_v0  ;;  %6091 = vst [vmem:[#allocation3_spill] sm:$0xff] %v2474_v1  ;;  %v2479_v2 = vld [vmem:[%s5741_s0 + $0x20] sm:$0xff]  ;;  %v2484_v3 = vld [vmem:[%s5741_s0 + $0x30] sm:$0xff]  ;;  %v102_v14 = vrot.slane %v2469_v0, 7  ;;  %v104_v15 = vrot.slane %v2474_v1, 7 }
   0x3   :  { %6092 = vst [vmem:[#allocation4_spill] sm:$0xff] %v2479_v2  ;;  %6093 = vst [vmem:[#allocation5_spill] sm:$0xff] %v2484_v3  ;;  %v2489_v4 = vld [vmem:[%s5741_s0 + $0x40] sm:$0xff]  ;;  %v2494_v5 = vld [vmem:[%s5741_s0 + $0x50] sm:$0xff]  ;;  %v106_v19 = vrot.slane %v2479_v2, 7  ;;  %v108_v20 = vrot.slane %v2484_v3, 7 }
   0x4   :  { %6094 = vst [vmem:[#allocation6_spill] sm:$0xff] %v2489_v4  ;;  %6095 = vst [vmem:[#allocation7_spill] sm:$0xff] %v2494_v5  ;;  %v2499_v6 = vld [vmem:[%s5741_s0 + $0x60] sm:$0xff]  ;;  %v2504_v7 = vld [vmem:[%s5741_s0 + $0x70] sm:$0xff]  ;;  %v110_v21 = vrot.slane %v2489_v4, 7  ;;  %v112_v22 = vrot.slane %v2494_v5, 7 }
   0x5   :  { %6096 = vst [vmem:[#allocation8_spill] sm:$0xff] %v2499_v6  ;;  %6097 = vst [vmem:[#allocation9_spill] sm:$0xff] %v2504_v7  ;;  %v2509_v8 = vld [vmem:[%s5741_s0 + $0x80] sm:$0xff]  ;;  %v2514_v9 = vld [vmem:[%s5741_s0 + $0x90] sm:$0xff]  ;;  %v114_v23 = vrot.slane %v2499_v6, 7  ;;  %v116_v24 = vrot.slane %v2504_v7, 7 }
   0x6   :  { %6098 = vst [vmem:[#allocation10_spill] sm:$0xff] %v2509_v8  ;;  %6099 = vst [vmem:[#allocation11_spill] sm:$0xff] %v2514_v9  ;;  %v2519_v10 = vld [vmem:[%s5741_s0 + $0xa0] sm:$0xff]  ;;  %v2524_v11 = vld [vmem:[%s5741_s0 + $0xb0] sm:$0xff]  ;;  %v118_v25 = vrot.slane %v2509_v8, 7  ;;  %v120_v26 = vrot.slane %v2514_v9, 7 }
   0x7   :  { %6100 = vst [vmem:[#allocation12_spill] sm:$0xff] %v2519_v10  ;;  %6101 = vst [vmem:[#allocation13_spill] sm:$0xff] %v2524_v11  ;;  %v2529_v12 = vld [vmem:[%s5741_s0 + $0xc0] sm:$0xff]  ;;  %v2534_v13 = vld [vmem:[%s5741_s0 + $0xd0] sm:$0xff]  ;;  %v122_v27 = vrot.slane %v2519_v10, 7  ;;  %v124_v28 = vrot.slane %v2524_v11, 7 }
   0x8   :  { %6102 = vst [vmem:[#allocation14_spill] sm:$0xff] %v2529_v12  ;;  %6103 = vst [vmem:[#allocation15_spill] sm:$0xff] %v2534_v13  ;;  %v2541_v17 = vld [vmem:[%s5741_s0 + $0xe0] sm:$0xff]  ;;  %v2546_v18 = vld [vmem:[%s5741_s0 + $0xf0] sm:$0xff]  ;;  %v126_v29 = vrot.slane %v2529_v12, 7  ;;  %v128_v30 = vrot.slane %v2534_v13, 7 }
   0x9   :  { %6104 = vst [vmem:[#allocation16_spill] sm:$0xff] %v2541_v17  ;;  %6105 = vst [vmem:[#allocation17_spill] sm:$0xff] %v2546_v18  ;;  %v130_v31 = vrot.slane %v2541_v17, 7  ;;  %v132_v32 = vrot.slane %v2546_v18, 7  ;;  %v2563_v33 = vsel %vm166_vm0, 0.0, %v102_v14  ;;  %v2566_v34 = vsel %vm166_vm0, 0.0, %v104_v15 }
   0xa   :  { %6106 = vst [vmem:[#allocation18_spill] sm:$0xff] %v2563_v33  ;;  %6107 = vst [vmem:[#allocation19_spill] sm:$0xff] %v2566_v34  ;;  %v2569_v35 = vsel %vm166_vm0, 0.0, %v106_v19  ;;  %v2572_v36 = vsel %vm166_vm0, 0.0, %v108_v20  ;;  %v2575_v37 = vsel %vm166_vm0, 0.0, %v110_v21  ;;  %v2578_v38 = vsel %vm166_vm0, 0.0, %v112_v22 }
   0xb   :  { %6108 = vst [vmem:[#allocation20_spill] sm:$0xff] %v2569_v35  ;;  %6109 = vst [vmem:[#allocation21_spill] sm:$0xff] %v2572_v36  ;;  %v2581_v39 = vsel %vm166_vm0, 0.0, %v114_v23  ;;  %v2584_v40 = vsel %vm166_vm0, 0.0, %v116_v24  ;;  %v2587_v41 = vsel %vm166_vm0, 0.0, %v118_v25  ;;  %v2590_v42 = vsel %vm166_vm0, 0.0, %v120_v26 }
   0xc   :  { %6110 = vst [vmem:[#allocation22_spill] sm:$0xff] %v2575_v37  ;;  %6111 = vst [vmem:[#allocation23_spill] sm:$0xff] %v2578_v38  ;;  %v2593_v43 = vsel %vm166_vm0, 0.0, %v122_v27  ;;  %v2596_v44 = vsel %vm166_vm0, 0.0, %v124_v28  ;;  %v2599_v45 = vsel %vm166_vm0, 0.0, %v126_v29  ;;  %v2602_v46 = vsel %vm166_vm0, 0.0, %v128_v30 }
   0xd   :  { %6112 = vst [vmem:[#allocation24_spill] sm:$0xff] %v2581_v39  ;;  %6113 = vst [vmem:[#allocation25_spill] sm:$0xff] %v2584_v40  ;;  %v2605_v47 = vsel %vm166_vm0, 0.0, %v130_v31  ;;  %v2608_v48 = vsel %vm166_vm0, 0.0, %v132_v32  ;;  %v199_v49 = vrot.slane %v2469_v0, 1  ;;  %v201_v50 = vrot.slane %v2474_v1, 1 }
   0xe   :  { %6114 = vst [vmem:[#allocation26_spill] sm:$0xff] %v2587_v41  ;;  %6115 = vst [vmem:[#allocation27_spill] sm:$0xff] %v2590_v42  ;;  %v203_v51 = vrot.slane %v2479_v2, 1  ;;  %v205_v52 = vrot.slane %v2484_v3, 1  ;;  %v207_v53 = vrot.slane %v2489_v4, 1  ;;  %v209_v54 = vrot.slane %v2494_v5, 1 }
   0xf   :  { %6116 = vst [vmem:[#allocation28_spill] sm:$0xff] %v2593_v43  ;;  %6117 = vst [vmem:[#allocation29_spill] sm:$0xff] %v2596_v44  ;;  %v211_v55 = vrot.slane %v2499_v6, 1  ;;  %v213_v56 = vrot.slane %v2504_v7, 1  ;;  %v215_v57 = vrot.slane %v2509_v8, 1  ;;  %v217_v58 = vrot.slane %v2514_v9, 1 }
  0x10   :  { %6118 = vst [vmem:[#allocation30_spill] sm:$0xff] %v2599_v45  ;;  %6119 = vst [vmem:[#allocation31_spill] sm:$0xff] %v2602_v46  ;;  %v219_v59 = vrot.slane %v2519_v10, 1  ;;  %v221_v60 = vrot.slane %v2524_v11, 1  ;;  %v223_v61 = vrot.slane %v2529_v12, 1  ;;  %v225_v62 = vrot.slane %v2534_v13, 1 }
  0x11   :  { %6120 = vst [vmem:[#allocation32_spill] sm:$0xff] %v2605_v47  ;;  %6121 = vst [vmem:[#allocation33_spill] sm:$0xff] %v2608_v48  ;;  %v227_v63 = vrot.slane %v2541_v17, 1  ;;  %v229_v14 = vrot.slane %v2546_v18, 1  ;;  %v2627_v15 = vsel %vm263_vm1, %v199_v49, 0.0  ;;  %v2630_v19 = vsel %vm263_vm1, %v201_v50, 0.0 }
  0x12   :  { %v2633_v20 = vsel %vm263_vm1, %v203_v51, 0.0  ;;  %v2636_v21 = vsel %vm263_vm1, %v205_v52, 0.0  ;;  %v2639_v22 = vsel %vm263_vm1, %v207_v53, 0.0  ;;  %v297_v23 = vshrl.u32 %v296_v16, 7  ;;  %v2644_v24 = vld [vmem:[%s5742_s1 + $0x10] ss:$0 sm:$0xff] }
  0x13   :  { %6122 = vst [vmem:[#allocation34_spill] sm:$0xff] %v2644_v24  ;;  %v2647_v25 = vsel %vm263_vm1, %v209_v54, 0.0  ;;  %v2650_v26 = vsel %vm263_vm1, %v211_v55, 0.0  ;;  %v2653_v27 = vsel %vm263_vm1, %v213_v56, 0.0  ;;  %v2656_v28 = vsel %vm263_vm1, %v215_v57, 0.0  ;;  %v2661_v16 = vld [vmem:[%s5742_s1] sm:$0xff] }
  0x14   :  { %6123 = vst [vmem:[#allocation35_spill] sm:$0xff] %v2653_v27  ;;  %6124 = vst [vmem:[#allocation36_spill] sm:$0xff] %v2661_v16  ;;  %v2664_v29 = vsel %vm263_vm1, %v217_v58, 0.0  ;;  %v2667_v30 = vsel %vm263_vm1, %v219_v59, 0.0  ;;  %v2670_v31 = vsel %vm263_vm1, %v221_v60, 0.0  ;;  %v2672_v32 = vsub.s32 0, %v297_v23 }
  0x15   :  { %v2675_v49 = vsel %vm263_vm1, %v223_v61, 0.0  ;;  %v2678_v50 = vsel %vm263_vm1, %v225_v62, 0.0  ;;  %v2681_v51 = vsel %vm263_vm1, %v227_v63, 0.0  ;;  %v2683_v52 = vsub.s32 1, %v297_v23  ;;  %v2688_v53 = vld [vmem:[%s5742_s1 + $0x8] sm:$0xff] }
  0x16   :  { %6125 = vst [vmem:[#allocation37_spill] sm:$0xff] %v2672_v32  ;;  %6126 = vst [vmem:[#allocation38_spill] sm:$0xff] %v2678_v50  ;;  %v2691_v54 = vsel %vm263_vm1, %v229_v14, 0.0  ;;  %v2693_v55 = vsub.s32 2, %v297_v23  ;;  %v2695_v56 = vsub.s32 3, %v297_v23  ;;  %v2699_v57 = vmul.f32 %v2644_v24, %v2630_v19 }
  0x17   :  { %6127 = vst [vmem:[#allocation39_spill] sm:$0xff] %v2681_v51  ;;  %6128 = vst [vmem:[#allocation40_spill] sm:$0xff] %v2683_v52  ;;  %v299_v58 = vrot.slane %v2661_v16, %v2672_v32  ;;  %v2705_v59 = vmul.f32 %v2644_v24, %v2633_v20  ;;  %v2709_v60 = vmul.f32 %v2644_v24, %v2636_v21  ;;  %v2715_v62 = vsub.s32 4, %v297_v23 }
  0x18   :  { %6129 = vst [vmem:[#allocation41_spill] sm:$0xff] %v2688_v53  ;;  %6130 = vst [vmem:[#allocation42_spill] sm:$0xff] %v2691_v54  ;;  %v2713_v61 = vmul.f32 %v2644_v24, %v2639_v22  ;;  %v2717_v63 = vsub.s32 5, %v297_v23  ;;  %v2721_v14 = vmul.f32 %v2644_v24, %v2647_v25  ;;  %v2735_v54 = vsub.s32 7, %v297_v23 }
  0x19   :  { %6131 = vst [vmem:[#allocation43_spill] sm:$0xff] %v2693_v55  ;;  %6132 = vst [vmem:[#allocation44_spill] sm:$0xff] %v2695_v56  ;;  %v2739_v27 = vrot.slane %v2688_v53, %v2683_v52  ;;  %v316_v18 = vmul.f32 %v299_v58, %v2581_v39  ;;  %v322_v7 = vmul.f32 %v299_v58, %v2593_v43 }
  0x1a   :  { %6133 = vst [vmem:[#allocation45_spill] sm:$0xff] %v2699_v57  ;;  %6134 = vst [vmem:[#allocation46_spill] sm:$0xff] %v2705_v59  ;;  %v2725_v57 = vmul.f32 %v2644_v24, %v2650_v26  ;;  %v2729_v59 = vrot.slane %v2688_v53, %v2672_v32  ;;  %v304_v32 = vmul.f32 %v299_v58, %v2563_v33 }
  0x1b   :  { %6135 = vst [vmem:[#allocation47_spill] sm:$0xff] %v2709_v60  ;;  %6136 = vst [vmem:[#allocation48_spill] sm:$0xff] %v2713_v61  ;;  %v335_v60 = vrot.slane %v2661_v16, %v2683_v52  ;;  %v2733_v61 = vsub.s32 6, %v297_v23  ;;  %v306_v23 = vmul.f32 %v299_v58, %v2566_v34  ;;  %v308_v24 = vmul.f32 %v299_v58, %v2569_v35 }
  0x1c   :  { %6137 = vst [vmem:[#allocation49_spill] sm:$0xff] %v2715_v62  ;;  %6138 = vst [vmem:[#allocation50_spill] sm:$0xff] %v2717_v63  ;;  %v310_v52 = vmul.f32 %v299_v58, %v2572_v36  ;;  %v324_v48 = vmul.f32 %v299_v58, %v2596_v44  ;;  %v326_v40 = vmul.f32 %v299_v58, %v2599_v45 }
  0x1d   :  { %6139 = vst [vmem:[#allocation51_spill] sm:$0xff] %v2721_v14  ;;  %6140 = vst [vmem:[#allocation52_spill] sm:$0xff] %v2725_v57  ;;  %v399_v14 = vrot.slane %v2661_v16, %v2693_v55  ;;  %v2745_v57 = vrot.slane %v2688_v53, %v2693_v55  ;;  %v320_v55 = vmul.f32 %v299_v58, %v2590_v42 }
  0x1e   :  { %6141 = vst [vmem:[#allocation53_spill] sm:$0xff] %v2729_v59  ;;  %6142 = vst [vmem:[#allocation54_spill] sm:$0xff] %v2733_v61  ;;  %v2749_v59 = vrot.slane %v2661_v16, %v2695_v56  ;;  %v340_v61 = vmul.f32 %v335_v60, %v2469_v0  ;;  %v342_v63 = vmul.f32 %v335_v60, %v2474_v1 }
  0x1f   :  { %6143 = vst [vmem:[#allocation55_spill] sm:$0xff] %v2735_v54  ;;  %6144 = vst [vmem:[#allocation56_spill] sm:$0xff] %v2739_v27  ;;  %v312_v27 = vmul.f32 %v299_v58, %v2575_v37  ;;  %v314_v54 = vmul.f32 %v299_v58, %v2578_v38  ;;  %v344_v16 = vmul.f32 %v335_v60, %v2479_v2 }
  0x20   :  { %6145 = vst [vmem:[#allocation57_spill] sm:$0xff] %v2745_v57  ;;  %6146 = vst [vmem:[#allocation58_spill] sm:$0xff] %v2749_v59  ;;  %v318_v57 = vmul.f32 %v299_v58, %v2587_v41  ;;  %v346_v38 = vmul.f32 %v335_v60, %v2484_v3  ;;  %v348_v39 = vmul.f32 %v335_v60, %v2489_v4 }
  0x21   :  { %v350_v41 = vmul.f32 %v335_v60, %v2494_v5  ;;  %v352_v42 = vmul.f32 %v335_v60, %v2499_v6  ;;  %v354_v43 = vmul.f32 %v335_v60, %v2509_v8  ;;  %v356_v44 = vmul.f32 %v335_v60, %v2514_v9 }
  0x22   :  { %v358_v45 = vmul.f32 %v335_v60, %v2519_v10  ;;  %v360_v0 = vmul.f32 %v335_v60, %v2524_v11  ;;  %v362_v1 = vmul.f32 %v335_v60, %v2529_v12  ;;  %v328_v2 = vmul.f32 %v299_v58, %v2602_v46 }
  0x23   :  { %v330_v3 = vmul.f32 %v299_v58, %v2605_v47  ;;  %v364_v4 = vmul.f32 %v335_v60, %v2534_v13  ;;  %v366_v5 = vmul.f32 %v335_v60, %v2541_v17  ;;  %v368_v37 = vadd.f32 %v340_v61, %v304_v32  ;;  %v6170_v61 = vld [vmem:[#allocation36_spill] sm:$0xff] }
  0x24   :  { %v370_v6 = vadd.f32 %v342_v63, %v306_v23  ;;  %v372_v62 = vadd.f32 %v344_v16, %v308_v24  ;;  %v374_v8 = vadd.f32 %v346_v38, %v310_v52  ;;  %v376_v36 = vadd.f32 %v348_v39, %v312_v27  ;;  %v6171_v63 = vld [vmem:[#allocation50_spill] sm:$0xff] }
  0x25   :  { %v378_v9 = vadd.f32 %v350_v41, %v314_v54  ;;  %v380_v35 = vadd.f32 %v352_v42, %v316_v18  ;;  %v382_v10 = vadd.f32 %v354_v43, %v318_v57  ;;  %v384_v34 = vadd.f32 %v356_v44, %v320_v55  ;;  %v6164_v55 = vld [vmem:[#allocation19_spill] sm:$0xff]  ;;  %v6166_v57 = vld [vmem:[#allocation21_spill] sm:$0xff]  ;;  %v6173_v23 = vld [vmem:[#allocation54_spill] sm:$0xff] }
  0x26   :  { %v386_v11 = vadd.f32 %v358_v45, %v322_v7  ;;  %v388_v59 = vadd.f32 %v360_v0, %v324_v48  ;;  %v390_v12 = vadd.f32 %v362_v1, %v326_v40  ;;  %v392_v33 = vadd.f32 %v364_v4, %v328_v2 }
  0x27   :  { %v404_v46 = vmul.f32 %v399_v14, %v2627_v15  ;;  %v406_v58 = vmul.f32 %v399_v14, %v2630_v19  ;;  %v408_v13 = vmul.f32 %v399_v14, %v2633_v20  ;;  %v410_v32 = vmul.f32 %v399_v14, %v2636_v21  ;;  %v6163_v54 = vld [vmem:[#allocation58_spill] sm:$0xff] }
  0x28   :  { %v412_v24 = vmul.f32 %v399_v14, %v2639_v22  ;;  %v414_v38 = vmul.f32 %v399_v14, %v2647_v25  ;;  %v416_v18 = vmul.f32 %v399_v14, %v2650_v26  ;;  %v418_v39 = vmul.f32 %v399_v14, %v2656_v28 }
  0x29   :  { %v420_v0 = vmul.f32 %v399_v14, %v2664_v29  ;;  %v422_v1 = vmul.f32 %v399_v14, %v2667_v30  ;;  %v424_v2 = vmul.f32 %v399_v14, %v2670_v31  ;;  %v394_v4 = vadd.f32 %v366_v5, %v330_v3 }
  0x2a   :  { %v426_v7 = vmul.f32 %v399_v14, %v2675_v49  ;;  %v428_v40 = vmul.f32 %v399_v14, %v2678_v50  ;;  %v430_v41 = vmul.f32 %v399_v14, %v2681_v51  ;;  %v2793_v42 = vadd.f32 %v404_v46, %v368_v37 }
  0x2b   :  { %v2795_v43 = vadd.f32 %v406_v58, %v370_v6  ;;  %v2797_v44 = vadd.f32 %v408_v13, %v372_v62  ;;  %v2801_v45 = vrot.slane %v2688_v53, %v2695_v56  ;;  %v2803_v48 = vadd.f32 %v410_v32, %v374_v8  ;;  %v6175_v32 = vld [vmem:[#allocation23_spill] sm:$0xff] }
  0x2c   :  { %6147 = vst [vmem:[#allocation59_spill] sm:$0xff] %v2793_v42  ;;  %v2805_v27 = vadd.f32 %v412_v24, %v376_v36  ;;  %v2807_v3 = vadd.f32 %v414_v38, %v378_v9  ;;  %v2809_v5 = vadd.f32 %v416_v18, %v380_v35  ;;  %v2811_v16 = vadd.f32 %v418_v39, %v382_v10  ;;  %v6162_v36 = vld [vmem:[#allocation18_spill] sm:$0xff]  ;;  %v6165_v10 = vld [vmem:[#allocation20_spill] sm:$0xff]  ;;  %v6177_v39 = vld [vmem:[#allocation25_spill] sm:$0xff] }
  0x2d   :  { %6148 = vst [vmem:[#allocation60_spill] sm:$0xff] %v2795_v43  ;;  %6149 = vst [vmem:[#allocation61_spill] sm:$0xff] %v2797_v44  ;;  %v2813_v37 = vadd.f32 %v420_v0, %v384_v34  ;;  %v2815_v6 = vadd.f32 %v422_v1, %v386_v11  ;;  %v2817_v13 = vadd.f32 %v424_v2, %v388_v59  ;;  %v6167_v59 = vld [vmem:[#allocation49_spill] sm:$0xff]  ;;  %v6176_v38 = vld [vmem:[#allocation24_spill] sm:$0xff] }
  0x2e   :  { %6150 = vst [vmem:[#allocation62_spill] sm:$0xff] %v2801_v45  ;;  %6151 = vst [vmem:[#allocation63_spill] sm:$0xff] %v2803_v48  ;;  %v2819_v46 = vadd.f32 %v426_v7, %v390_v12  ;;  %v2821_v52 = vadd.f32 %v428_v40, %v392_v33  ;;  %v2823_v8 = vadd.f32 %v430_v41, %v394_v4  ;;  %v6169_v33 = vld [vmem:[#allocation22_spill] sm:$0xff]  ;;  %v6179_v4 = vld [vmem:[#allocation27_spill] sm:$0xff] }
  0x2f   :  { %6152 = vst [vmem:[#allocation64_spill] sm:$0xff] %v2805_v27  ;;  %6153 = vst [vmem:[#allocation65_spill] sm:$0xff] %v2807_v3  ;;  %v468_v9 = vmul.f32 %v6163_v54, %v6162_v36  ;;  %v470_v35 = vmul.f32 %v6163_v54, %v6164_v55  ;;  %v472_v34 = vmul.f32 %v6163_v54, %v6165_v10  ;;  %v6178_v1 = vld [vmem:[#allocation26_spill] sm:$0xff]  ;;  %v6180_v40 = vld [vmem:[#allocation28_spill] sm:$0xff] }
  0x30   :  { %6154 = vst [vmem:[#allocation66_spill] sm:$0xff] %v2809_v5  ;;  %6155 = vst [vmem:[#allocation67_spill] sm:$0xff] %v2811_v16  ;;  %v474_v11 = vmul.f32 %v6163_v54, %v6166_v57  ;;  %v2835_v12 = vrot.slane %v2688_v53, %v6167_v59  ;;  %v476_v60 = vmul.f32 %v6163_v54, %v6169_v33  ;;  %v6181_v36 = vld [vmem:[#allocation29_spill] sm:$0xff]  ;;  %v6183_v45 = vld [vmem:[#allocation31_spill] sm:$0xff] }
  0x31   :  { %6156 = vst [vmem:[#allocation68_spill] sm:$0xff] %v2813_v37  ;;  %6157 = vst [vmem:[#allocation69_spill] sm:$0xff] %v2815_v6  ;;  %v503_v62 = vrot.slane %v6170_v61, %v6167_v59  ;;  %v2843_v14 = vrot.slane %v2688_v53, %v6171_v63  ;;  %v2847_v58 = vrot.slane %v2688_v53, %v6173_v23  ;;  %v6186_v6 = vld [vmem:[#allocation3_spill] sm:$0xff]  ;;  %v6187_v16 = vld [vmem:[#allocation4_spill] sm:$0xff] }
  0x32   :  { %6158 = vst [vmem:[#allocation70_spill] sm:$0xff] %v2817_v13  ;;  %6159 = vst [vmem:[#allocation71_spill] sm:$0xff] %v2819_v46  ;;  %v478_v24 = vmul.f32 %v6163_v54, %v6175_v32  ;;  %v480_v18 = vmul.f32 %v6163_v54, %v6176_v38  ;;  %v482_v0 = vmul.f32 %v6163_v54, %v6177_v39  ;;  %v6185_v46 = vld [vmem:[#allocation2_spill] sm:$0xff]  ;;  %v6189_v27 = vld [vmem:[#allocation5_spill] sm:$0xff] }
  0x33   :  { %6160 = vst [vmem:[#allocation72_spill] sm:$0xff] %v2821_v52  ;;  %6161 = vst [vmem:[#allocation73_spill] sm:$0xff] %v2823_v8  ;;  %v484_v2 = vmul.f32 %v6163_v54, %v6178_v1  ;;  %v486_v7 = vmul.f32 %v6163_v54, %v6179_v4  ;;  %v488_v41 = vmul.f32 %v6163_v54, %v6180_v40  ;;  %v6184_v8 = vld [vmem:[#allocation33_spill] sm:$0xff]  ;;  %v6190_v44 = vld [vmem:[#allocation6_spill] sm:$0xff] }
  0x34   :  { %6168 = vst [vmem:[#allocation18_spill] sm:$0xff] %v2835_v12  ;;  %6172 = vst [vmem:[#allocation58_spill] sm:$0xff] %v2843_v14  ;;  %v6182_v14 = vld [vmem:[#allocation30_spill] sm:$0xff]  ;;  %v494_v59 = vmul.f32 %v6163_v54, %v6183_v45  ;;  %v496_v56 = vmul.f32 %v6163_v54, %v2605_v47  ;;  %v498_v1 = vmul.f32 %v6163_v54, %v6184_v8  ;;  %v6191_v42 = vld [vmem:[#allocation7_spill] sm:$0xff] }
  0x35   :  { %6174 = vst [vmem:[#allocation74_spill] sm:$0xff] %v2847_v58  ;;  %v490_v58 = vmul.f32 %v6163_v54, %v6181_v36  ;;  %v492_v12 = vmul.f32 %v6163_v54, %v6182_v14  ;;  %v575_v52 = vrot.slane %v6170_v61, %v6171_v63  ;;  %v508_v13 = vmul.f32 %v503_v62, %v6185_v46  ;;  %v6192_v54 = vld [vmem:[#allocation8_spill] sm:$0xff]  ;;  %v6193_v45 = vld [vmem:[#allocation9_spill] sm:$0xff]  ;;  %v6194_v14 = vld [vmem:[#allocation10_spill] sm:$0xff] }
  0x36   :  { %v510_v37 = vmul.f32 %v503_v62, %v6186_v6  ;;  %v512_v5 = vmul.f32 %v503_v62, %v6187_v16  ;;  %v2878_v3 = vrot.slane %v6170_v61, %v6173_v23  ;;  %v514_v48 = vmul.f32 %v503_v62, %v6189_v27  ;;  %v6195_v36 = vld [vmem:[#allocation11_spill] sm:$0xff]  ;;  %v6196_v40 = vld [vmem:[#allocation12_spill] sm:$0xff]  ;;  %v6197_v4 = vld [vmem:[#allocation13_spill] sm:$0xff] }
  0x37   :  { %v516_v43 = vmul.f32 %v503_v62, %v6190_v44  ;;  %v518_v47 = vmul.f32 %v503_v62, %v6191_v42  ;;  %v520_v8 = vmul.f32 %v503_v62, %v6192_v54  ;;  %v522_v63 = vmul.f32 %v503_v62, %v6193_v45  ;;  %v6198_v23 = vld [vmem:[#allocation14_spill] sm:$0xff]  ;;  %v6199_v32 = vld [vmem:[#allocation15_spill] sm:$0xff]  ;;  %v6200_v33 = vld [vmem:[#allocation17_spill] sm:$0xff] }
  0x38   :  { %6188 = vst [vmem:[#allocation26_spill] sm:$0xff] %v2878_v3  ;;  %v524_v46 = vmul.f32 %v503_v62, %v6194_v14  ;;  %v526_v6 = vmul.f32 %v503_v62, %v6195_v36  ;;  %v528_v16 = vmul.f32 %v503_v62, %v6196_v40  ;;  %v530_v39 = vmul.f32 %v503_v62, %v6197_v4 }
  0x39   :  { %v532_v38 = vmul.f32 %v503_v62, %v6198_v23  ;;  %v534_v27 = vmul.f32 %v503_v62, %v6199_v32  ;;  %v536_v44 = vmul.f32 %v503_v62, %v2541_v17  ;;  %v538_v42 = vmul.f32 %v503_v62, %v6200_v33 }
  0x3a   :  { %v540_v57 = vadd.f32 %v508_v13, %v468_v9  ;;  %v542_v54 = vadd.f32 %v510_v37, %v470_v35  ;;  %v544_v10 = vadd.f32 %v512_v5, %v472_v34  ;;  %v546_v45 = vadd.f32 %v514_v48, %v474_v11  ;;  %v6204_v13 = vld [vmem:[#allocation42_spill] sm:$0xff] }
  0x3b   :  { %v548_v53 = vadd.f32 %v516_v43, %v476_v60  ;;  %v550_v14 = vadd.f32 %v518_v47, %v478_v24  ;;  %v552_v61 = vadd.f32 %v520_v8, %v480_v18  ;;  %v554_v36 = vadd.f32 %v522_v63, %v482_v0  ;;  %v6213_v24 = vld [vmem:[#allocation55_spill] sm:$0xff]  ;;  %v6215_v18 = vld [vmem:[#allocation41_spill] sm:$0xff] }
  0x3c   :  { %v556_v3 = vadd.f32 %v524_v46, %v484_v2  ;;  %v558_v40 = vadd.f32 %v526_v6, %v486_v7  ;;  %v560_v55 = vadd.f32 %v528_v16, %v488_v41  ;;  %v562_v4 = vadd.f32 %v530_v39, %v490_v58  ;;  %v6201_v16 = vld [vmem:[#allocation35_spill] sm:$0xff]  ;;  %v6217_v39 = vld [vmem:[#allocation20_spill] sm:$0xff]  ;;  %v6218_v0 = vld [vmem:[#allocation21_spill] sm:$0xff] }
  0x3d   :  { %v564_v51 = vadd.f32 %v532_v38, %v492_v12  ;;  %v566_v23 = vadd.f32 %v534_v27, %v494_v59  ;;  %v568_v50 = vadd.f32 %v536_v44, %v496_v56  ;;  %v570_v32 = vadd.f32 %v538_v42, %v498_v1  ;;  %v6202_v42 = vld [vmem:[#allocation38_spill] sm:$0xff]  ;;  %v6203_v44 = vld [vmem:[#allocation39_spill] sm:$0xff]  ;;  %v6221_v7 = vld [vmem:[#allocation24_spill] sm:$0xff] }
  0x3e   :  { %v580_v17 = vmul.f32 %v575_v52, %v2627_v15  ;;  %v582_v62 = vmul.f32 %v575_v52, %v2630_v19  ;;  %v584_v37 = vmul.f32 %v575_v52, %v2633_v20  ;;  %v586_v48 = vmul.f32 %v575_v52, %v2636_v21  ;;  %v6220_v2 = vld [vmem:[#allocation23_spill] sm:$0xff]  ;;  %v6222_v41 = vld [vmem:[#allocation25_spill] sm:$0xff]  ;;  %v6224_v46 = vld [vmem:[#allocation28_spill] sm:$0xff] }
  0x3f   :  { %v588_v47 = vmul.f32 %v575_v52, %v2639_v22  ;;  %v590_v43 = vmul.f32 %v575_v52, %v2647_v25  ;;  %v592_v5 = vmul.f32 %v575_v52, %v2650_v26  ;;  %v594_v6 = vmul.f32 %v575_v52, %v6201_v16  ;;  %v6212_v63 = vld [vmem:[#allocation26_spill] sm:$0xff]  ;;  %v6223_v1 = vld [vmem:[#allocation27_spill] sm:$0xff] }
  0x40   :  { %v596_v27 = vmul.f32 %v575_v52, %v2656_v28  ;;  %v598_v56 = vmul.f32 %v575_v52, %v2664_v29  ;;  %v600_v15 = vmul.f32 %v575_v52, %v2667_v30  ;;  %v602_v19 = vmul.f32 %v575_v52, %v2670_v31 }
  0x41   :  { %v604_v20 = vmul.f32 %v575_v52, %v2675_v49  ;;  %v606_v21 = vmul.f32 %v575_v52, %v6202_v42  ;;  %v608_v22 = vmul.f32 %v575_v52, %v6203_v44  ;;  %v610_v25 = vmul.f32 %v575_v52, %v6204_v13 }
  0x42   :  { %v2909_v8 = vadd.f32 %v580_v17, %v540_v57  ;;  %v2911_v26 = vadd.f32 %v582_v62, %v542_v54  ;;  %v2913_v9 = vadd.f32 %v584_v37, %v544_v10  ;;  %v2915_v28 = vadd.f32 %v586_v48, %v546_v45  ;;  %v6225_v62 = vld [vmem:[#allocation29_spill] sm:$0xff]  ;;  %v6226_v48 = vld [vmem:[#allocation30_spill] sm:$0xff] }
  0x43   :  { %v2917_v35 = vadd.f32 %v588_v47, %v548_v53  ;;  %v2919_v34 = vadd.f32 %v590_v43, %v550_v14  ;;  %v2921_v11 = vadd.f32 %v592_v5, %v552_v61  ;;  %v2923_v59 = vadd.f32 %v594_v6, %v554_v36  ;;  %v6211_v61 = vld [vmem:[#allocation19_spill] sm:$0xff]  ;;  %v6228_v6 = vld [vmem:[#allocation32_spill] sm:$0xff] }
  0x44   :  { %v2925_v12 = vadd.f32 %v596_v27, %v556_v3  ;;  %v2927_v60 = vadd.f32 %v598_v56, %v558_v40  ;;  %v2929_v17 = vadd.f32 %v600_v15, %v560_v55  ;;  %v2931_v52 = vadd.f32 %v602_v19, %v562_v4  ;;  %v6214_v3 = vld [vmem:[#allocation36_spill] sm:$0xff]  ;;  %v6227_v43 = vld [vmem:[#allocation31_spill] sm:$0xff]  ;;  %v6229_v56 = vld [vmem:[#allocation33_spill] sm:$0xff] }
  0x45   :  { %v2933_v10 = vadd.f32 %v604_v20, %v564_v51  ;;  %v2935_v45 = vadd.f32 %v606_v21, %v566_v23  ;;  %v2937_v53 = vadd.f32 %v608_v22, %v568_v50  ;;  %v2939_v57 = vadd.f32 %v610_v25, %v570_v32  ;;  %v6219_v50 = vld [vmem:[#allocation22_spill] sm:$0xff]  ;;  %v6230_v19 = vld [vmem:[#allocation3_spill] sm:$0xff] }
  0x46   :  { %6205 = vst [vmem:[#allocation2_spill] sm:$0xff] %v2925_v12  ;;  %6206 = vst [vmem:[#allocation10_spill] sm:$0xff] %v2931_v52  ;;  %v652_v58 = vmul.f32 %v6212_v63, %v6211_v61  ;;  %v683_v38 = vrot.slane %v6214_v3, %v6213_v24  ;;  %v2947_v55 = vrot.slane %v6215_v18, %v6213_v24  ;;  %v6231_v21 = vld [vmem:[#allocation34_spill] sm:$0xff]  ;;  %v6232_v61 = vld [vmem:[#allocation4_spill] sm:$0xff] }
  0x47   :  { %6207 = vst [vmem:[#allocation17_spill] sm:$0xff] %v2933_v10  ;;  %6208 = vst [vmem:[#allocation35_spill] sm:$0xff] %v2935_v45  ;;  %v654_v51 = vmul.f32 %v6212_v63, %v6217_v39  ;;  %v656_v23 = vmul.f32 %v6212_v63, %v6218_v0  ;;  %v658_v32 = vmul.f32 %v6212_v63, %v6219_v50  ;;  %v6233_v18 = vld [vmem:[#allocation5_spill] sm:$0xff]  ;;  %v6234_v0 = vld [vmem:[#allocation6_spill] sm:$0xff] }
  0x48   :  { %6209 = vst [vmem:[#allocation38_spill] sm:$0xff] %v2937_v53  ;;  %6210 = vst [vmem:[#allocation39_spill] sm:$0xff] %v2939_v57  ;;  %v660_v4 = vmul.f32 %v6212_v63, %v6220_v2  ;;  %v662_v40 = vmul.f32 %v6212_v63, %v6221_v7  ;;  %v664_v36 = vmul.f32 %v6212_v63, %v6222_v41  ;;  %v6235_v2 = vld [vmem:[#allocation7_spill] sm:$0xff]  ;;  %v6236_v41 = vld [vmem:[#allocation8_spill] sm:$0xff] }
  0x49   :  { %6216 = vst [vmem:[#allocation42_spill] sm:$0xff] %v2947_v55  ;;  %v666_v54 = vmul.f32 %v6212_v63, %v6223_v1  ;;  %v668_v14 = vmul.f32 %v6212_v63, %v6224_v46  ;;  %v670_v37 = vmul.f32 %v6212_v63, %v6225_v62  ;;  %v672_v47 = vmul.f32 %v6212_v63, %v6226_v48  ;;  %v6237_v46 = vld [vmem:[#allocation9_spill] sm:$0xff]  ;;  %v6238_v62 = vld [vmem:[#allocation11_spill] sm:$0xff]  ;;  %v6243_v24 = vld [vmem:[#allocation16_spill] sm:$0xff] }
  0x4a   :  { %v674_v5 = vmul.f32 %v6212_v63, %v6227_v43  ;;  %v676_v27 = vmul.f32 %v6212_v63, %v6228_v6  ;;  %v678_v15 = vmul.f32 %v6212_v63, %v6229_v56  ;;  %v688_v20 = vmul.f32 %v683_v38, %v6230_v19  ;;  %v6239_v43 = vld [vmem:[#allocation12_spill] sm:$0xff]  ;;  %v6241_v19 = vld [vmem:[#allocation14_spill] sm:$0xff]  ;;  %v6242_v55 = vld [vmem:[#allocation15_spill] sm:$0xff] }
  0x4b   :  { %v764_v22 = vmul.f32 %v6231_v21, %v6201_v16  ;;  %v766_v25 = vmul.f32 %v6231_v21, %v2664_v29  ;;  %v690_v3 = vmul.f32 %v683_v38, %v6232_v61  ;;  %v692_v39 = vmul.f32 %v683_v38, %v6233_v18  ;;  %v6240_v16 = vld [vmem:[#allocation13_spill] sm:$0xff] }
  0x4c   :  { %v694_v50 = vmul.f32 %v683_v38, %v6234_v0  ;;  %v696_v7 = vmul.f32 %v683_v38, %v6235_v2  ;;  %v698_v1 = vmul.f32 %v683_v38, %v6236_v41  ;;  %v700_v63 = vmul.f32 %v683_v38, %v6237_v46 }
  0x4d   :  { %v702_v48 = vmul.f32 %v683_v38, %v6238_v62  ;;  %v704_v6 = vmul.f32 %v683_v38, %v6239_v43  ;;  %v706_v56 = vmul.f32 %v683_v38, %v6240_v16  ;;  %v708_v29 = vmul.f32 %v683_v38, %v6241_v19 }
  0x4e   :  { %v710_v61 = vmul.f32 %v683_v38, %v6242_v55  ;;  %v712_v18 = vmul.f32 %v683_v38, %v6243_v24  ;;  %v714_v0 = vmul.f32 %v683_v38, %v6200_v33  ;;  %v716_v12 = vadd.f32 %v688_v20, %v652_v58 }
  0x4f   :  { %v768_v2 = vmul.f32 %v6231_v21, %v2667_v30  ;;  %v770_v41 = vmul.f32 %v6231_v21, %v2670_v31  ;;  %v718_v46 = vadd.f32 %v690_v3, %v654_v51  ;;  %v720_v62 = vadd.f32 %v692_v39, %v656_v23  ;;  %v6244_v51 = vld [vmem:[#allocation45_spill] sm:$0xff] }
  0x50   :  { %v722_v43 = vadd.f32 %v694_v50, %v658_v32  ;;  %v724_v57 = vadd.f32 %v696_v7, %v660_v4  ;;  %v726_v16 = vadd.f32 %v698_v1, %v662_v40  ;;  %v728_v53 = vadd.f32 %v700_v63, %v664_v36  ;;  %v6245_v32 = vld [vmem:[#allocation46_spill] sm:$0xff]  ;;  %v6246_v40 = vld [vmem:[#allocation59_spill] sm:$0xff]  ;;  %v6252_v50 = vld [vmem:[#allocation61_spill] sm:$0xff] }
  0x51   :  { %v730_v19 = vadd.f32 %v702_v48, %v666_v54  ;;  %v732_v45 = vadd.f32 %v704_v6, %v668_v14  ;;  %v734_v55 = vadd.f32 %v706_v56, %v670_v37  ;;  %v736_v10 = vadd.f32 %v708_v29, %v672_v47  ;;  %v6247_v54 = vld [vmem:[#allocation47_spill] sm:$0xff]  ;;  %v6248_v37 = vld [vmem:[#allocation48_spill] sm:$0xff]  ;;  %v6260_v29 = vld [vmem:[#allocation69_spill] sm:$0xff] }
  0x52   :  { %v738_v24 = vadd.f32 %v710_v61, %v674_v5  ;;  %v740_v52 = vadd.f32 %v712_v18, %v676_v27  ;;  %v742_v33 = vadd.f32 %v714_v0, %v678_v15  ;;  %v772_v58 = vmul.f32 %v6231_v21, %v2675_v49  ;;  %v6249_v47 = vld [vmem:[#allocation51_spill] sm:$0xff]  ;;  %v6254_v6 = vld [vmem:[#allocation64_spill] sm:$0xff]  ;;  %v6261_v61 = vld [vmem:[#allocation10_spill] sm:$0xff] }
  0x53   :  { %v774_v30 = vmul.f32 %v6231_v21, %v6202_v42  ;;  %v776_v31 = vmul.f32 %v6231_v21, %v6203_v44  ;;  %v778_v38 = vmul.f32 %v6231_v21, %v6204_v13  ;;  %v780_v23 = vadd.f32 %v6244_v51, %v716_v12  ;;  %v6250_v42 = vld [vmem:[#allocation60_spill] sm:$0xff]  ;;  %v6253_v1 = vld [vmem:[#allocation63_spill] sm:$0xff]  ;;  %v6262_v0 = vld [vmem:[#allocation70_spill] sm:$0xff] }
  0x54   :  { %v782_v4 = vadd.f32 %v6245_v32, %v718_v46  ;;  %v810_v36 = vadd.f32 %v2911_v26, %v6246_v40  ;;  %v784_v14 = vadd.f32 %v6247_v54, %v720_v62  ;;  %v786_v49 = vadd.f32 %v6248_v37, %v722_v43  ;;  %v6251_v44 = vld [vmem:[#allocation52_spill] sm:$0xff]  ;;  %v6274_v51 = vld [vmem:[#allocation2_spill] sm:$0xff] }
  0x55   :  { %v788_v5 = vadd.f32 %v6249_v47, %v724_v57  ;;  %v812_v27 = vadd.f32 %v2913_v9, %v6250_v42  ;;  %v790_v15 = vadd.f32 %v6251_v44, %v726_v16  ;;  %v792_v20 = vadd.f32 %v764_v22, %v728_v53  ;;  %v6266_v43 = vld [vmem:[#allocation72_spill] sm:$0xff]  ;;  %v6267_v16 = vld [vmem:[#allocation38_spill] sm:$0xff] }
  0x56   :  { %v794_v13 = vadd.f32 %v766_v25, %v730_v19  ;;  %v796_v21 = vadd.f32 %v768_v2, %v732_v45  ;;  %v798_v12 = vadd.f32 %v770_v41, %v734_v55  ;;  %v800_v3 = vadd.f32 %v772_v58, %v736_v10  ;;  %v6255_v45 = vld [vmem:[#allocation65_spill] sm:$0xff]  ;;  %v6256_v25 = vld [vmem:[#allocation66_spill] sm:$0xff]  ;;  %v6264_v41 = vld [vmem:[#allocation71_spill] sm:$0xff] }
  0x57   :  { %v802_v39 = vadd.f32 %v774_v30, %v738_v24  ;;  %v814_v26 = vadd.f32 %v2915_v28, %v6252_v50  ;;  %v804_v7 = vadd.f32 %v776_v31, %v740_v52  ;;  %v816_v63 = vadd.f32 %v2917_v35, %v6253_v1  ;;  %v6258_v52 = vld [vmem:[#allocation67_spill] sm:$0xff]  ;;  %v6269_v24 = vld [vmem:[#allocation73_spill] sm:$0xff] }
  0x58   :  { %v3020_v57 = vadd.f32 %v780_v23, %v2909_v8  ;;  %v3022_v48 = vadd.f32 %v810_v36, %v782_v4  ;;  %v806_v9 = vadd.f32 %v778_v38, %v742_v33  ;;  %v818_v53 = vadd.f32 %v2919_v34, %v6254_v6  ;;  %v6259_v8 = vld [vmem:[#allocation68_spill] sm:$0xff]  ;;  %v6263_v34 = vld [vmem:[#allocation17_spill] sm:$0xff]  ;;  %v6270_v33 = vld [vmem:[#allocation39_spill] sm:$0xff] }
  0x59   :  { %v820_v10 = vadd.f32 %v2921_v11, %v6255_v45  ;;  %v3028_v22 = vadd.f32 %v812_v27, %v784_v14  ;;  %v3032_v28 = vadd.f32 %v2923_v59, %v6256_v25  ;;  %v826_v35 = vadd.f32 %v2927_v60, %v6258_v52  ;;  %v6265_v11 = vld [vmem:[#allocation35_spill] sm:$0xff]  ;;  %v66_v27 = vld [vmem:[%s5743_s2] sm:$0x3] }
  0x5a   :  { %v828_v56 = vadd.f32 %v2929_v17, %v6259_v8  ;;  %v830_v18 = vadd.f32 %v6261_v61, %v6260_v29  ;;  %v832_v2 = vadd.f32 %v6263_v34, %v6262_v0  ;;  %v834_v46 = vadd.f32 %v6265_v11, %v6264_v41  ;;  %v3152_v61 = vld [vmem:[%s5741_s0 + $0x8] sm:$0xff]  ;;  %v6293_v11 = vld [vmem:[#allocation44_spill] sm:$0xff] }
  0x5b   :  { %6257 = vst [vmem:[#allocation19_spill] sm:$0xff] %v3032_v28  ;;  %v3044_v62 = vadd.f32 %v814_v26, %v786_v49  ;;  %v872_v59 = vadd.f32 %v3022_v48, %v3020_v57  ;;  %v836_v60 = vadd.f32 %v6267_v16, %v6266_v43  ;;  %v3050_v19 = vadd.f32 %v816_v63, %v788_v5  ;;  %v3162_v0 = vld [vmem:[%s5741_s0 + $0x28] sm:$0xff]  ;;  %v3176_v16 = vld [vmem:[%s5741_s0 + $0x38] sm:$0xff] }
  0x5c   :  { %v916_v17 = vmul.f32 %v3020_v57, %v3020_v57  ;;  %v918_v55 = vmul.f32 %v3022_v48, %v3022_v48  ;;  %v3058_v58 = vadd.f32 %v6270_v33, %v6269_v24  ;;  %v3060_v30 = vadd.f32 %v818_v53, %v790_v15  ;;  %6288 = vst [vmem:[#allocation33_spill] sm:$0xff] %v3152_v61  ;;  %v6300_v24 = vld [vmem:[#allocation50_spill] sm:$0xff] }
  0x5d   :  { %6268 = vst [vmem:[#allocation26_spill] sm:$0xff] %v3050_v19  ;;  %v3062_v31 = vadd.f32 %v820_v10, %v792_v20  ;;  %v873_v38 = vadd.f32 %v872_v59, %v3028_v22  ;;  %v3066_v23 = vadd.f32 %v794_v13, %v6274_v51  ;;  %v3068_v32 = vadd.f32 %v826_v35, %v796_v21  ;;  %v62_v21 = vld [vmem:[%s5745_s4] sm:$0xff]  ;;  %v6282_v10 = vld [vmem:[#allocation37_spill] sm:$0xff] }
  0x5e   :  { %6271 = vst [vmem:[#allocation36_spill] sm:$0xff] %v3058_v58  ;;  %6272 = vst [vmem:[#allocation41_spill] sm:$0xff] %v3060_v30  ;;  %v3070_v4 = vadd.f32 %v828_v56, %v798_v12  ;;  %v920_v40 = vmul.f32 %v3028_v22, %v3028_v22  ;;  %v3074_v36 = vadd.f32 %v830_v18, %v800_v3  ;;  %v67_v12 = vld [vmem:[%s5744_s3] sm:$0x3]  ;;  %v6286_v56 = vld [vmem:[#allocation40_spill] sm:$0xff] }
  0x5f   :  { %6273 = vst [vmem:[#allocation20_spill] sm:$0xff] %v3062_v31  ;;  %6275 = vst [vmem:[#allocation21_spill] sm:$0xff] %v3066_v23  ;;  %v3076_v54 = vadd.f32 %v832_v2, %v802_v39  ;;  %v3078_v14 = vadd.f32 %v834_v46, %v804_v7  ;;  %v874_v37 = vadd.f32 %v873_v38, %v3044_v62  ;;  %v3157_v18 = vld [vmem:[%s5741_s0 + $0x18] sm:$0xff]  ;;  %v6291_v2 = vld [vmem:[#allocation43_spill] sm:$0xff] }
  0x60   :  { %6276 = vst [vmem:[#allocation22_spill] sm:$0xff] %v3068_v32  ;;  %6277 = vst [vmem:[#allocation23_spill] sm:$0xff] %v3070_v4  ;;  %v3081_v49 = vadd.f32 %v836_v60, %v806_v9  ;;  %v922_v47 = vmul.f32 %v3044_v62, %v3044_v62  ;;  %v924_v5 = vmul.f32 %v3050_v19, %v3050_v19  ;;  %v6295_v59 = vld [vmem:[#allocation49_spill] sm:$0xff]  ;;  %v3181_v60 = vld [vmem:[%s5741_s0 + $0x48] sm:$0xff] }
  0x61   :  { %6278 = vst [vmem:[#allocation24_spill] sm:$0xff] %v3074_v36  ;;  %6279 = vst [vmem:[#allocation25_spill] sm:$0xff] %v3076_v54  ;;  %v948_v42 = vadd.f32 %v918_v55, %v916_v17  ;;  %v875_v44 = vadd.f32 %v874_v37, %v3050_v19  ;;  %v926_v15 = vmul.f32 %v3060_v30, %v3060_v30  ;;  %v3186_v17 = vld [vmem:[%s5741_s0 + $0x58] sm:$0xff]  ;;  %v6302_v38 = vld [vmem:[#allocation54_spill] sm:$0xff] }
  0x62   :  { %6280 = vst [vmem:[#allocation27_spill] sm:$0xff] %v3078_v14  ;;  %6281 = vst [vmem:[#allocation28_spill] sm:$0xff] %v3081_v49  ;;  %v928_v20 = vmul.f32 %v3062_v31, %v3062_v31  ;;  %v930_v13 = vmul.f32 %v3032_v28, %v3032_v28  ;;  %v3105_v3 = vmul.f32 %v3066_v23, %v3066_v23 }
  0x63   :  { %v3109_v39 = vmul.f32 %v3068_v32, %v3068_v32  ;;  %v3113_v50 = vmul.f32 %v3070_v4, %v3070_v4  ;;  %v949_v26 = vadd.f32 %v948_v42, %v920_v40  ;;  %v876_v7 = vadd.f32 %v875_v44, %v3060_v30  ;;  %6289 = vst [vmem:[#allocation3_spill] sm:$0xff] %v3157_v18  ;;  %v6304_v40 = vld [vmem:[#allocation55_spill] sm:$0xff]  ;;  %v3216_v44 = vld [vmem:[%s5741_s0 + $0x98] sm:$0xff] }
  0x64   :  { %v3118_v1 = vmul.f32 %v3074_v36, %v3074_v36  ;;  %v3122_v63 = vmul.f32 %v3076_v54, %v3076_v54  ;;  %v3126_v9 = vmul.f32 %v3078_v14, %v3078_v14  ;;  %v3130_v6 = vmul.f32 %v3081_v49, %v3081_v49  ;;  %6290 = vst [vmem:[#allocation34_spill] sm:$0xff] %v3162_v0  ;;  %v3211_v42 = vld [vmem:[%s5741_s0 + $0x88] sm:$0xff] }
  0x65   :  { %v3134_v53 = vmul.f32 %v3058_v58, %v3058_v58  ;;  %v950_v45 = vadd.f32 %v949_v26, %v922_v47  ;;  %v3137_v25 = vrot.slane %v66_v27, %v6282_v10  ;;  %v877_v52 = vadd.f32 %v876_v7, %v3062_v31  ;;  %6297 = vst [vmem:[#allocation7_spill] sm:$0xff] %v3176_v16  ;;  %v3201_v47 = vld [vmem:[%s5741_s0 + $0x68] sm:$0xff] }
  0x66   :  { %v3141_v35 = vrot.slane %v67_v12, %v6282_v10  ;;  %v3144_v8 = vrot.slane %v62_v21, %v6282_v10  ;;  %v3147_v29 = vrot.slane %v62_v21, %v6286_v56  ;;  %v3165_v41 = vrot.slane %v62_v21, %v6291_v2  ;;  %6298 = vst [vmem:[#allocation8_spill] sm:$0xff] %v3181_v60  ;;  %v3226_v12 = vld [vmem:[%s5741_s0 + $0xb8] sm:$0xff] }
  0x67   :  { %6283 = vst [vmem:[#allocation29_spill] sm:$0xff] %v3137_v25  ;;  %v951_v34 = vadd.f32 %v950_v45, %v924_v5  ;;  %v3168_v46 = vrot.slane %v62_v21, %v6293_v11  ;;  %v3171_v43 = vrot.slane %v62_v21, %v6295_v59  ;;  %6299 = vst [vmem:[#allocation9_spill] sm:$0xff] %v3186_v17  ;;  %v3206_v5 = vld [vmem:[%s5741_s0 + $0x78] sm:$0xff]  ;;  %v103_v26 = vrot.slane %v3152_v61, 7 }
  0x68   :  { %6284 = vst [vmem:[#allocation30_spill] sm:$0xff] %v3141_v35  ;;  %6285 = vst [vmem:[#allocation31_spill] sm:$0xff] %v3144_v8  ;;  %v878_v55 = vadd.f32 %v877_v52, %v3032_v28  ;;  %v3190_v33 = vrot.slane %v62_v21, %v6300_v24  ;;  %v3193_v51 = vrot.slane %v62_v21, %v6302_v38  ;;  %v105_v7 = vrot.slane %v3157_v18, 7  ;;  %v3235_v52 = vld [vmem:[%s5741_s0 + $0xc8] sm:$0xff]  ;;  %v3253_v11 = vld [vmem:[%s5741_s0 + $0xf8] sm:$0xff] }
  0x69   :  { %6287 = vst [vmem:[#allocation32_spill] sm:$0xff] %v3147_v29  ;;  %6292 = vst [vmem:[#allocation4_spill] sm:$0xff] %v3165_v41  ;;  %v3196_v37 = vrot.slane %v62_v21, %v6304_v40  ;;  %v952_v27 = vadd.f32 %v951_v34, %v926_v15  ;;  %v3221_v21 = vld [vmem:[%s5741_s0 + $0xa8] sm:$0xff]  ;;  %v107_v15 = vrot.slane %v3162_v0, 7  ;;  %v3240_v34 = vld [vmem:[%s5741_s0 + $0xd8] sm:$0xff]  ;;  %v109_v38 = vrot.slane %v3176_v16, 7 }
  0x6a   :  { %6294 = vst [vmem:[#allocation5_spill] sm:$0xff] %v3168_v46  ;;  %6296 = vst [vmem:[#allocation6_spill] sm:$0xff] %v3171_v43  ;;  %v879_v45 = vadd.f32 %v878_v55, %v3066_v23  ;;  %v3245_v40 = vld [vmem:[%s5741_s0 + $0xe8] sm:$0xff]  ;;  %v111_v24 = vrot.slane %v3181_v60, 7  ;;  %v113_v55 = vrot.slane %v3186_v17, 7  ;;  %v115_v2 = vrot.slane %v3201_v47, 7 }
  0x6b   :  { %6301 = vst [vmem:[#allocation11_spill] sm:$0xff] %v3190_v33  ;;  %6303 = vst [vmem:[#allocation12_spill] sm:$0xff] %v3193_v51  ;;  %v953_v59 = vadd.f32 %v952_v27, %v928_v20  ;;  %v117_v56 = vrot.slane %v3206_v5, 7  ;;  %v119_v10 = vrot.slane %v3211_v42, 7  ;;  %v121_v51 = vrot.slane %v3216_v44, 7 }
  0x6c   :  { %6305 = vst [vmem:[#allocation13_spill] sm:$0xff] %v3196_v37  ;;  %6306 = vst [vmem:[#allocation14_spill] sm:$0xff] %v3201_v47  ;;  %v880_v37 = vadd.f32 %v879_v45, %v3068_v32  ;;  %v123_v33 = vrot.slane %v3221_v21, 7  ;;  %v125_v43 = vrot.slane %v3226_v12, 7  ;;  %v127_v27 = vrot.slane %v3235_v52, 7 }
  0x6d   :  { %6307 = vst [vmem:[#allocation15_spill] sm:$0xff] %v3206_v5  ;;  %6308 = vst [vmem:[#allocation16_spill] sm:$0xff] %v3211_v42  ;;  %v954_v20 = vadd.f32 %v953_v59, %v930_v13  ;;  %v129_v46 = vrot.slane %v3240_v34, 7  ;;  %v131_v41 = vrot.slane %v3245_v40, 7  ;;  %v133_v8 = vrot.slane %v3253_v11, 7 }
  0x6e   :  { %6309 = vst [vmem:[#allocation45_spill] sm:$0xff] %v3216_v44  ;;  %v881_v29 = vadd.f32 %v880_v37, %v3070_v4  ;;  %v3268_v35 = vsel %vm166_vm0, 0.0, %v103_v26  ;;  %v3271_v45 = vsel %vm166_vm0, 0.0, %v105_v7  ;;  %v3275_v13 = vsel %vm166_vm0, 0.0, %v107_v15 }
  0x6f   :  { %6310 = vst [vmem:[#allocation46_spill] sm:$0xff] %v3271_v45  ;;  %v955_v25 = vadd.f32 %v954_v20, %v3105_v3  ;;  %6311 = vst [vmem:[#allocation59_spill] sm:$0xff] %v3275_v13  ;;  %v3278_v59 = vsel %vm166_vm0, 0.0, %v109_v38  ;;  %v3281_v32 = vsel %vm166_vm0, 0.0, %v111_v24  ;;  %v3285_v4 = vsel %vm166_vm0, 0.0, %v113_v55 }
  0x70   :  { %6312 = vst [vmem:[#allocation47_spill] sm:$0xff] %v3278_v59  ;;  %6313 = vst [vmem:[#allocation48_spill] sm:$0xff] %v3281_v32  ;;  %v882_v37 = vadd.f32 %v881_v29, %v3074_v36  ;;  %v3288_v26 = vsel %vm166_vm0, 0.0, %v115_v2  ;;  %v3291_v7 = vsel %vm166_vm0, 0.0, %v117_v56  ;;  %v3295_v15 = vsel %vm166_vm0, 0.0, %v119_v10 }
  0x71   :  { %6314 = vst [vmem:[#allocation51_spill] sm:$0xff] %v3285_v4  ;;  %6315 = vst [vmem:[#allocation60_spill] sm:$0xff] %v3288_v26  ;;  %v956_v3 = vadd.f32 %v955_v25, %v3109_v39  ;;  %v3298_v38 = vsel %vm166_vm0, 0.0, %v121_v51  ;;  %v3301_v24 = vsel %vm166_vm0, 0.0, %v123_v33  ;;  %v3305_v55 = vsel %vm166_vm0, 0.0, %v125_v43 }
  0x72   :  { %6316 = vst [vmem:[#allocation52_spill] sm:$0xff] %v3291_v7  ;;  %6317 = vst [vmem:[#allocation61_spill] sm:$0xff] %v3295_v15  ;;  %v883_v29 = vadd.f32 %v882_v37, %v3076_v54  ;;  %v3308_v2 = vsel %vm166_vm0, 0.0, %v127_v27  ;;  %v3311_v56 = vsel %vm166_vm0, 0.0, %v129_v46  ;;  %v3315_v10 = vsel %vm166_vm0, 0.0, %v131_v41 }
  0x73   :  { %6318 = vst [vmem:[#allocation63_spill] sm:$0xff] %v3298_v38  ;;  %6319 = vst [vmem:[#allocation64_spill] sm:$0xff] %v3301_v24  ;;  %v957_v39 = vadd.f32 %v956_v3, %v3113_v50  ;;  %v3318_v25 = vsel %vm166_vm0, 0.0, %v133_v8  ;;  %v200_v33 = vrot.slane %v3152_v61, 1  ;;  %v202_v43 = vrot.slane %v3157_v18, 1 }
  0x74   :  { %6320 = vst [vmem:[#allocation65_spill] sm:$0xff] %v3305_v55  ;;  %6321 = vst [vmem:[#allocation66_spill] sm:$0xff] %v3308_v2  ;;  %v884_v51 = vadd.f32 %v883_v29, %v3078_v14  ;;  %v204_v20 = vrot.slane %v3162_v0, 1  ;;  %v206_v27 = vrot.slane %v3176_v16, 1  ;;  %v208_v50 = vrot.slane %v3181_v60, 1 }
  0x75   :  { %6322 = vst [vmem:[#allocation67_spill] sm:$0xff] %v3311_v56  ;;  %6323 = vst [vmem:[#allocation68_spill] sm:$0xff] %v3315_v10  ;;  %v958_v46 = vadd.f32 %v957_v39, %v3118_v1  ;;  %v210_v41 = vrot.slane %v3186_v17, 1  ;;  %v212_v37 = vrot.slane %v3201_v47, 1  ;;  %v214_v3 = vrot.slane %v3206_v5, 1 }
  0x76   :  { %6324 = vst [vmem:[#allocation69_spill] sm:$0xff] %v3318_v25  ;;  %v885_v8 = vadd.f32 %v884_v51, %v3081_v49  ;;  %v216_v29 = vrot.slane %v3211_v42, 1  ;;  %v218_v25 = vrot.slane %v3216_v44, 1  ;;  %v220_v14 = vrot.slane %v3221_v21, 1 }
  0x77   :  { %v959_v7 = vadd.f32 %v958_v46, %v3122_v63  ;;  %v222_v1 = vrot.slane %v3226_v12, 1  ;;  %v224_v39 = vrot.slane %v3235_v52, 1  ;;  %v226_v36 = vrot.slane %v3240_v34, 1 }
  0x78   :  { %v886_v54 = vadd.f32 %v885_v8, %v3058_v58  ;;  %v228_v51 = vrot.slane %v3245_v40, 1  ;;  %v230_v5 = vrot.slane %v3253_v11, 1  ;;  %v3343_v23 = vsel %vm263_vm1, %v200_v33, 0.0 }
  0x79   :  { %v960_v49 = vadd.f32 %v959_v7, %v3126_v9  ;;  %6325 = vst [vmem:[#allocation10_spill] sm:$0xff] %v3343_v23  ;;  %v3346_v63 = vsel %vm263_vm1, %v202_v43, 0.0  ;;  %v3349_v46 = vsel %vm263_vm1, %v204_v20, 0.0  ;;  %v3352_v8 = vsel %vm263_vm1, %v206_v27, 0.0 }
  0x7a   :  { %6326 = vst [vmem:[#allocation70_spill] sm:$0xff] %v3346_v63  ;;  %6327 = vst [vmem:[#allocation17_spill] sm:$0xff] %v3349_v46  ;;  %v887_v28 = vrot.slane %v886_v54, 4  ;;  %v3355_v58 = vsel %vm263_vm1, %v208_v50, 0.0  ;;  %v3358_v11 = vsel %vm263_vm1, %v210_v41, 0.0  ;;  %v3362_v7 = vsel %vm263_vm1, %v212_v37, 0.0 }
  0x7b   :  { %6328 = vst [vmem:[#allocation71_spill] sm:$0xff] %v3352_v8  ;;  %6329 = vst [vmem:[#allocation35_spill] sm:$0xff] %v3355_v58  ;;  %v961_v9 = vadd.f32 %v960_v49, %v3130_v6  ;;  %v3365_v33 = vsel %vm263_vm1, %v214_v3, 0.0  ;;  %v3368_v43 = vsel %vm263_vm1, %v216_v29, 0.0  ;;  %v3371_v27 = vsel %vm263_vm1, %v218_v25, 0.0 }
  0x7c   :  { %6330 = vst [vmem:[#allocation72_spill] sm:$0xff] %v3358_v11  ;;  %6331 = vst [vmem:[#allocation38_spill] sm:$0xff] %v3362_v7  ;;  %v888_v20 = vadd.f32 %v887_v28, %v886_v54  ;;  %v3374_v50 = vsel %vm263_vm1, %v220_v14, 0.0  ;;  %v3377_v41 = vsel %vm263_vm1, %v222_v1, 0.0  ;;  %v3381_v6 = vsel %vm263_vm1, %v224_v39, 0.0  ;;  %v6341_v14 = vld [vmem:[#allocation53_spill] sm:$0xff] }
  0x7d   :  { %6332 = vst [vmem:[#allocation73_spill] sm:$0xff] %v3365_v33  ;;  %6333 = vst [vmem:[#allocation39_spill] sm:$0xff] %v3368_v43  ;;  %v962_v49 = vadd.f32 %v961_v9, %v3134_v53  ;;  %v3384_v37 = vsel %vm263_vm1, %v226_v36, 0.0  ;;  %v3387_v3 = vsel %vm263_vm1, %v228_v51, 0.0  ;;  %v3390_v54 = vsel %vm263_vm1, %v230_v5, 0.0 }
  0x7e   :  { %6334 = vst [vmem:[#allocation2_spill] sm:$0xff] %v3371_v27  ;;  %6335 = vst [vmem:[#allocation75_spill] sm:$0xff] %v3374_v50  ;;  %v889_v28 = vrot.slane %v888_v20, 2  ;;  %v305_v25 = vmul.f32 %v6341_v14, %v3268_v35  ;;  %v307_v29 = vmul.f32 %v6341_v14, %v3271_v45  ;;  %v309_v1 = vmul.f32 %v6341_v14, %v3275_v13 }
  0x7f   :  { %6336 = vst [vmem:[#allocation76_spill] sm:$0xff] %v3377_v41  ;;  %6337 = vst [vmem:[#allocation77_spill] sm:$0xff] %v3381_v6  ;;  %v963_v53 = vrot.slane %v962_v49, 4  ;;  %v311_v36 = vmul.f32 %v6341_v14, %v3278_v59  ;;  %v313_v39 = vmul.f32 %v6341_v14, %v3281_v32  ;;  %v315_v5 = vmul.f32 %v6341_v14, %v3285_v4 }
  0x80   :  { %6338 = vst [vmem:[#allocation78_spill] sm:$0xff] %v3384_v37  ;;  %6339 = vst [vmem:[#allocation79_spill] sm:$0xff] %v3387_v3  ;;  %v890_v51 = vadd.f32 %v889_v28, %v888_v20  ;;  %v317_v9 = vmul.f32 %v6341_v14, %v3288_v26  ;;  %v321_v13 = vmul.f32 %v6341_v14, %v3298_v38 }
  0x81   :  { %6340 = vst [vmem:[#allocation80_spill] sm:$0xff] %v3390_v54  ;;  %v319_v54 = vmul.f32 %v6341_v14, %v3295_v15  ;;  %v964_v33 = vadd.f32 %v963_v53, %v962_v49  ;;  %v323_v59 = vmul.f32 %v6341_v14, %v3301_v24  ;;  %v325_v32 = vmul.f32 %v6341_v14, %v3305_v55  ;;  %v6342_v53 = vld [vmem:[#allocation56_spill] sm:$0xff] }
  0x82   :  { %v891_v20 = vrot.slane %v890_v51, 1  ;;  %v327_v28 = vmul.f32 %v6341_v14, %v3308_v2  ;;  %v329_v26 = vmul.f32 %v6341_v14, %v3311_v56  ;;  %v3420_v15 = vmul.f32 %v6341_v14, %v3315_v10 }
  0x83   :  { %v965_v49 = vrot.slane %v964_v33, 2  ;;  %v341_v38 = vmul.f32 %v6342_v53, %v3152_v61  ;;  %v343_v24 = vmul.f32 %v6342_v53, %v3157_v18  ;;  %v345_v55 = vmul.f32 %v6342_v53, %v3162_v0 }
  0x84   :  { %v892_v4 = vadd.f32 %v891_v20, %v890_v51  ;;  %v347_v2 = vmul.f32 %v6342_v53, %v3176_v16  ;;  %v349_v56 = vmul.f32 %v6342_v53, %v3181_v60  ;;  %v351_v14 = vmul.f32 %v6342_v53, %v3186_v17 }
  0x85   :  { %v966_v10 = vadd.f32 %v965_v49, %v964_v33  ;;  %v353_v61 = vmul.f32 %v6342_v53, %v3201_v47  ;;  %v355_v18 = vmul.f32 %v6342_v53, %v3211_v42  ;;  %v357_v0 = vmul.f32 %v6342_v53, %v3216_v44 }
  0x86   :  { %v3440_v51 = vmul.f32 0.0078125, %v892_v4  ;;  %v359_v20 = vmul.f32 %v6342_v53, %v3221_v21  ;;  %v361_v60 = vmul.f32 %v6342_v53, %v3226_v12  ;;  %v363_v33 = vmul.f32 %v6342_v53, %v3235_v52 }
  0x87   :  { %v967_v49 = vrot.slane %v966_v10, 1  ;;  %v365_v47 = vmul.f32 %v6342_v53, %v3240_v34  ;;  %v367_v42 = vmul.f32 %v6342_v53, %v3245_v40  ;;  %v369_v17 = vadd.f32 %v341_v38, %v305_v25  ;;  %v6350_v25 = vld [vmem:[#allocation28_spill] sm:$0xff] }
  0x88   :  { %v992_v4 = vmul.f32 %v3440_v51, %v3440_v51  ;;  %v371_v44 = vadd.f32 %v343_v24, %v307_v29  ;;  %v373_v16 = vadd.f32 %v345_v55, %v309_v1  ;;  %v375_v21 = vadd.f32 %v347_v2, %v311_v36  ;;  %v6351_v1 = vld [vmem:[#allocation36_spill] sm:$0xff]  ;;  %v6352_v24 = vld [vmem:[#allocation57_spill] sm:$0xff] }
  0x89   :  { %v968_v45 = vadd.f32 %v967_v49, %v966_v10  ;;  %v377_v53 = vadd.f32 %v349_v56, %v313_v39  ;;  %v379_v36 = vadd.f32 %v351_v14, %v315_v5  ;;  %v381_v31 = vadd.f32 %v353_v61, %v317_v9  ;;  %v6394_v10 = vld [vmem:[#allocation67_spill] sm:$0xff] }
  0x8a   :  { %v383_v40 = vadd.f32 %v355_v18, %v319_v54  ;;  %v385_v49 = vadd.f32 %v357_v0, %v321_v13  ;;  %v387_v34 = vadd.f32 %v359_v20, %v323_v59  ;;  %v389_v38 = vadd.f32 %v361_v60, %v325_v32 }
  0x8b   :  { %v990_v2 = vmul.f32 0.0078125, %v968_v45  ;;  %v6349_v45 = vld [vmem:[#allocation27_spill] sm:$0xff]  ;;  %v391_v19 = vadd.f32 %v363_v33, %v327_v28  ;;  %v393_v52 = vadd.f32 %v365_v47, %v329_v26  ;;  %v405_v55 = vmul.f32 %v6352_v24, %v3343_v23 }
  0x8c   :  { %v411_v61 = vmul.f32 %v6352_v24, %v3352_v8  ;;  %v413_v18 = vmul.f32 %v6352_v24, %v3355_v58  ;;  %v415_v32 = vmul.f32 %v6352_v24, %v3358_v11  ;;  %v417_v0 = vmul.f32 %v6352_v24, %v3362_v7 }
  0x8d   :  { %v994_v12 = vsub.f32 %v990_v2, %v992_v4  ;;  %v407_v4 = vmul.f32 %v6352_v24, %v3346_v63  ;;  %v409_v2 = vmul.f32 %v6352_v24, %v3349_v46  ;;  %v419_v60 = vmul.f32 %v6352_v24, %v3368_v43 }
  0x8e   :  { %v421_v47 = vmul.f32 %v6352_v24, %v3371_v27  ;;  %v425_v13 = vmul.f32 %v6352_v24, %v3377_v41  ;;  %v427_v59 = vmul.f32 %v6352_v24, %v3381_v6  ;;  %v429_v26 = vmul.f32 %v6352_v24, %v3384_v37  ;;  %v6435_v37 = vld [vmem:[#allocation22_spill] sm:$0xff]  ;;  %v6437_v6 = vld [vmem:[#allocation23_spill] sm:$0xff]  ;;  %v6439_v41 = vld [vmem:[#allocation24_spill] sm:$0xff] }
  0x8f   :  { %v996_v30 = vmax.f32 %v994_v12, 0.0  ;;  %v3513_v56 = vadd.f32 %v367_v42, %v3420_v15  ;;  %v3517_v54 = vmul.f32 %v6352_v24, %v3387_v3  ;;  %v3519_v39 = vadd.f32 %v405_v55, %v369_v17  ;;  %v6370_v55 = vld [vmem:[#allocation46_spill] sm:$0xff]  ;;  %v6433_v3 = vld [vmem:[#allocation21_spill] sm:$0xff] }
  0x90   :  { %v3521_v5 = vadd.f32 %v407_v4, %v371_v44  ;;  %v3523_v9 = vadd.f32 %v409_v2, %v373_v16  ;;  %v3525_v28 = vadd.f32 %v411_v61, %v375_v21  ;;  %v3527_v14 = vadd.f32 %v413_v18, %v377_v53  ;;  %v6368_v21 = vld [vmem:[#allocation62_spill] sm:$0xff]  ;;  %v6380_v53 = vld [vmem:[#allocation60_spill] sm:$0xff]  ;;  %v6384_v61 = vld [vmem:[#allocation61_spill] sm:$0xff] }
  0x91   :  { %v1030_v29 = vadd.f32 1e-05, %v996_v30  ;;  %v423_v30 = vmul.f32 %v6352_v24, %v3374_v50  ;;  %6353 = vst [vmem:[#allocation53_spill] sm:$0xff] %v3513_v56  ;;  %6354 = vst [vmem:[#allocation56_spill] sm:$0xff] %v3517_v54  ;;  %v3529_v20 = vadd.f32 %v415_v32, %v379_v36  ;;  %v3531_v33 = vadd.f32 %v417_v0, %v381_v31  ;;  %v6378_v36 = vld [vmem:[#allocation51_spill] sm:$0xff]  ;;  %v6382_v4 = vld [vmem:[#allocation52_spill] sm:$0xff] }
  0x92   :  { %6355 = vst [vmem:[#allocation27_spill] sm:$0xff] %v3519_v39  ;;  %6356 = vst [vmem:[#allocation28_spill] sm:$0xff] %v3521_v5  ;;  %v3533_v42 = vadd.f32 %v419_v60, %v383_v40  ;;  %v3535_v15 = vadd.f32 %v421_v47, %v385_v49  ;;  %v3539_v17 = vadd.f32 %v425_v13, %v389_v38  ;;  %v6372_v40 = vld [vmem:[#allocation59_spill] sm:$0xff]  ;;  %v6388_v60 = vld [vmem:[#allocation64_spill] sm:$0xff] }
  0x93   :  { %2368 = vrsqrt.f32 %v1030_v29  ;;  %6357 = vst [vmem:[#allocation36_spill] sm:$0xff] %v3523_v9  ;;  %6358 = vst [vmem:[#allocation57_spill] sm:$0xff] %v3525_v28  ;;  %v3537_v12 = vadd.f32 %v423_v30, %v387_v34  ;;  %v3541_v44 = vadd.f32 %v427_v59, %v391_v19  ;;  %v3543_v16 = vadd.f32 %v429_v26, %v393_v52  ;;  %v6374_v34 = vld [vmem:[#allocation47_spill] sm:$0xff]  ;;  %v6376_v19 = vld [vmem:[#allocation48_spill] sm:$0xff] }
  0x94   :  { %6359 = vst [vmem:[#allocation81_spill] sm:$0xff] %v3527_v14  ;;  %6360 = vst [vmem:[#allocation82_spill] sm:$0xff] %v3529_v20  ;;  %v3547_v24 = vmul.f32 %v6368_v21, %v3268_v35  ;;  %v3551_v31 = vmul.f32 %v6368_v21, %v6370_v55  ;;  %v3555_v29 = vmul.f32 %v6368_v21, %v6372_v40  ;;  %v6386_v32 = vld [vmem:[#allocation63_spill] sm:$0xff]  ;;  %v6390_v30 = vld [vmem:[#allocation65_spill] sm:$0xff] }
  0x95   :  { %6361 = vst [vmem:[#allocation83_spill] sm:$0xff] %v3531_v33  ;;  %6362 = vst [vmem:[#allocation84_spill] sm:$0xff] %v3533_v42  ;;  %v3559_v38 = vmul.f32 %v6368_v21, %v6374_v34  ;;  %v3563_v52 = vmul.f32 %v6368_v21, %v6376_v19  ;;  %v3567_v35 = vmul.f32 %v6368_v21, %v6378_v36  ;;  %v6392_v59 = vld [vmem:[#allocation66_spill] sm:$0xff]  ;;  %v6403_v20 = vld [vmem:[#allocation3_spill] sm:$0xff] }
  0x96   :  { %6363 = vst [vmem:[#allocation85_spill] sm:$0xff] %v3535_v15  ;;  %6364 = vst [vmem:[#allocation86_spill] sm:$0xff] %v3537_v12  ;;  %v3571_v49 = vmul.f32 %v6368_v21, %v6380_v53  ;;  %v3575_v2 = vmul.f32 %v6368_v21, %v6382_v4  ;;  %v3579_v18 = vmul.f32 %v6368_v21, %v6384_v61  ;;  %v6400_v15 = vld [vmem:[#allocation33_spill] sm:$0xff]  ;;  %v6401_v42 = vld [vmem:[#allocation18_spill] sm:$0xff] }
  0x97   :  { %6365 = vst [vmem:[#allocation87_spill] sm:$0xff] %v3539_v17  ;;  %6366 = vst [vmem:[#allocation88_spill] sm:$0xff] %v3541_v44  ;;  %v3583_v0 = vmul.f32 %v6368_v21, %v6386_v32  ;;  %v3587_v47 = vmul.f32 %v6368_v21, %v6388_v60  ;;  %v3591_v13 = vmul.f32 %v6368_v21, %v6390_v30  ;;  %v6398_v17 = vld [vmem:[#allocation69_spill] sm:$0xff]  ;;  %v6405_v28 = vld [vmem:[#allocation34_spill] sm:$0xff] }
  0x98   :  { %6367 = vst [vmem:[#allocation89_spill] sm:$0xff] %v3543_v16  ;;  %6369 = vst [vmem:[#allocation62_spill] sm:$0xff] %v3547_v24  ;;  %v3595_v26 = vmul.f32 %v6368_v21, %v6392_v59  ;;  %v3599_v61 = vmul.f32 %v6368_v21, %v6394_v10  ;;  %v6396_v16 = vld [vmem:[#allocation68_spill] sm:$0xff]  ;;  %v3607_v12 = vmul.f32 %v6368_v21, %v6398_v17  ;;  %v6407_v5 = vld [vmem:[#allocation7_spill] sm:$0xff] }
  0x99   :  { %6371 = vst [vmem:[#allocation90_spill] sm:$0xff] %v3551_v31  ;;  %6373 = vst [vmem:[#allocation91_spill] sm:$0xff] %v3555_v29  ;;  %v3603_v44 = vmul.f32 %v6368_v21, %v6396_v16  ;;  %v3611_v33 = vmul.f32 %v6401_v42, %v6400_v15  ;;  %v3615_v14 = vmul.f32 %v6401_v42, %v6403_v20  ;;  %v6409_v54 = vld [vmem:[#allocation8_spill] sm:$0xff]  ;;  %v6411_v17 = vld [vmem:[#allocation9_spill] sm:$0xff] }
  0x9a   :  { %6375 = vst [vmem:[#allocation92_spill] sm:$0xff] %v3559_v38  ;;  %6377 = vst [vmem:[#allocation93_spill] sm:$0xff] %v3563_v52  ;;  %v3619_v9 = vmul.f32 %v6401_v42, %v6405_v28  ;;  %v3623_v39 = vmul.f32 %v6401_v42, %v6407_v5  ;;  %v3627_v21 = vmul.f32 %v6401_v42, %v6409_v54  ;;  %v6413_v16 = vld [vmem:[#allocation14_spill] sm:$0xff]  ;;  %v6415_v10 = vld [vmem:[#allocation15_spill] sm:$0xff] }
  0x9b   :  { %6379 = vst [vmem:[#allocation94_spill] sm:$0xff] %v3567_v35  ;;  %6381 = vst [vmem:[#allocation95_spill] sm:$0xff] %v3571_v49  ;;  %v3631_v15 = vmul.f32 %v6401_v42, %v6411_v17  ;;  %v3635_v20 = vmul.f32 %v6401_v42, %v6413_v16  ;;  %v3639_v28 = vmul.f32 %v6401_v42, %v6415_v10  ;;  %v6417_v59 = vld [vmem:[#allocation16_spill] sm:$0xff]  ;;  %v6422_v4 = vld [vmem:[#allocation45_spill] sm:$0xff] }
  0x9c   :  { %6383 = vst [vmem:[#allocation96_spill] sm:$0xff] %v3575_v2  ;;  %6385 = vst [vmem:[#allocation61_spill] sm:$0xff] %v3579_v18  ;;  %v3643_v5 = vmul.f32 %v6401_v42, %v6417_v59  ;;  %v6419_v54 = vsub.f32 %v3020_v57, %v3440_v51  ;;  %v6420_v17 = vsub.f32 %v3022_v48, %v3440_v51  ;;  %v6425_v36 = vld [vmem:[#allocation26_spill] sm:$0xff]  ;;  %v6427_v19 = vld [vmem:[#allocation41_spill] sm:$0xff] }
  0x9d   :  { %6387 = vst [vmem:[#allocation97_spill] sm:$0xff] %v3583_v0  ;;  %6389 = vst [vmem:[#allocation98_spill] sm:$0xff] %v3587_v47  ;;  %v2369_v56 = vpop.eup %2368  ;;  %v6421_v16 = vsub.f32 %v3028_v22, %v3440_v51  ;;  %v3656_v10 = vmul.f32 %v6401_v42, %v6422_v4  ;;  %v6424_v59 = vsub.f32 %v3044_v62, %v3440_v51  ;;  %v6429_v34 = vld [vmem:[#allocation20_spill] sm:$0xff]  ;;  %v6431_v40 = vld [vmem:[#allocation19_spill] sm:$0xff] }
  0x9e   :  { %6391 = vst [vmem:[#allocation99_spill] sm:$0xff] %v3591_v13  ;;  %6393 = vst [vmem:[#allocation100_spill] sm:$0xff] %v3595_v26  ;;  %v1034_v30 = vmul.f32 %v2369_v56, %v6419_v54  ;;  %v1036_v60 = vmul.f32 %v2369_v56, %v6420_v17  ;;  %v6426_v57 = vsub.f32 %v6425_v36, %v3440_v51  ;;  %v6441_v50 = vld [vmem:[#allocation25_spill] sm:$0xff]  ;;  %v6484_v24 = vld [vmem:[#allocation32_spill] sm:$0xff] }
  0x9f   :  { %6395 = vst [vmem:[#allocation101_spill] sm:$0xff] %v3599_v61  ;;  %6397 = vst [vmem:[#allocation102_spill] sm:$0xff] %v3603_v44  ;;  %v1038_v32 = vmul.f32 %v2369_v56, %v6421_v16  ;;  %v1040_v53 = vmul.f32 %v2369_v56, %v6424_v59  ;;  %v6428_v48 = vsub.f32 %v6427_v19, %v3440_v51  ;;  %v6446_v27 = vld [vmem:[#allocation29_spill] sm:$0xff] }
  0xa0   :  { %6399 = vst [vmem:[#allocation103_spill] sm:$0xff] %v3607_v12  ;;  %6402 = vst [vmem:[#allocation33_spill] sm:$0xff] %v3611_v33  ;;  %v1042_v54 = vmul.f32 %v2369_v56, %v6426_v57  ;;  %v6430_v22 = vsub.f32 %v6429_v34, %v3440_v51  ;;  %v6432_v4 = vsub.f32 %v6431_v40, %v3440_v51 }
  0xa1   :  { %6404 = vst [vmem:[#allocation3_spill] sm:$0xff] %v3615_v14  ;;  %6406 = vst [vmem:[#allocation34_spill] sm:$0xff] %v3619_v9  ;;  %v1044_v17 = vmul.f32 %v2369_v56, %v6428_v48  ;;  %v6434_v62 = vsub.f32 %v6433_v3, %v3440_v51  ;;  %v6436_v36 = vsub.f32 %v6435_v37, %v3440_v51 }
  0xa2   :  { %6408 = vst [vmem:[#allocation7_spill] sm:$0xff] %v3623_v39  ;;  %6410 = vst [vmem:[#allocation8_spill] sm:$0xff] %v3627_v21  ;;  %v1046_v16 = vmul.f32 %v2369_v56, %v6430_v22  ;;  %v1048_v55 = vmul.f32 %v2369_v56, %v6432_v4  ;;  %v6438_v19 = vsub.f32 %v6437_v6, %v3440_v51 }
  0xa3   :  { %6412 = vst [vmem:[#allocation9_spill] sm:$0xff] %v3631_v15  ;;  %6414 = vst [vmem:[#allocation14_spill] sm:$0xff] %v3635_v20  ;;  %v1050_v59 = vmul.f32 %v2369_v56, %v6434_v62  ;;  %v1052_v57 = vmul.f32 %v2369_v56, %v6436_v36  ;;  %v6440_v34 = vsub.f32 %v6439_v41, %v3440_v51 }
  0xa4   :  { %6416 = vst [vmem:[#allocation15_spill] sm:$0xff] %v3639_v28  ;;  %6418 = vst [vmem:[#allocation16_spill] sm:$0xff] %v3643_v5  ;;  %v1054_v48 = vmul.f32 %v2369_v56, %v6438_v19  ;;  %v6442_v40 = vsub.f32 %v6441_v50, %v3440_v51  ;;  %v6443_v3 = vsub.f32 %v6349_v45, %v3440_v51 }
  0xa5   :  { %6423 = vst [vmem:[#allocation45_spill] sm:$0xff] %v3656_v10  ;;  %v1056_v22 = vmul.f32 %v2369_v56, %v6440_v34  ;;  %v6444_v37 = vsub.f32 %v6350_v25, %v3440_v51  ;;  %v6445_v6 = vsub.f32 %v6351_v1, %v3440_v51  ;;  %v1077_v43 = vmul.f32 %v6446_v27, %v1034_v30 }
  0xa6   :  { %v1058_v4 = vmul.f32 %v2369_v56, %v6442_v40  ;;  %v1060_v62 = vmul.f32 %v2369_v56, %v6443_v3  ;;  %v1079_v41 = vmul.f32 %v6446_v27, %v1036_v60  ;;  %v1081_v34 = vmul.f32 %v6446_v27, %v1038_v32 }
  0xa7   :  { %v1062_v36 = vmul.f32 %v2369_v56, %v6444_v37  ;;  %v1064_v19 = vmul.f32 %v2369_v56, %v6445_v6  ;;  %v1083_v50 = vmul.f32 %v6446_v27, %v1040_v53  ;;  %v1085_v40 = vmul.f32 %v6446_v27, %v1042_v54  ;;  %v6447_v54 = vld [vmem:[#allocation30_spill] sm:$0xff] }
  0xa8   :  { %v1087_v45 = vmul.f32 %v6446_v27, %v1044_v17  ;;  %v1089_v3 = vmul.f32 %v6446_v27, %v1046_v16  ;;  %v1091_v25 = vmul.f32 %v6446_v27, %v1048_v55  ;;  %v1093_v37 = vmul.f32 %v6446_v27, %v1050_v59 }
  0xa9   :  { %v1095_v51 = vmul.f32 %v6446_v27, %v1052_v57  ;;  %v1097_v1 = vmul.f32 %v6446_v27, %v1054_v48  ;;  %v1099_v56 = vmul.f32 %v6446_v27, %v1056_v22  ;;  %v1101_v32 = vmul.f32 %v6446_v27, %v1058_v4 }
  0xaa   :  { %v1103_v53 = vmul.f32 %v6446_v27, %v1060_v62  ;;  %v1105_v60 = vmul.f32 %v6446_v27, %v1062_v36  ;;  %v1107_v30 = vmul.f32 %v6446_v27, %v1064_v19  ;;  %v1120_v17 = vadd.f32 %v6447_v54, %v1077_v43 }
  0xab   :  { %v1122_v55 = vadd.f32 %v6447_v54, %v1079_v41  ;;  %v1124_v16 = vadd.f32 %v6447_v54, %v1081_v34  ;;  %v1126_v59 = vadd.f32 %v6447_v54, %v1083_v50  ;;  %v1128_v57 = vadd.f32 %v6447_v54, %v1085_v40 }
  0xac   :  { %v1130_v48 = vadd.f32 %v6447_v54, %v1087_v45  ;;  %v1132_v22 = vadd.f32 %v6447_v54, %v1089_v3  ;;  %v1134_v4 = vadd.f32 %v6447_v54, %v1091_v25  ;;  %v1136_v62 = vadd.f32 %v6447_v54, %v1093_v37 }
  0xad   :  { %v1138_v27 = vadd.f32 %v6447_v54, %v1095_v51  ;;  %v1140_v43 = vadd.f32 %v6447_v54, %v1097_v1  ;;  %v1142_v36 = vadd.f32 %v6447_v54, %v1099_v56  ;;  %v1144_v6 = vadd.f32 %v6447_v54, %v1101_v32 }
  0xae   :  { %v1146_v19 = vadd.f32 %v6447_v54, %v1103_v53  ;;  %v1148_v41 = vadd.f32 %v6447_v54, %v1105_v60  ;;  %v1150_v34 = vadd.f32 %v6447_v54, %v1107_v30  ;;  %v3729_v50 = vmax.f32 %v1120_v17, 0.0 }
  0xaf   :  { %v3731_v40 = vmax.f32 %v1122_v55, 0.0  ;;  %v3733_v45 = vmax.f32 %v1124_v16, 0.0  ;;  %v3735_v3 = vmax.f32 %v1126_v59, 0.0  ;;  %v3737_v25 = vmax.f32 %v1128_v57, 0.0 }
  0xb0   :  { %6448 = vst [vmem:[#allocation26_spill] sm:$0xff] %v3729_v50  ;;  %v3739_v37 = vmax.f32 %v1130_v48, 0.0  ;;  %v3741_v51 = vmax.f32 %v1132_v22, 0.0  ;;  %v3743_v1 = vmax.f32 %v1134_v4, 0.0  ;;  %v3745_v56 = vmax.f32 %v1136_v62, 0.0 }
  0xb1   :  { %6449 = vst [vmem:[#allocation41_spill] sm:$0xff] %v3731_v40  ;;  %6450 = vst [vmem:[#allocation20_spill] sm:$0xff] %v3733_v45  ;;  %v3747_v32 = vmax.f32 %v1138_v27, 0.0  ;;  %v3749_v53 = vmax.f32 %v1140_v43, 0.0  ;;  %v3751_v60 = vmax.f32 %v1142_v36, 0.0  ;;  %v3753_v30 = vmax.f32 %v1144_v6, 0.0 }
  0xb2   :  { %6451 = vst [vmem:[#allocation19_spill] sm:$0xff] %v3735_v3  ;;  %6452 = vst [vmem:[#allocation21_spill] sm:$0xff] %v3737_v25  ;;  %v3755_v54 = vmax.f32 %v1146_v19, 0.0  ;;  %v3757_v17 = vmax.f32 %v1148_v41, 0.0  ;;  %v3759_v55 = vmax.f32 %v1150_v34, 0.0  ;;  %v1216_v16 = vrot.slane %v3729_v50, 7 }
  0xb3   :  { %6453 = vst [vmem:[#allocation22_spill] sm:$0xff] %v3739_v37  ;;  %6454 = vst [vmem:[#allocation23_spill] sm:$0xff] %v3741_v51  ;;  %v1218_v59 = vrot.slane %v3731_v40, 7  ;;  %v1220_v57 = vrot.slane %v3733_v45, 7  ;;  %v1222_v48 = vrot.slane %v3735_v3, 7  ;;  %v1224_v22 = vrot.slane %v3737_v25, 7 }
  0xb4   :  { %6455 = vst [vmem:[#allocation24_spill] sm:$0xff] %v3743_v1  ;;  %6456 = vst [vmem:[#allocation25_spill] sm:$0xff] %v3745_v56  ;;  %v1226_v4 = vrot.slane %v3739_v37, 7  ;;  %v1228_v62 = vrot.slane %v3741_v51, 7  ;;  %v1230_v27 = vrot.slane %v3743_v1, 7  ;;  %v1232_v43 = vrot.slane %v3745_v56, 7 }
  0xb5   :  { %6457 = vst [vmem:[#allocation29_spill] sm:$0xff] %v3747_v32  ;;  %6458 = vst [vmem:[#allocation30_spill] sm:$0xff] %v3749_v53  ;;  %v1234_v36 = vrot.slane %v3747_v32, 7  ;;  %v1236_v6 = vrot.slane %v3749_v53, 7  ;;  %v1238_v19 = vrot.slane %v3751_v60, 7  ;;  %v1240_v41 = vrot.slane %v3753_v30, 7 }
  0xb6   :  { %6459 = vst [vmem:[#allocation104_spill] sm:$0xff] %v3751_v60  ;;  %6460 = vst [vmem:[#allocation105_spill] sm:$0xff] %v3753_v30  ;;  %v1242_v34 = vrot.slane %v3755_v54, 7  ;;  %v1244_v7 = vrot.slane %v3757_v17, 7  ;;  %v1246_v11 = vrot.slane %v3759_v55, 7  ;;  %v3778_v58 = vsel %vm166_vm0, 0.0, %v1216_v16 }
  0xb7   :  { %6461 = vst [vmem:[#allocation106_spill] sm:$0xff] %v3755_v54  ;;  %6462 = vst [vmem:[#allocation107_spill] sm:$0xff] %v3757_v17  ;;  %v3781_v8 = vsel %vm166_vm0, 0.0, %v1218_v59  ;;  %v3784_v46 = vsel %vm166_vm0, 0.0, %v1220_v57  ;;  %v3787_v63 = vsel %vm166_vm0, 0.0, %v1222_v48  ;;  %v3790_v23 = vsel %vm166_vm0, 0.0, %v1224_v22 }
  0xb8   :  { %6463 = vst [vmem:[#allocation108_spill] sm:$0xff] %v3759_v55  ;;  %6464 = vst [vmem:[#allocation109_spill] sm:$0xff] %v3781_v8  ;;  %v3793_v12 = vsel %vm166_vm0, 0.0, %v1226_v4  ;;  %v3796_v44 = vsel %vm166_vm0, 0.0, %v1228_v62  ;;  %v3799_v16 = vsel %vm166_vm0, 0.0, %v1230_v27  ;;  %v3802_v59 = vsel %vm166_vm0, 0.0, %v1232_v43 }
  0xb9   :  { %6465 = vst [vmem:[#allocation110_spill] sm:$0xff] %v3784_v46  ;;  %6466 = vst [vmem:[#allocation111_spill] sm:$0xff] %v3787_v63  ;;  %v3805_v57 = vsel %vm166_vm0, 0.0, %v1234_v36  ;;  %v3808_v48 = vsel %vm166_vm0, 0.0, %v1236_v6  ;;  %v3811_v22 = vsel %vm166_vm0, 0.0, %v1238_v19  ;;  %v3814_v4 = vsel %vm166_vm0, 0.0, %v1240_v41 }
  0xba   :  { %6467 = vst [vmem:[#allocation112_spill] sm:$0xff] %v3790_v23  ;;  %6468 = vst [vmem:[#allocation113_spill] sm:$0xff] %v3793_v12  ;;  %v3817_v62 = vsel %vm166_vm0, 0.0, %v1242_v34  ;;  %v3820_v27 = vsel %vm166_vm0, 0.0, %v1244_v7  ;;  %v3823_v43 = vsel %vm166_vm0, 0.0, %v1246_v11  ;;  %v1312_v36 = vrot.slane %v3729_v50, 1 }
  0xbb   :  { %6469 = vst [vmem:[#allocation114_spill] sm:$0xff] %v3796_v44  ;;  %6470 = vst [vmem:[#allocation115_spill] sm:$0xff] %v3799_v16  ;;  %v1314_v6 = vrot.slane %v3731_v40, 1  ;;  %v1316_v61 = vrot.slane %v3733_v45, 1  ;;  %v1318_v19 = vrot.slane %v3735_v3, 1  ;;  %v1320_v41 = vrot.slane %v3737_v25, 1 }
  0xbc   :  { %6471 = vst [vmem:[#allocation116_spill] sm:$0xff] %v3802_v59  ;;  %6472 = vst [vmem:[#allocation117_spill] sm:$0xff] %v3805_v57  ;;  %v1322_v26 = vrot.slane %v3739_v37, 1  ;;  %v1324_v34 = vrot.slane %v3741_v51, 1  ;;  %v1326_v7 = vrot.slane %v3743_v1, 1  ;;  %v1328_v13 = vrot.slane %v3745_v56, 1 }
  0xbd   :  { %6473 = vst [vmem:[#allocation118_spill] sm:$0xff] %v3808_v48  ;;  %6474 = vst [vmem:[#allocation119_spill] sm:$0xff] %v3811_v22  ;;  %v1330_v11 = vrot.slane %v3747_v32, 1  ;;  %v1332_v47 = vrot.slane %v3749_v53, 1  ;;  %v1334_v10 = vrot.slane %v3751_v60, 1  ;;  %v1336_v0 = vrot.slane %v3753_v30, 1 }
  0xbe   :  { %6475 = vst [vmem:[#allocation120_spill] sm:$0xff] %v3814_v4  ;;  %6476 = vst [vmem:[#allocation121_spill] sm:$0xff] %v3817_v62  ;;  %v1338_v5 = vrot.slane %v3755_v54, 1  ;;  %v1340_v18 = vrot.slane %v3757_v17, 1  ;;  %v1342_v28 = vrot.slane %v3759_v55, 1  ;;  %v3842_v2 = vsel %vm263_vm1, %v1312_v36, 0.0 }
  0xbf   :  { %6477 = vst [vmem:[#allocation122_spill] sm:$0xff] %v3820_v27  ;;  %6478 = vst [vmem:[#allocation123_spill] sm:$0xff] %v3823_v43  ;;  %v3845_v20 = vsel %vm263_vm1, %v1314_v6, 0.0  ;;  %v3848_v49 = vsel %vm263_vm1, %v1316_v61, 0.0  ;;  %v3851_v15 = vsel %vm263_vm1, %v1318_v19, 0.0  ;;  %v3854_v35 = vsel %vm263_vm1, %v1320_v41, 0.0 }
  0xc0   :  { %v3857_v21 = vsel %vm263_vm1, %v1322_v26, 0.0  ;;  %v3860_v52 = vsel %vm263_vm1, %v1324_v34, 0.0  ;;  %v3863_v36 = vsel %vm263_vm1, %v1326_v7, 0.0  ;;  %v3866_v6 = vsel %vm263_vm1, %v1328_v13, 0.0 }
  0xc1   :  { %6479 = vst [vmem:[#allocation124_spill] sm:$0xff] %v3863_v36  ;;  %v3869_v61 = vsel %vm263_vm1, %v1330_v11, 0.0  ;;  %v3872_v19 = vsel %vm263_vm1, %v1332_v47, 0.0  ;;  %v3875_v41 = vsel %vm263_vm1, %v1334_v10, 0.0  ;;  %v3878_v26 = vsel %vm263_vm1, %v1336_v0, 0.0  ;;  %v6483_v11 = vld [vmem:[#allocation31_spill] sm:$0xff] }
  0xc2   :  { %v3881_v34 = vsel %vm263_vm1, %v1338_v5, 0.0  ;;  %v3884_v7 = vsel %vm263_vm1, %v1340_v18, 0.0  ;;  %v3887_v13 = vsel %vm263_vm1, %v1342_v28, 0.0  ;;  %v1416_v39 = vmul.f32 %v6483_v11, %v3778_v58 }
  0xc3   :  { %6480 = vst [vmem:[#allocation125_spill] sm:$0xff] %v3881_v34  ;;  %6481 = vst [vmem:[#allocation126_spill] sm:$0xff] %v3884_v7  ;;  %v1418_v47 = vmul.f32 %v6483_v11, %v3781_v8  ;;  %v1420_v10 = vmul.f32 %v6483_v11, %v3784_v46  ;;  %v1422_v0 = vmul.f32 %v6483_v11, %v3787_v63 }
  0xc4   :  { %6482 = vst [vmem:[#allocation127_spill] sm:$0xff] %v3887_v13  ;;  %v1424_v5 = vmul.f32 %v6483_v11, %v3790_v23  ;;  %v1426_v18 = vmul.f32 %v6483_v11, %v3793_v12  ;;  %v1428_v28 = vmul.f32 %v6483_v11, %v3796_v44  ;;  %v1430_v38 = vmul.f32 %v6483_v11, %v3802_v59 }
  0xc5   :  { %v1432_v9 = vmul.f32 %v6483_v11, %v3805_v57  ;;  %v1434_v29 = vmul.f32 %v6483_v11, %v3808_v48  ;;  %v1436_v14 = vmul.f32 %v6483_v11, %v3811_v22  ;;  %v1438_v31 = vmul.f32 %v6483_v11, %v3814_v4 }
  0xc6   :  { %v1440_v33 = vmul.f32 %v6483_v11, %v3817_v62  ;;  %v1452_v42 = vmul.f32 %v6484_v24, %v3729_v50  ;;  %v1454_v13 = vmul.f32 %v6484_v24, %v3731_v40  ;;  %v1456_v36 = vmul.f32 %v6484_v24, %v3733_v45 }
  0xc7   :  { %v1458_v55 = vmul.f32 %v6484_v24, %v3735_v3  ;;  %v1460_v1 = vmul.f32 %v6484_v24, %v3737_v25  ;;  %v1462_v43 = vmul.f32 %v6484_v24, %v3739_v37  ;;  %v1464_v62 = vmul.f32 %v6484_v24, %v3741_v51 }
  0xc8   :  { %v1466_v50 = vmul.f32 %v6484_v24, %v3745_v56  ;;  %v1468_v40 = vmul.f32 %v6484_v24, %v3747_v32  ;;  %v1470_v45 = vmul.f32 %v6484_v24, %v3749_v53  ;;  %v1442_v3 = vmul.f32 %v6483_v11, %v3820_v27 }
  0xc9   :  { %v1472_v25 = vmul.f32 %v6484_v24, %v3751_v60  ;;  %v1474_v37 = vmul.f32 %v6484_v24, %v3753_v30  ;;  %v1476_v51 = vmul.f32 %v6484_v24, %v3755_v54  ;;  %v1478_v56 = vmul.f32 %v6484_v24, %v3757_v17  ;;  %v6485_v30 = vld [vmem:[#allocation4_spill] sm:$0xff] }
  0xca   :  { %v1480_v4 = vadd.f32 %v1452_v42, %v1416_v39  ;;  %v1482_v32 = vadd.f32 %v1454_v13, %v1418_v47  ;;  %v1484_v22 = vadd.f32 %v1456_v36, %v1420_v10  ;;  %v1486_v48 = vadd.f32 %v1458_v55, %v1422_v0  ;;  %v6505_v13 = vld [vmem:[#allocation115_spill] sm:$0xff]  ;;  %v6506_v47 = vld [vmem:[#allocation116_spill] sm:$0xff]  ;;  %v6507_v0 = vld [vmem:[#allocation117_spill] sm:$0xff] }
  0xcb   :  { %v1488_v53 = vadd.f32 %v1460_v1, %v1424_v5  ;;  %v1490_v57 = vadd.f32 %v1462_v43, %v1426_v18  ;;  %v1492_v59 = vadd.f32 %v1464_v62, %v1428_v28  ;;  %v1494_v11 = vadd.f32 %v1466_v50, %v1430_v38  ;;  %v6508_v18 = vld [vmem:[#allocation118_spill] sm:$0xff] }
  0xcc   :  { %v1496_v27 = vadd.f32 %v1468_v40, %v1432_v9  ;;  %v1498_v16 = vadd.f32 %v1470_v45, %v1434_v29  ;;  %v1500_v60 = vadd.f32 %v1472_v25, %v1436_v14  ;;  %v1502_v44 = vadd.f32 %v1474_v37, %v1438_v31 }
  0xcd   :  { %v1504_v12 = vadd.f32 %v1476_v51, %v1440_v33  ;;  %v1516_v23 = vmul.f32 %v6485_v30, %v3842_v2  ;;  %v1518_v54 = vmul.f32 %v6485_v30, %v3845_v20  ;;  %v1520_v39 = vmul.f32 %v6485_v30, %v3848_v49 }
  0xce   :  { %v1522_v42 = vmul.f32 %v6485_v30, %v3851_v15  ;;  %v1524_v24 = vmul.f32 %v6485_v30, %v3854_v35  ;;  %v1526_v9 = vmul.f32 %v6485_v30, %v3857_v21  ;;  %v1528_v14 = vmul.f32 %v6485_v30, %v3860_v52 }
  0xcf   :  { %v1530_v33 = vmul.f32 %v6485_v30, %v3866_v6  ;;  %v1532_v31 = vmul.f32 %v6485_v30, %v3869_v61  ;;  %v1534_v29 = vmul.f32 %v6485_v30, %v3872_v19  ;;  %v3965_v38 = vadd.f32 %v1478_v56, %v1442_v3 }
  0xd0   :  { %v1536_v50 = vmul.f32 %v6485_v30, %v3875_v41  ;;  %v1538_v40 = vmul.f32 %v6485_v30, %v3878_v26  ;;  %v1540_v45 = vmul.f32 %v6485_v30, %v3881_v34  ;;  %v3975_v25 = vmul.f32 %v6485_v30, %v3884_v7 }
  0xd1   :  { %6486 = vst [vmem:[#allocation31_spill] sm:$0xff] %v3965_v38  ;;  %v3977_v37 = vadd.f32 %v1516_v23, %v1480_v4  ;;  %v3979_v51 = vadd.f32 %v1518_v54, %v1482_v32  ;;  %v3981_v1 = vadd.f32 %v1520_v39, %v1484_v22  ;;  %v3983_v3 = vadd.f32 %v1522_v42, %v1486_v48  ;;  %v6501_v48 = vld [vmem:[#allocation5_spill] sm:$0xff]  ;;  %v6510_v42 = vld [vmem:[#allocation120_spill] sm:$0xff] }
  0xd2   :  { %6487 = vst [vmem:[#allocation32_spill] sm:$0xff] %v3975_v25  ;;  %v3985_v56 = vadd.f32 %v1524_v24, %v1488_v53  ;;  %v3987_v55 = vadd.f32 %v1526_v9, %v1490_v57  ;;  %v3989_v62 = vadd.f32 %v1528_v14, %v1492_v59  ;;  %v3991_v43 = vadd.f32 %v1530_v33, %v1494_v11  ;;  %v6503_v4 = vld [vmem:[#allocation113_spill] sm:$0xff]  ;;  %v6509_v11 = vld [vmem:[#allocation119_spill] sm:$0xff]  ;;  %v6512_v33 = vld [vmem:[#allocation122_spill] sm:$0xff] }
  0xd3   :  { %6488 = vst [vmem:[#allocation4_spill] sm:$0xff] %v3977_v37  ;;  %6489 = vst [vmem:[#allocation128_spill] sm:$0xff] %v3979_v51  ;;  %v3993_v36 = vadd.f32 %v1532_v31, %v1496_v27  ;;  %v3995_v30 = vadd.f32 %v1534_v29, %v1498_v16  ;;  %v3997_v23 = vadd.f32 %v1536_v50, %v1500_v60  ;;  %v6502_v16 = vld [vmem:[#allocation112_spill] sm:$0xff]  ;;  %v6511_v9 = vld [vmem:[#allocation121_spill] sm:$0xff] }
  0xd4   :  { %6490 = vst [vmem:[#allocation129_spill] sm:$0xff] %v3981_v1  ;;  %6491 = vst [vmem:[#allocation130_spill] sm:$0xff] %v3983_v3  ;;  %v3999_v32 = vadd.f32 %v1538_v40, %v1502_v44  ;;  %v4001_v54 = vadd.f32 %v1540_v45, %v1504_v12  ;;  %v1580_v53 = vmul.f32 %v6501_v48, %v3778_v58  ;;  %v6504_v12 = vld [vmem:[#allocation114_spill] sm:$0xff]  ;;  %v6513_v29 = vld [vmem:[#allocation123_spill] sm:$0xff] }
  0xd5   :  { %6492 = vst [vmem:[#allocation131_spill] sm:$0xff] %v3985_v56  ;;  %6493 = vst [vmem:[#allocation132_spill] sm:$0xff] %v3987_v55  ;;  %v1582_v57 = vmul.f32 %v6501_v48, %v3781_v8  ;;  %v1584_v59 = vmul.f32 %v6501_v48, %v3784_v46  ;;  %v1586_v22 = vmul.f32 %v6501_v48, %v3787_v63  ;;  %v6514_v40 = vld [vmem:[#allocation26_spill] sm:$0xff]  ;;  %v6521_v1 = vld [vmem:[#allocation23_spill] sm:$0xff] }
  0xd6   :  { %6494 = vst [vmem:[#allocation133_spill] sm:$0xff] %v3989_v62  ;;  %6495 = vst [vmem:[#allocation134_spill] sm:$0xff] %v3991_v43  ;;  %v1588_v60 = vmul.f32 %v6501_v48, %v6502_v16  ;;  %v1590_v44 = vmul.f32 %v6501_v48, %v6503_v4  ;;  %v1592_v27 = vmul.f32 %v6501_v48, %v6504_v12  ;;  %v6515_v45 = vld [vmem:[#allocation6_spill] sm:$0xff]  ;;  %v6519_v43 = vld [vmem:[#allocation21_spill] sm:$0xff] }
  0xd7   :  { %6496 = vst [vmem:[#allocation135_spill] sm:$0xff] %v3993_v36  ;;  %6497 = vst [vmem:[#allocation136_spill] sm:$0xff] %v3995_v30  ;;  %v1594_v58 = vmul.f32 %v6501_v48, %v6505_v13  ;;  %v1596_v10 = vmul.f32 %v6501_v48, %v6506_v47  ;;  %v1598_v5 = vmul.f32 %v6501_v48, %v6507_v0  ;;  %v6518_v30 = vld [vmem:[#allocation19_spill] sm:$0xff]  ;;  %v6520_v56 = vld [vmem:[#allocation22_spill] sm:$0xff] }
  0xd8   :  { %6498 = vst [vmem:[#allocation137_spill] sm:$0xff] %v3997_v23  ;;  %6499 = vst [vmem:[#allocation138_spill] sm:$0xff] %v3999_v32  ;;  %v1600_v28 = vmul.f32 %v6501_v48, %v6508_v18  ;;  %v1602_v39 = vmul.f32 %v6501_v48, %v6509_v11  ;;  %v1604_v24 = vmul.f32 %v6501_v48, %v6510_v42  ;;  %v6517_v32 = vld [vmem:[#allocation20_spill] sm:$0xff]  ;;  %v6523_v37 = vld [vmem:[#allocation25_spill] sm:$0xff] }
  0xd9   :  { %6500 = vst [vmem:[#allocation139_spill] sm:$0xff] %v4001_v54  ;;  %v1606_v14 = vmul.f32 %v6501_v48, %v6511_v9  ;;  %v1608_v31 = vmul.f32 %v6501_v48, %v6512_v33  ;;  %v1610_v50 = vmul.f32 %v6501_v48, %v6513_v29  ;;  %v1620_v47 = vmul.f32 %v6515_v45, %v6514_v40  ;;  %v6516_v54 = vld [vmem:[#allocation41_spill] sm:$0xff]  ;;  %v6522_v51 = vld [vmem:[#allocation24_spill] sm:$0xff]  ;;  %v6528_v9 = vld [vmem:[#allocation106_spill] sm:$0xff] }
  0xda   :  { %v1622_v62 = vmul.f32 %v6515_v45, %v6516_v54  ;;  %v1624_v23 = vmul.f32 %v6515_v45, %v6517_v32  ;;  %v1626_v36 = vmul.f32 %v6515_v45, %v6518_v30  ;;  %v1628_v55 = vmul.f32 %v6515_v45, %v6519_v43  ;;  %v6524_v38 = vld [vmem:[#allocation29_spill] sm:$0xff]  ;;  %v6525_v54 = vld [vmem:[#allocation30_spill] sm:$0xff]  ;;  %v6526_v29 = vld [vmem:[#allocation104_spill] sm:$0xff] }
  0xdb   :  { %v1630_v3 = vmul.f32 %v6515_v45, %v6520_v56  ;;  %v1632_v48 = vmul.f32 %v6515_v45, %v6521_v1  ;;  %v1634_v40 = vmul.f32 %v6515_v45, %v6522_v51  ;;  %v1636_v25 = vmul.f32 %v6515_v45, %v6523_v37  ;;  %v6527_v33 = vld [vmem:[#allocation105_spill] sm:$0xff]  ;;  %v6529_v42 = vld [vmem:[#allocation108_spill] sm:$0xff] }
  0xdc   :  { %v1638_v32 = vmul.f32 %v6515_v45, %v6524_v38  ;;  %v1640_v30 = vmul.f32 %v6515_v45, %v6525_v54  ;;  %v1642_v43 = vmul.f32 %v6515_v45, %v6526_v29  ;;  %v1644_v56 = vmul.f32 %v6515_v45, %v6527_v33 }
  0xdd   :  { %v1646_v1 = vmul.f32 %v6515_v45, %v6528_v9  ;;  %v1648_v51 = vmul.f32 %v6515_v45, %v3757_v17  ;;  %v1650_v37 = vmul.f32 %v6515_v45, %v6529_v42  ;;  %v1652_v11 = vadd.f32 %v1620_v47, %v1580_v53  ;;  %v6530_v17 = vld [vmem:[#allocation11_spill] sm:$0xff]  ;;  %v6532_v53 = vld [vmem:[#allocation125_spill] sm:$0xff]  ;;  %v6552_v45 = vld [vmem:[#allocation114_spill] sm:$0xff] }
  0xde   :  { %v1654_v38 = vadd.f32 %v1622_v62, %v1582_v57  ;;  %v1656_v18 = vadd.f32 %v1624_v23, %v1584_v59  ;;  %v1658_v0 = vadd.f32 %v1626_v36, %v1586_v22  ;;  %v1660_v54 = vadd.f32 %v1628_v55, %v1588_v60  ;;  %v6533_v59 = vld [vmem:[#allocation126_spill] sm:$0xff]  ;;  %v6534_v60 = vld [vmem:[#allocation127_spill] sm:$0xff] }
  0xdf   :  { %v1662_v13 = vadd.f32 %v1630_v3, %v1590_v44  ;;  %v1664_v12 = vadd.f32 %v1632_v48, %v1592_v27  ;;  %v1666_v29 = vadd.f32 %v1634_v40, %v1594_v58  ;;  %v1668_v4 = vadd.f32 %v1636_v25, %v1596_v10  ;;  %v6554_v48 = vld [vmem:[#allocation117_spill] sm:$0xff] }
  0xe0   :  { %v1670_v16 = vadd.f32 %v1638_v32, %v1598_v5  ;;  %v1672_v33 = vadd.f32 %v1640_v30, %v1600_v28  ;;  %v1674_v63 = vadd.f32 %v1642_v43, %v1602_v39  ;;  %v1676_v46 = vadd.f32 %v1644_v56, %v1604_v24  ;;  %v6531_v56 = vld [vmem:[#allocation124_spill] sm:$0xff] }
  0xe1   :  { %v1678_v9 = vadd.f32 %v1646_v1, %v1606_v14  ;;  %v1680_v8 = vadd.f32 %v1648_v51, %v1608_v31  ;;  %v1682_v7 = vadd.f32 %v1650_v37, %v1610_v50  ;;  %v1692_v34 = vmul.f32 %v6530_v17, %v3842_v2  ;;  %v6550_v50 = vld [vmem:[#allocation112_spill] sm:$0xff]  ;;  %v6555_v37 = vld [vmem:[#allocation118_spill] sm:$0xff] }
  0xe2   :  { %v1694_v62 = vmul.f32 %v6530_v17, %v3845_v20  ;;  %v1696_v55 = vmul.f32 %v6530_v17, %v3848_v49  ;;  %v1698_v3 = vmul.f32 %v6530_v17, %v3851_v15  ;;  %v1700_v25 = vmul.f32 %v6530_v17, %v3854_v35 }
  0xe3   :  { %v1702_v1 = vmul.f32 %v6530_v17, %v3857_v21  ;;  %v1704_v51 = vmul.f32 %v6530_v17, %v3860_v52  ;;  %v1706_v2 = vmul.f32 %v6530_v17, %v6531_v56  ;;  %v1708_v43 = vmul.f32 %v6530_v17, %v3866_v6 }
  0xe4   :  { %v1710_v36 = vmul.f32 %v6530_v17, %v3869_v61  ;;  %v1712_v30 = vmul.f32 %v6530_v17, %v3872_v19  ;;  %v1714_v23 = vmul.f32 %v6530_v17, %v3875_v41  ;;  %v1716_v32 = vmul.f32 %v6530_v17, %v3878_v26 }
  0xe5   :  { %v1718_v57 = vmul.f32 %v6530_v17, %v6532_v53  ;;  %v1720_v22 = vmul.f32 %v6530_v17, %v6533_v59  ;;  %v1722_v6 = vmul.f32 %v6530_v17, %v6534_v60  ;;  %v4099_v44 = vadd.f32 %v1692_v34, %v1652_v11 }
  0xe6   :  { %v4101_v27 = vadd.f32 %v1694_v62, %v1654_v38  ;;  %v4103_v58 = vadd.f32 %v1696_v55, %v1656_v18  ;;  %v4105_v10 = vadd.f32 %v1698_v3, %v1658_v0  ;;  %v4107_v5 = vadd.f32 %v1700_v25, %v1660_v54  ;;  %v6547_v18 = vld [vmem:[#allocation12_spill] sm:$0xff]  ;;  %v6556_v55 = vld [vmem:[#allocation119_spill] sm:$0xff] }
  0xe7   :  { %6535 = vst [vmem:[#allocation5_spill] sm:$0xff] %v4099_v44  ;;  %v4109_v28 = vadd.f32 %v1702_v1, %v1662_v13  ;;  %v4111_v39 = vadd.f32 %v1704_v51, %v1664_v12  ;;  %v4113_v24 = vadd.f32 %v1706_v2, %v1666_v29  ;;  %v4115_v14 = vadd.f32 %v1708_v43, %v1668_v4  ;;  %v6546_v12 = vld [vmem:[#allocation109_spill] sm:$0xff]  ;;  %v6548_v29 = vld [vmem:[#allocation110_spill] sm:$0xff]  ;;  %v6557_v25 = vld [vmem:[#allocation120_spill] sm:$0xff] }
  0xe8   :  { %v4117_v31 = vadd.f32 %v1710_v36, %v1670_v16  ;;  %v4119_v17 = vadd.f32 %v1712_v30, %v1672_v33  ;;  %v4121_v34 = vadd.f32 %v1714_v23, %v1674_v63  ;;  %v4123_v38 = vadd.f32 %v1716_v32, %v1676_v46  ;;  %v6549_v16 = vld [vmem:[#allocation111_spill] sm:$0xff]  ;;  %v6551_v46 = vld [vmem:[#allocation113_spill] sm:$0xff]  ;;  %v6559_v43 = vld [vmem:[#allocation122_spill] sm:$0xff] }
  0xe9   :  { %6536 = vst [vmem:[#allocation116_spill] sm:$0xff] %v4111_v39  ;;  %6537 = vst [vmem:[#allocation26_spill] sm:$0xff] %v4113_v24  ;;  %v4125_v0 = vadd.f32 %v1718_v57, %v1678_v9  ;;  %v4127_v54 = vadd.f32 %v1720_v22, %v1680_v8  ;;  %v4129_v13 = vadd.f32 %v1722_v6, %v1682_v7  ;;  %v6553_v7 = vld [vmem:[#allocation115_spill] sm:$0xff]  ;;  %v6558_v51 = vld [vmem:[#allocation121_spill] sm:$0xff] }
  0xea   :  { %6538 = vst [vmem:[#allocation6_spill] sm:$0xff] %v4115_v14  ;;  %6539 = vst [vmem:[#allocation25_spill] sm:$0xff] %v4117_v31  ;;  %v1764_v11 = vmul.f32 %v6547_v18, %v6546_v12  ;;  %v1766_v4 = vmul.f32 %v6547_v18, %v6548_v29  ;;  %v1768_v33 = vmul.f32 %v6547_v18, %v6549_v16  ;;  %v6560_v30 = vld [vmem:[#allocation123_spill] sm:$0xff]  ;;  %v6561_v32 = vld [vmem:[#allocation41_spill] sm:$0xff] }
  0xeb   :  { %6540 = vst [vmem:[#allocation108_spill] sm:$0xff] %v4119_v17  ;;  %6541 = vst [vmem:[#allocation11_spill] sm:$0xff] %v4121_v34  ;;  %v1770_v63 = vmul.f32 %v6547_v18, %v6550_v50  ;;  %v1772_v9 = vmul.f32 %v6547_v18, %v6551_v46  ;;  %v1774_v8 = vmul.f32 %v6547_v18, %v6552_v45  ;;  %v6562_v57 = vld [vmem:[#allocation13_spill] sm:$0xff]  ;;  %v6563_v6 = vld [vmem:[#allocation20_spill] sm:$0xff] }
  0xec   :  { %6542 = vst [vmem:[#allocation124_spill] sm:$0xff] %v4123_v38  ;;  %6543 = vst [vmem:[#allocation125_spill] sm:$0xff] %v4125_v0  ;;  %v1776_v47 = vmul.f32 %v6547_v18, %v6553_v7  ;;  %v1778_v40 = vmul.f32 %v6547_v18, %v6554_v48  ;;  %v1780_v62 = vmul.f32 %v6547_v18, %v6555_v37  ;;  %v6564_v29 = vld [vmem:[#allocation19_spill] sm:$0xff]  ;;  %v6565_v50 = vld [vmem:[#allocation21_spill] sm:$0xff] }
  0xed   :  { %6544 = vst [vmem:[#allocation126_spill] sm:$0xff] %v4127_v54  ;;  %6545 = vst [vmem:[#allocation127_spill] sm:$0xff] %v4129_v13  ;;  %v1782_v3 = vmul.f32 %v6547_v18, %v6556_v55  ;;  %v1784_v1 = vmul.f32 %v6547_v18, %v6557_v25  ;;  %v1786_v2 = vmul.f32 %v6547_v18, %v6558_v51  ;;  %v6566_v45 = vld [vmem:[#allocation22_spill] sm:$0xff]  ;;  %v6567_v48 = vld [vmem:[#allocation23_spill] sm:$0xff] }
  0xee   :  { %v1788_v36 = vmul.f32 %v6547_v18, %v6559_v43  ;;  %v1790_v23 = vmul.f32 %v6547_v18, %v6560_v30  ;;  %v1800_v22 = vmul.f32 %v6562_v57, %v6561_v32  ;;  %v1802_v12 = vmul.f32 %v6562_v57, %v6563_v6  ;;  %v6568_v55 = vld [vmem:[#allocation24_spill] sm:$0xff]  ;;  %v6569_v25 = vld [vmem:[#allocation29_spill] sm:$0xff]  ;;  %v6570_v43 = vld [vmem:[#allocation30_spill] sm:$0xff] }
  0xef   :  { %v1804_v16 = vmul.f32 %v6562_v57, %v6564_v29  ;;  %v1806_v46 = vmul.f32 %v6562_v57, %v6565_v50  ;;  %v1808_v7 = vmul.f32 %v6562_v57, %v6566_v45  ;;  %v1810_v37 = vmul.f32 %v6562_v57, %v6567_v48  ;;  %v6571_v32 = vld [vmem:[#allocation104_spill] sm:$0xff]  ;;  %v6572_v29 = vld [vmem:[#allocation105_spill] sm:$0xff]  ;;  %v6573_v13 = vld [vmem:[#allocation106_spill] sm:$0xff] }
  0xf0   :  { %v1812_v18 = vmul.f32 %v6562_v57, %v6568_v55  ;;  %v1814_v51 = vmul.f32 %v6562_v57, %v6569_v25  ;;  %v1816_v30 = vmul.f32 %v6562_v57, %v6570_v43  ;;  %v1818_v6 = vmul.f32 %v6562_v57, %v6571_v32  ;;  %v6574_v14 = vld [vmem:[#allocation107_spill] sm:$0xff]  ;;  %v2366_v43 = vld [vmem:[%s5745_s4 + $0x10] ss:$0 sm:$0xff] }
  0xf1   :  { %v1820_v50 = vmul.f32 %v6562_v57, %v6572_v29  ;;  %v1822_v45 = vmul.f32 %v6562_v57, %v6573_v13  ;;  %v1824_v48 = vmul.f32 %v6562_v57, %v6574_v14  ;;  %v1826_v55 = vmul.f32 %v6562_v57, %v6529_v42 }
  0xf2   :  { %v1828_v44 = vadd.f32 %v1800_v22, %v1764_v11  ;;  %v1830_v25 = vadd.f32 %v1802_v12, %v1766_v4  ;;  %v1832_v54 = vadd.f32 %v1804_v16, %v1768_v33  ;;  %v1834_v32 = vadd.f32 %v1806_v46, %v1770_v63  ;;  %v6577_v16 = vld [vmem:[#allocation4_spill] sm:$0xff] }
  0xf3   :  { %v1836_v24 = vadd.f32 %v1808_v7, %v1772_v9  ;;  %v1838_v0 = vadd.f32 %v1810_v37, %v1774_v8  ;;  %v1840_v29 = vadd.f32 %v1812_v18, %v1776_v47  ;;  %v1842_v38 = vadd.f32 %v1814_v51, %v1778_v40  ;;  %v6578_v7 = vld [vmem:[#allocation128_spill] sm:$0xff]  ;;  %v6581_v37 = vld [vmem:[#allocation131_spill] sm:$0xff]  ;;  %v6584_v18 = vld [vmem:[#allocation134_spill] sm:$0xff] }
  0xf4   :  { %v1844_v34 = vadd.f32 %v1816_v30, %v1780_v62  ;;  %v1846_v13 = vadd.f32 %v1818_v6, %v1782_v3  ;;  %v1848_v17 = vadd.f32 %v1820_v50, %v1784_v1  ;;  %v1850_v31 = vadd.f32 %v1822_v45, %v1786_v2  ;;  %v6575_v62 = vld [vmem:[#allocation31_spill] sm:$0xff]  ;;  %v6585_v51 = vld [vmem:[#allocation25_spill] sm:$0xff]  ;;  %v6587_v6 = vld [vmem:[#allocation108_spill] sm:$0xff] }
  0xf5   :  { %v1852_v14 = vadd.f32 %v1824_v48, %v1788_v36  ;;  %v1854_v39 = vadd.f32 %v1826_v55, %v1790_v23  ;;  %v1864_v42 = vmul.f32 %v2366_v43, %v3845_v20  ;;  %v1866_v11 = vmul.f32 %v2366_v43, %v3848_v49  ;;  %v6589_v45 = vld [vmem:[#allocation11_spill] sm:$0xff]  ;;  %v6591_v55 = vld [vmem:[#allocation124_spill] sm:$0xff] }
  0xf6   :  { %v1868_v4 = vmul.f32 %v2366_v43, %v3851_v15  ;;  %v1870_v57 = vmul.f32 %v2366_v43, %v3854_v35  ;;  %v1872_v33 = vmul.f32 %v2366_v43, %v3857_v21  ;;  %v1874_v63 = vmul.f32 %v2366_v43, %v3860_v52  ;;  %v6576_v15 = vld [vmem:[#allocation32_spill] sm:$0xff] }
  0xf7   :  { %v1876_v9 = vmul.f32 %v2366_v43, %v6531_v56  ;;  %v1878_v8 = vmul.f32 %v2366_v43, %v3869_v61  ;;  %v1880_v47 = vmul.f32 %v2366_v43, %v3872_v19  ;;  %v1882_v40 = vmul.f32 %v2366_v43, %v3875_v41 }
  0xf8   :  { %v1884_v20 = vmul.f32 %v2366_v43, %v3878_v26  ;;  %v1886_v49 = vmul.f32 %v2366_v43, %v6532_v53  ;;  %v1570_v3 = vadd.f32 %v6576_v15, %v6575_v62  ;;  %v1888_v35 = vmul.f32 %v2366_v43, %v6533_v59 }
  0xf9   :  { %v1890_v21 = vmul.f32 %v2366_v43, %v6534_v60  ;;  %v1892_v52 = vadd.f32 %v1864_v42, %v1828_v44  ;;  %v1894_v1 = vadd.f32 %v1866_v11, %v1830_v25  ;;  %v1896_v56 = vadd.f32 %v1868_v4, %v1832_v54  ;;  %v6579_v60 = vld [vmem:[#allocation129_spill] sm:$0xff]  ;;  %v6580_v54 = vld [vmem:[#allocation130_spill] sm:$0xff] }
  0xfa   :  { %v1898_v2 = vadd.f32 %v1870_v57, %v1834_v32  ;;  %v1900_v61 = vadd.f32 %v1872_v33, %v1836_v24  ;;  %v1902_v36 = vadd.f32 %v1874_v63, %v1838_v0  ;;  %v1904_v19 = vadd.f32 %v1876_v9, %v1840_v29  ;;  %v6594_v32 = vld [vmem:[#allocation133_spill] sm:$0xff] }
  0xfb   :  { %v1906_v23 = vadd.f32 %v1878_v8, %v1842_v38  ;;  %v1908_v41 = vadd.f32 %v1880_v47, %v1844_v34  ;;  %v1910_v22 = vadd.f32 %v1882_v40, %v1846_v13  ;;  %v1912_v26 = vadd.f32 %v1884_v20, %v1848_v17  ;;  %v6582_v38 = vld [vmem:[#allocation132_spill] sm:$0xff]  ;;  %v6597_v13 = vld [vmem:[#allocation139_spill] sm:$0xff]  ;;  %v6599_v11 = vld [vmem:[#allocation5_spill] sm:$0xff] }
  0xfc   :  { %v1914_v12 = vadd.f32 %v1886_v49, %v1850_v31  ;;  %v1916_v53 = vadd.f32 %v1888_v35, %v1852_v14  ;;  %v1922_v46 = vadd.f32 %v4101_v27, %v6577_v16  ;;  %v1924_v59 = vadd.f32 %v4103_v58, %v6578_v7  ;;  %v6583_v17 = vld [vmem:[#allocation116_spill] sm:$0xff]  ;;  %v6586_v27 = vld [vmem:[#allocation135_spill] sm:$0xff]  ;;  %v6598_v14 = vld [vmem:[#allocation126_spill] sm:$0xff] }
  0xfd   :  { %v1926_v44 = vadd.f32 %v4105_v10, %v6579_v60  ;;  %v1928_v24 = vadd.f32 %v4107_v5, %v6580_v54  ;;  %v1918_v0 = vadd.f32 %v1890_v21, %v1854_v39  ;;  %v1930_v34 = vadd.f32 %v4109_v28, %v6581_v37  ;;  %v6588_v58 = vld [vmem:[#allocation136_spill] sm:$0xff]  ;;  %v6590_v10 = vld [vmem:[#allocation137_spill] sm:$0xff]  ;;  %v6592_v5 = vld [vmem:[#allocation138_spill] sm:$0xff] }
  0xfe   :  { %v1932_v31 = vadd.f32 %v6583_v17, %v6582_v38  ;;  %v1938_v30 = vadd.f32 %v6585_v51, %v6584_v18  ;;  %v1940_v50 = vadd.f32 %v6587_v6, %v6586_v27  ;;  %v1942_v48 = vadd.f32 %v6589_v45, %v6588_v58  ;;  %v6593_v39 = vld [vmem:[#allocation125_spill] sm:$0xff]  ;;  %v6595_v28 = vld [vmem:[#allocation26_spill] sm:$0xff]  ;;  %v4336_v18 = vld [vmem:[%s5741_s0 + $0xc8] sm:$0xff] }
  0xff   :  { %v1944_v25 = vadd.f32 %v6591_v55, %v6590_v10  ;;  %v1946_v43 = vadd.f32 %v6593_v39, %v6592_v5  ;;  %v4230_v29 = vadd.f32 %v6595_v28, %v6594_v32  ;;  %v1948_v42 = vadd.f32 %v6598_v14, %v6597_v13  ;;  %v6607_v40 = vld [vmem:[#allocation6_spill] sm:$0xff]  ;;  %v4329_v17 = vld [vmem:[%s5741_s0 + $0xb8] sm:$0xff]  ;;  %v4351_v58 = vld [vmem:[%s5741_s0 + $0xe8] sm:$0xff] }
 0x100   :  { %v4235_v4 = vadd.f32 %v1892_v52, %v6599_v11  ;;  %v4237_v57 = vadd.f32 %v1922_v46, %v1894_v1  ;;  %v4239_v33 = vadd.f32 %v1924_v59, %v1896_v56  ;;  %v4241_v63 = vadd.f32 %v1926_v44, %v1898_v2  ;;  %v4344_v6 = vld [vmem:[%s5741_s0 + $0xd8] sm:$0xff]  ;;  %v6620_v55 = vld [vmem:[#allocation62_spill] sm:$0xff]  ;;  %v6624_v28 = vld [vmem:[#allocation91_spill] sm:$0xff] }
 0x101   :  { %6596 = vst [vmem:[#allocation109_spill] sm:$0xff] %v4230_v29  ;;  %v4243_v9 = vadd.f32 %v1928_v24, %v1900_v61  ;;  %v4245_v8 = vadd.f32 %v1930_v34, %v1902_v36  ;;  %v4247_v47 = vadd.f32 %v1932_v31, %v1904_v19  ;;  %v4250_v20 = vadd.f32 %v1906_v23, %v6607_v40  ;;  %v4273_v61 = vld [vmem:[%s5741_s0 + $0xa8] sm:$0xff]  ;;  %v6615_v36 = vld [vmem:[#allocation18_spill] sm:$0xff]  ;;  %v6626_v40 = vld [vmem:[#allocation92_spill] sm:$0xff] }
 0x102   :  { %6600 = vst [vmem:[#allocation12_spill] sm:$0xff] %v4235_v4  ;;  %6601 = vst [vmem:[#allocation110_spill] sm:$0xff] %v4237_v57  ;;  %v4252_v49 = vadd.f32 %v1938_v30, %v1908_v41  ;;  %v4254_v62 = vadd.f32 %v1940_v50, %v1910_v22  ;;  %v4256_v15 = vadd.f32 %v1942_v48, %v1912_v26  ;;  %v6616_v23 = vld [vmem:[#allocation127_spill] sm:$0xff]  ;;  %v4358_v48 = vld [vmem:[%s5741_s0 + $0xf8] sm:$0xff] }
 0x103   :  { %6602 = vst [vmem:[#allocation111_spill] sm:$0xff] %v4239_v33  ;;  %6603 = vst [vmem:[#allocation112_spill] sm:$0xff] %v4241_v63  ;;  %v4258_v35 = vadd.f32 %v1944_v25, %v1914_v12  ;;  %v4260_v21 = vadd.f32 %v1946_v43, %v1916_v53  ;;  %v4262_v52 = vadd.f32 %v1948_v42, %v1918_v0  ;;  %v6621_v25 = vld [vmem:[#allocation33_spill] sm:$0xff]  ;;  %v6622_v39 = vld [vmem:[#allocation90_spill] sm:$0xff] }
 0x104   :  { %6604 = vst [vmem:[#allocation113_spill] sm:$0xff] %v4243_v9  ;;  %6605 = vst [vmem:[#allocation114_spill] sm:$0xff] %v4245_v8  ;;  %v1984_v1 = vadd.f32 %v4237_v57, %v4235_v4  ;;  %v2028_v56 = vmul.f32 %v4235_v4, %v4235_v4  ;;  %v2030_v2 = vmul.f32 %v4237_v57, %v4237_v57  ;;  %v6623_v43 = vld [vmem:[#allocation3_spill] sm:$0xff]  ;;  %v6625_v13 = vld [vmem:[#allocation34_spill] sm:$0xff] }
 0x105   :  { %6606 = vst [vmem:[#allocation115_spill] sm:$0xff] %v4247_v47  ;;  %6608 = vst [vmem:[#allocation117_spill] sm:$0xff] %v4250_v20  ;;  %v529_v19 = vmul.f32 %v4273_v61, %v6615_v36  ;;  %v4278_v41 = vadd.f32 %v6616_v23, %v1570_v3  ;;  %v2032_v22 = vmul.f32 %v4239_v33, %v4239_v33  ;;  %v6629_v23 = vld [vmem:[#allocation8_spill] sm:$0xff]  ;;  %v6643_v57 = vld [vmem:[#allocation101_spill] sm:$0xff] }
 0x106   :  { %6609 = vst [vmem:[#allocation118_spill] sm:$0xff] %v4252_v49  ;;  %6610 = vst [vmem:[#allocation119_spill] sm:$0xff] %v4254_v62  ;;  %v2034_v26 = vmul.f32 %v4241_v63, %v4241_v63  ;;  %v2036_v12 = vmul.f32 %v4243_v9, %v4243_v9  ;;  %v1985_v53 = vadd.f32 %v1984_v1, %v4239_v33  ;;  %v6627_v1 = vld [vmem:[#allocation7_spill] sm:$0xff] }
 0x107   :  { %6611 = vst [vmem:[#allocation120_spill] sm:$0xff] %v4256_v15  ;;  %6612 = vst [vmem:[#allocation121_spill] sm:$0xff] %v4258_v35  ;;  %v2038_v16 = vmul.f32 %v4245_v8, %v4245_v8  ;;  %v2040_v46 = vmul.f32 %v4247_v47, %v4247_v47  ;;  %v2042_v3 = vmul.f32 %v4230_v29, %v4230_v29 }
 0x108   :  { %6613 = vst [vmem:[#allocation122_spill] sm:$0xff] %v4260_v21  ;;  %6614 = vst [vmem:[#allocation123_spill] sm:$0xff] %v4262_v52  ;;  %v4295_v7 = vmul.f32 %v4250_v20, %v4250_v20  ;;  %v4299_v59 = vmul.f32 %v4252_v49, %v4252_v49  ;;  %v4303_v60 = vmul.f32 %v4254_v62, %v4254_v62 }
 0x109   :  { %6617 = vst [vmem:[#allocation41_spill] sm:$0xff] %v4278_v41  ;;  %v4307_v44 = vmul.f32 %v4256_v15, %v4256_v15  ;;  %v1986_v54 = vadd.f32 %v1985_v53, %v4241_v63  ;;  %v4312_v24 = vmul.f32 %v4258_v35, %v4258_v35  ;;  %v4316_v0 = vmul.f32 %v4260_v21, %v4260_v21  ;;  %v6630_v53 = vld [vmem:[#allocation94_spill] sm:$0xff]  ;;  %v6636_v63 = vld [vmem:[#allocation61_spill] sm:$0xff] }
 0x10a   :  { %v2060_v37 = vadd.f32 %v2030_v2, %v2028_v56  ;;  %v4320_v34 = vmul.f32 %v4262_v52, %v4262_v52  ;;  %v4324_v38 = vmul.f32 %v4278_v41, %v4278_v41  ;;  %v531_v31 = vmul.f32 %v4329_v17, %v6615_v36  ;;  %6619 = vst [vmem:[#allocation20_spill] sm:$0xff] %v4358_v48  ;;  %v6628_v2 = vld [vmem:[#allocation93_spill] sm:$0xff] }
 0x10b   :  { %v533_v51 = vmul.f32 %v4336_v18, %v6615_v36  ;;  %v1987_v30 = vadd.f32 %v1986_v54, %v4243_v9  ;;  %v535_v50 = vmul.f32 %v4344_v6, %v6615_v36  ;;  %v537_v45 = vmul.f32 %v4351_v58, %v6615_v36  ;;  %v6634_v9 = vld [vmem:[#allocation96_spill] sm:$0xff] }
 0x10c   :  { %6618 = vst [vmem:[#allocation13_spill] sm:$0xff] %v4324_v38  ;;  %v2061_v27 = vadd.f32 %v2060_v37, %v2032_v22  ;;  %v539_v10 = vmul.f32 %v4358_v48, %v6615_v36  ;;  %v541_v5 = vadd.f32 %v6621_v25, %v6620_v55  ;;  %v543_v32 = vadd.f32 %v6623_v43, %v6622_v39  ;;  %v6631_v36 = vld [vmem:[#allocation9_spill] sm:$0xff]  ;;  %v6632_v37 = vld [vmem:[#allocation95_spill] sm:$0xff]  ;;  %v6633_v55 = vld [vmem:[#allocation14_spill] sm:$0xff] }
 0x10d   :  { %v545_v14 = vadd.f32 %v6625_v13, %v6624_v28  ;;  %v1988_v42 = vadd.f32 %v1987_v30, %v4245_v8  ;;  %v547_v56 = vadd.f32 %v6627_v1, %v6626_v40  ;;  %v549_v22 = vadd.f32 %v6629_v23, %v6628_v2  ;;  %v6635_v39 = vld [vmem:[#allocation15_spill] sm:$0xff]  ;;  %v6637_v28 = vld [vmem:[#allocation16_spill] sm:$0xff]  ;;  %v6639_v40 = vld [vmem:[#allocation45_spill] sm:$0xff] }
 0x10e   :  { %v2062_v11 = vadd.f32 %v2061_v27, %v2034_v26  ;;  %v551_v54 = vadd.f32 %v6631_v36, %v6630_v53  ;;  %v553_v25 = vadd.f32 %v6633_v55, %v6632_v37  ;;  %v555_v43 = vadd.f32 %v6635_v39, %v6634_v9  ;;  %v6638_v27 = vld [vmem:[#allocation97_spill] sm:$0xff]  ;;  %v6640_v8 = vld [vmem:[#allocation98_spill] sm:$0xff]  ;;  %v6641_v23 = vld [vmem:[#allocation99_spill] sm:$0xff] }
 0x10f   :  { %v557_v13 = vadd.f32 %v6637_v28, %v6636_v63  ;;  %v1989_v26 = vadd.f32 %v1988_v42, %v4247_v47  ;;  %v559_v1 = vadd.f32 %v6639_v40, %v6638_v27  ;;  %v561_v2 = vadd.f32 %v529_v19, %v6640_v8  ;;  %v6642_v53 = vld [vmem:[#allocation100_spill] sm:$0xff]  ;;  %v6644_v55 = vld [vmem:[#allocation102_spill] sm:$0xff]  ;;  %v6645_v63 = vld [vmem:[#allocation103_spill] sm:$0xff] }
 0x110   :  { %v2063_v30 = vadd.f32 %v2062_v11, %v2036_v12  ;;  %v563_v33 = vadd.f32 %v531_v31, %v6641_v23  ;;  %v565_v36 = vadd.f32 %v533_v51, %v6642_v53  ;;  %v567_v37 = vadd.f32 %v535_v50, %v6643_v57  ;;  %v6646_v42 = vld [vmem:[#allocation10_spill] sm:$0xff]  ;;  %v6649_v8 = vld [vmem:[#allocation17_spill] sm:$0xff]  ;;  %v6650_v31 = vld [vmem:[#allocation71_spill] sm:$0xff] }
 0x111   :  { %v569_v4 = vadd.f32 %v537_v45, %v6644_v55  ;;  %v1990_v9 = vadd.f32 %v1989_v26, %v4230_v29  ;;  %v571_v28 = vadd.f32 %v539_v10, %v6645_v63  ;;  %v6647_v12 = vld [vmem:[#allocation58_spill] sm:$0xff]  ;;  %v6651_v57 = vld [vmem:[#allocation35_spill] sm:$0xff]  ;;  %v6652_v26 = vld [vmem:[#allocation72_spill] sm:$0xff] }
 0x112   :  { %v2064_v39 = vadd.f32 %v2063_v30, %v2038_v16  ;;  %v581_v11 = vmul.f32 %v6647_v12, %v6646_v42  ;;  %v6648_v47 = vld [vmem:[#allocation70_spill] sm:$0xff]  ;;  %v585_v19 = vmul.f32 %v6647_v12, %v6649_v8  ;;  %v587_v51 = vmul.f32 %v6647_v12, %v6650_v31  ;;  %v6654_v23 = vld [vmem:[#allocation73_spill] sm:$0xff]  ;;  %v6655_v55 = vld [vmem:[#allocation39_spill] sm:$0xff] }
 0x113   :  { %v583_v27 = vmul.f32 %v6647_v12, %v6648_v47  ;;  %v589_v50 = vmul.f32 %v6647_v12, %v6651_v57  ;;  %v1991_v45 = vadd.f32 %v1990_v9, %v4250_v20  ;;  %v591_v10 = vmul.f32 %v6647_v12, %v6652_v26  ;;  %v6653_v30 = vld [vmem:[#allocation38_spill] sm:$0xff]  ;;  %v6657_v31 = vld [vmem:[#allocation75_spill] sm:$0xff]  ;;  %v6659_v26 = vld [vmem:[#allocation77_spill] sm:$0xff] }
 0x114   :  { %v2065_v16 = vadd.f32 %v2064_v39, %v2040_v46  ;;  %v593_v40 = vmul.f32 %v6647_v12, %v6653_v30  ;;  %v595_v53 = vmul.f32 %v6647_v12, %v6654_v23  ;;  %v597_v63 = vmul.f32 %v6647_v12, %v6655_v55  ;;  %v6656_v42 = vld [vmem:[#allocation2_spill] sm:$0xff]  ;;  %v6658_v39 = vld [vmem:[#allocation76_spill] sm:$0xff]  ;;  %v6661_v47 = vld [vmem:[#allocation79_spill] sm:$0xff] }
 0x115   :  { %v599_v29 = vmul.f32 %v6647_v12, %v6656_v42  ;;  %v601_v57 = vmul.f32 %v6647_v12, %v6657_v31  ;;  %v1992_v46 = vadd.f32 %v1991_v45, %v4252_v49  ;;  %v603_v20 = vmul.f32 %v6647_v12, %v6658_v39  ;;  %v6660_v8 = vld [vmem:[#allocation78_spill] sm:$0xff]  ;;  %v6662_v48 = vld [vmem:[#allocation80_spill] sm:$0xff] }
 0x116   :  { %v2066_v9 = vadd.f32 %v2065_v16, %v2042_v3  ;;  %v605_v30 = vmul.f32 %v6647_v12, %v6659_v26  ;;  %v607_v23 = vmul.f32 %v6647_v12, %v6660_v8  ;;  %v609_v55 = vmul.f32 %v6647_v12, %v6661_v47 }
 0x117   :  { %v611_v42 = vmul.f32 %v6647_v12, %v6662_v48  ;;  %v4425_v38 = vadd.f32 %v581_v11, %v541_v5  ;;  %v1993_v45 = vadd.f32 %v1992_v46, %v4254_v62  ;;  %v4429_v16 = vadd.f32 %v583_v27, %v543_v32 }
 0x118   :  { %v2067_v3 = vadd.f32 %v2066_v9, %v4295_v7  ;;  %v4431_v49 = vadd.f32 %v585_v19, %v545_v14  ;;  %v4433_v26 = vadd.f32 %v587_v51, %v547_v56  ;;  %v4435_v39 = vadd.f32 %v589_v50, %v549_v22  ;;  %v6671_v51 = vld [vmem:[#allocation60_spill] sm:$0xff] }
 0x119   :  { %6663 = vst [vmem:[#allocation19_spill] sm:$0xff] %v4425_v38  ;;  %v4437_v8 = vadd.f32 %v591_v10, %v551_v54  ;;  %v4439_v47 = vadd.f32 %v593_v40, %v553_v25  ;;  %v1994_v12 = vadd.f32 %v1993_v45, %v4256_v15  ;;  %v4443_v11 = vadd.f32 %v595_v53, %v555_v43  ;;  %v6665_v43 = vld [vmem:[#allocation46_spill] sm:$0xff]  ;;  %v6672_v50 = vld [vmem:[#allocation52_spill] sm:$0xff] }
 0x11a   :  { %v2068_v5 = vadd.f32 %v2067_v3, %v4299_v59  ;;  %v4445_v46 = vadd.f32 %v597_v63, %v557_v13  ;;  %v4447_v7 = vadd.f32 %v599_v29, %v559_v1  ;;  %v4449_v32 = vadd.f32 %v601_v57, %v561_v2  ;;  %v6666_v13 = vld [vmem:[#allocation74_spill] sm:$0xff]  ;;  %v6667_v1 = vld [vmem:[#allocation59_spill] sm:$0xff] }
 0x11b   :  { %v4451_v14 = vadd.f32 %v603_v20, %v563_v33  ;;  %v4453_v56 = vadd.f32 %v605_v30, %v565_v36  ;;  %v1995_v22 = vadd.f32 %v1994_v12, %v4258_v35  ;;  %v4457_v25 = vadd.f32 %v607_v23, %v567_v37  ;;  %v6668_v33 = vld [vmem:[#allocation47_spill] sm:$0xff]  ;;  %v6674_v23 = vld [vmem:[#allocation64_spill] sm:$0xff] }
 0x11c   :  { %6664 = vst [vmem:[#allocation21_spill] sm:$0xff] %v4445_v46  ;;  %v2069_v54 = vadd.f32 %v2068_v5, %v4303_v60  ;;  %v4459_v27 = vadd.f32 %v609_v55, %v569_v4  ;;  %v4461_v59 = vadd.f32 %v611_v42, %v571_v28  ;;  %v653_v29 = vmul.f32 %v6666_v13, %v6665_v43  ;;  %v6669_v60 = vld [vmem:[#allocation48_spill] sm:$0xff]  ;;  %v6670_v4 = vld [vmem:[#allocation51_spill] sm:$0xff]  ;;  %v6675_v42 = vld [vmem:[#allocation65_spill] sm:$0xff] }
 0x11d   :  { %v655_v2 = vmul.f32 %v6666_v13, %v6667_v1  ;;  %v657_v20 = vmul.f32 %v6666_v13, %v6668_v33  ;;  %v1996_v36 = vadd.f32 %v1995_v22, %v4260_v21  ;;  %v659_v37 = vmul.f32 %v6666_v13, %v6669_v60  ;;  %v6673_v30 = vld [vmem:[#allocation63_spill] sm:$0xff]  ;;  %v6676_v55 = vld [vmem:[#allocation66_spill] sm:$0xff]  ;;  %v6678_v5 = vld [vmem:[#allocation68_spill] sm:$0xff] }
 0x11e   :  { %v2070_v19 = vadd.f32 %v2069_v54, %v4307_v44  ;;  %v661_v28 = vmul.f32 %v6666_v13, %v6670_v4  ;;  %v663_v57 = vmul.f32 %v6666_v13, %v6671_v51  ;;  %v665_v10 = vmul.f32 %v6666_v13, %v6672_v50  ;;  %v6677_v3 = vld [vmem:[#allocation67_spill] sm:$0xff]  ;;  %v6679_v54 = vld [vmem:[#allocation69_spill] sm:$0xff] }
 0x11f   :  { %v667_v40 = vmul.f32 %v6666_v13, %v6673_v30  ;;  %v669_v53 = vmul.f32 %v6666_v13, %v6674_v23  ;;  %v1997_v44 = vadd.f32 %v1996_v36, %v4262_v52  ;;  %v671_v9 = vmul.f32 %v6666_v13, %v6675_v42  ;;  %v2382_v1 = vld [vmem:[%s5741_s0 + $0x18] sm:$0xff]  ;;  %v2383_v60 = vld [vmem:[%s5741_s0 + $0x28] sm:$0xff] }
 0x120   :  { %v2071_v63 = vadd.f32 %v2070_v19, %v4312_v24  ;;  %v673_v45 = vmul.f32 %v6666_v13, %v6676_v55  ;;  %v675_v12 = vmul.f32 %v6666_v13, %v6677_v3  ;;  %v677_v22 = vmul.f32 %v6666_v13, %v6678_v5  ;;  %v6680_v24 = vld [vmem:[#allocation42_spill] sm:$0xff]  ;;  %v2385_v50 = vld [vmem:[%s5741_s0 + $0x48] sm:$0xff]  ;;  %v2388_v42 = vld [vmem:[%s5741_s0 + $0x78] sm:$0xff] }
 0x121   :  { %v679_v43 = vmul.f32 %v6666_v13, %v6679_v54  ;;  %v689_v33 = vmul.f32 %v2382_v1, %v6680_v24  ;;  %v1998_v36 = vadd.f32 %v1997_v44, %v4278_v41  ;;  %v691_v4 = vmul.f32 %v2383_v60, %v6680_v24  ;;  %v2384_v13 = vld [vmem:[%s5741_s0 + $0x38] sm:$0xff]  ;;  %v2387_v44 = vld [vmem:[%s5741_s0 + $0x68] sm:$0xff] }
 0x122   :  { %v2072_v19 = vadd.f32 %v2071_v63, %v4316_v0  ;;  %v693_v51 = vmul.f32 %v2384_v13, %v6680_v24  ;;  %v695_v30 = vmul.f32 %v2385_v50, %v6680_v24  ;;  %v2386_v0 = vld [vmem:[%s5741_s0 + $0x58] sm:$0xff]  ;;  %v699_v63 = vmul.f32 %v2387_v44, %v6680_v24 }
 0x123   :  { %v697_v23 = vmul.f32 %v2386_v0, %v6680_v24  ;;  %v701_v55 = vmul.f32 %v2388_v42, %v6680_v24  ;;  %v1999_v3 = vrot.slane %v1998_v36, 4  ;;  %v2389_v54 = vld [vmem:[%s5741_s0 + $0x98] sm:$0xff]  ;;  %v705_v60 = vmul.f32 %v4273_v61, %v6680_v24 }
 0x124   :  { %v2073_v5 = vadd.f32 %v2072_v19, %v4320_v34  ;;  %v703_v1 = vmul.f32 %v2389_v54, %v6680_v24  ;;  %v707_v13 = vmul.f32 %v4329_v17, %v6680_v24  ;;  %v709_v50 = vmul.f32 %v4336_v18, %v6680_v24  ;;  %v6681_v44 = vld [vmem:[#allocation13_spill] sm:$0xff]  ;;  %v6682_v54 = vld [vmem:[#allocation20_spill] sm:$0xff] }
 0x125   :  { %v711_v0 = vmul.f32 %v4344_v6, %v6680_v24  ;;  %v713_v34 = vmul.f32 %v4351_v58, %v6680_v24  ;;  %v2000_v19 = vadd.f32 %v1999_v3, %v1998_v36  ;;  %v715_v41 = vmul.f32 %v6682_v54, %v6680_v24  ;;  %v2365_v18 = vld [vmem:[%s5742_s1 + $0x18] ss:$0 sm:$0xff]  ;;  %v6686_v54 = vld [vmem:[#allocation35_spill] sm:$0xff] }
 0x126   :  { %v2074_v42 = vadd.f32 %v2073_v5, %v6681_v44  ;;  %v717_v52 = vadd.f32 %v689_v33, %v653_v29  ;;  %v719_v61 = vadd.f32 %v691_v4, %v655_v2  ;;  %v721_v21 = vadd.f32 %v693_v51, %v657_v20  ;;  %v6683_v20 = vld [vmem:[#allocation70_spill] sm:$0xff]  ;;  %v6685_v4 = vld [vmem:[#allocation71_spill] sm:$0xff] }
 0x127   :  { %v723_v35 = vadd.f32 %v695_v30, %v659_v37  ;;  %v725_v17 = vadd.f32 %v697_v23, %v661_v28  ;;  %v2001_v15 = vrot.slane %v2000_v19, 2  ;;  %v727_v6 = vadd.f32 %v699_v63, %v663_v57  ;;  %v6684_v28 = vld [vmem:[#allocation17_spill] sm:$0xff]  ;;  %v6691_v63 = vld [vmem:[#allocation76_spill] sm:$0xff] }
 0x128   :  { %v2075_v62 = vrot.slane %v2074_v42, 4  ;;  %v729_v46 = vadd.f32 %v701_v55, %v665_v10  ;;  %v731_v58 = vadd.f32 %v703_v1, %v667_v40  ;;  %v733_v36 = vadd.f32 %v705_v60, %v669_v53  ;;  %v6687_v10 = vld [vmem:[#allocation72_spill] sm:$0xff]  ;;  %v6688_v53 = vld [vmem:[#allocation38_spill] sm:$0xff]  ;;  %v6692_v1 = vld [vmem:[#allocation77_spill] sm:$0xff] }
 0x129   :  { %v735_v3 = vadd.f32 %v707_v13, %v671_v9  ;;  %v737_v5 = vadd.f32 %v709_v50, %v673_v45  ;;  %v2002_v44 = vadd.f32 %v2001_v15, %v2000_v19  ;;  %v739_v24 = vadd.f32 %v711_v0, %v675_v12  ;;  %v6689_v45 = vld [vmem:[#allocation73_spill] sm:$0xff]  ;;  %v6693_v13 = vld [vmem:[#allocation78_spill] sm:$0xff]  ;;  %v6694_v0 = vld [vmem:[#allocation79_spill] sm:$0xff] }
 0x12a   :  { %v2076_v38 = vadd.f32 %v2075_v62, %v2074_v42  ;;  %v741_v29 = vadd.f32 %v713_v34, %v677_v22  ;;  %v743_v2 = vadd.f32 %v715_v41, %v679_v43  ;;  %v753_v37 = vmul.f32 %v2365_v18, %v6683_v20  ;;  %v6690_v62 = vld [vmem:[#allocation2_spill] sm:$0xff] }
 0x12b   :  { %v755_v33 = vmul.f32 %v2365_v18, %v6684_v28  ;;  %v757_v51 = vmul.f32 %v2365_v18, %v6685_v4  ;;  %v2003_v30 = vrot.slane %v2002_v44, 1  ;;  %v759_v57 = vmul.f32 %v2365_v18, %v6686_v54 }
 0x12c   :  { %v2077_v23 = vrot.slane %v2076_v38, 2  ;;  %v761_v40 = vmul.f32 %v2365_v18, %v6687_v10  ;;  %v763_v9 = vmul.f32 %v2365_v18, %v6688_v53  ;;  %v765_v15 = vmul.f32 %v2365_v18, %v6689_v45  ;;  %v6696_v53 = vld [vmem:[#allocation53_spill] sm:$0xff]  ;;  %v6697_v45 = vld [vmem:[#allocation56_spill] sm:$0xff] }
 0x12d   :  { %v767_v12 = vmul.f32 %v2365_v18, %v6690_v62  ;;  %v769_v41 = vmul.f32 %v2365_v18, %v6657_v31  ;;  %v2004_v22 = vadd.f32 %v2003_v30, %v2002_v44  ;;  %v771_v55 = vmul.f32 %v2365_v18, %v6691_v63 }
 0x12e   :  { %v2078_v43 = vadd.f32 %v2077_v23, %v2076_v38  ;;  %v773_v60 = vmul.f32 %v2365_v18, %v6692_v1  ;;  %v775_v50 = vmul.f32 %v2365_v18, %v6693_v13  ;;  %v777_v34 = vmul.f32 %v2365_v18, %v6694_v0 }
 0x12f   :  { %v779_v19 = vmul.f32 %v2365_v18, %v6662_v48  ;;  %v781_v42 = vadd.f32 %v753_v37, %v717_v52  ;;  %v4560_v20 = vmul.f32 0.0078125, %v2004_v22  ;;  %v783_v4 = vadd.f32 %v755_v33, %v719_v61 }
 0x130   :  { %v2079_v28 = vrot.slane %v2078_v43, 1  ;;  %v785_v54 = vadd.f32 %v757_v51, %v721_v21  ;;  %v787_v10 = vadd.f32 %v759_v57, %v723_v35  ;;  %v789_v31 = vadd.f32 %v761_v40, %v725_v17  ;;  %v6698_v21 = vld [vmem:[#allocation27_spill] sm:$0xff]  ;;  %v6699_v17 = vld [vmem:[#allocation28_spill] sm:$0xff]  ;;  %v6701_v51 = vld [vmem:[#allocation57_spill] sm:$0xff] }
 0x131   :  { %6695 = vst [vmem:[#allocation22_spill] sm:$0xff] %v4560_v20  ;;  %v791_v44 = vadd.f32 %v763_v9, %v727_v6  ;;  %v793_v38 = vadd.f32 %v765_v15, %v729_v46  ;;  %v2104_v23 = vmul.f32 %v4560_v20, %v4560_v20  ;;  %v459_v62 = vadd.f32 %v6697_v45, %v6696_v53  ;;  %v6700_v6 = vld [vmem:[#allocation36_spill] sm:$0xff]  ;;  %v6706_v40 = vld [vmem:[#allocation85_spill] sm:$0xff]  ;;  %v6707_v9 = vld [vmem:[#allocation86_spill] sm:$0xff] }
 0x132   :  { %v2080_v30 = vadd.f32 %v2079_v28, %v2078_v43  ;;  %v795_v63 = vadd.f32 %v767_v12, %v731_v58  ;;  %v797_v1 = vadd.f32 %v769_v41, %v733_v36  ;;  %v799_v48 = vadd.f32 %v771_v55, %v735_v3  ;;  %v6702_v58 = vld [vmem:[#allocation81_spill] sm:$0xff]  ;;  %v6708_v15 = vld [vmem:[#allocation87_spill] sm:$0xff]  ;;  %v6709_v12 = vld [vmem:[#allocation88_spill] sm:$0xff] }
 0x133   :  { %v801_v52 = vadd.f32 %v773_v60, %v737_v5  ;;  %v803_v18 = vadd.f32 %v775_v50, %v739_v24  ;;  %v805_v22 = vadd.f32 %v777_v34, %v741_v29  ;;  %v807_v61 = vadd.f32 %v779_v19, %v743_v2  ;;  %v6703_v5 = vld [vmem:[#allocation82_spill] sm:$0xff]  ;;  %v6704_v29 = vld [vmem:[#allocation83_spill] sm:$0xff]  ;;  %v6710_v43 = vld [vmem:[#allocation89_spill] sm:$0xff] }
 0x134   :  { %v2102_v37 = vmul.f32 0.0078125, %v2080_v30  ;;  %v811_v35 = vadd.f32 %v4429_v16, %v6698_v21  ;;  %v813_v46 = vadd.f32 %v4431_v49, %v6699_v17  ;;  %v815_v33 = vadd.f32 %v4433_v26, %v6700_v6  ;;  %v6705_v16 = vld [vmem:[#allocation84_spill] sm:$0xff] }
 0x135   :  { %v817_v57 = vadd.f32 %v4435_v39, %v6701_v51  ;;  %v819_v36 = vadd.f32 %v4437_v8, %v6702_v58  ;;  %v821_v24 = vadd.f32 %v4439_v47, %v6703_v5  ;;  %v4580_v2 = vadd.f32 %v4443_v11, %v6704_v29 }
 0x136   :  { %v2106_v3 = vsub.f32 %v2102_v37, %v2104_v23  ;;  %v827_v49 = vadd.f32 %v4447_v7, %v6705_v16  ;;  %v829_v26 = vadd.f32 %v4449_v32, %v6706_v40  ;;  %v831_v39 = vadd.f32 %v4451_v14, %v6707_v9  ;;  %v6711_v7 = vld [vmem:[#allocation19_spill] sm:$0xff]  ;;  %v69_v37 = vld [vmem:[%s5747_s6] sm:$0x3] }
 0x137   :  { %v833_v8 = vadd.f32 %v4453_v56, %v6708_v15  ;;  %v835_v41 = vadd.f32 %v4457_v25, %v6709_v12  ;;  %v837_v11 = vadd.f32 %v4459_v27, %v6710_v43  ;;  %v4595_v55 = vadd.f32 %v4461_v59, %v459_v62  ;;  %v6712_v27 = vld [vmem:[#allocation21_spill] sm:$0xff]  ;;  %v68_v62 = vld [vmem:[%s5746_s5] sm:$0x3] }
 0x138   :  { %v2108_v47 = vmax.f32 %v2106_v3, 0.0  ;;  %v4598_v60 = vadd.f32 %v781_v42, %v6711_v7  ;;  %v4600_v32 = vadd.f32 %v811_v35, %v783_v4  ;;  %v4602_v13 = vadd.f32 %v813_v46, %v785_v54  ;;  %v2390_v9 = vld [vmem:[%s5741_s0] sm:$0xff] }
 0x139   :  { %v4604_v14 = vadd.f32 %v815_v33, %v787_v10  ;;  %v4606_v56 = vadd.f32 %v817_v57, %v789_v31  ;;  %v4608_v25 = vadd.f32 %v819_v36, %v791_v44  ;;  %v4610_v0 = vadd.f32 %v821_v24, %v793_v38 }
 0x13a   :  { %v2142_v50 = vadd.f32 1e-05, %v2108_v47  ;;  %v4613_v34 = vadd.f32 %v795_v63, %v6712_v27  ;;  %v4615_v59 = vadd.f32 %v827_v49, %v797_v1  ;;  %v4617_v19 = vadd.f32 %v829_v26, %v799_v48  ;;  %v6713_v1 = vld [vmem:[#allocation12_spill] sm:$0xff] }
 0x13b   :  { %v4619_v42 = vadd.f32 %v831_v39, %v801_v52  ;;  %v4621_v28 = vadd.f32 %v833_v8, %v803_v18  ;;  %v4623_v4 = vadd.f32 %v835_v41, %v805_v22  ;;  %v4625_v54 = vadd.f32 %v837_v11, %v807_v61  ;;  %v6714_v61 = vld [vmem:[#allocation37_spill] sm:$0xff] }
 0x13c   :  { %2370 = vrsqrt.f32 %v2142_v50  ;;  %v893_v10 = vadd.f32 %v4600_v32, %v4598_v60  ;;  %v917_v31 = vmul.f32 %v4598_v60, %v4598_v60  ;;  %v919_v44 = vmul.f32 %v4600_v32, %v4600_v32 }
 0x13d   :  { %v921_v30 = vmul.f32 %v4602_v13, %v4602_v13  ;;  %v923_v53 = vmul.f32 %v4604_v14, %v4604_v14  ;;  %v2110_v48 = vsub.f32 %v6713_v1, %v4560_v20  ;;  %v925_v52 = vmul.f32 %v4606_v56, %v4606_v56 }
 0x13e   :  { %v894_v38 = vadd.f32 %v893_v10, %v4602_v13  ;;  %v969_v45 = vadd.f32 %v919_v44, %v917_v31  ;;  %v4652_v21 = vrot.slane %v68_v62, %v6714_v61  ;;  %v927_v35 = vmul.f32 %v4608_v25, %v4608_v25 }
 0x13f   :  { %v4661_v51 = vrot.slane %v69_v37, %v6714_v61  ;;  %v929_v57 = vmul.f32 %v4610_v0, %v4610_v0  ;;  %v931_v5 = vmul.f32 %v4580_v2, %v4580_v2  ;;  %v933_v49 = vmul.f32 %v4613_v34, %v4613_v34 }
 0x140   :  { %v895_v23 = vadd.f32 %v894_v38, %v4604_v14  ;;  %v970_v18 = vadd.f32 %v969_v45, %v921_v30  ;;  %6715 = vst [vmem:[#allocation23_spill] sm:$0xff] %v4652_v21  ;;  %v935_v15 = vmul.f32 %v4615_v59, %v4615_v59  ;;  %v937_v47 = vmul.f32 %v4617_v19, %v4617_v19 }
 0x141   :  { %6717 = vst [vmem:[#allocation29_spill] sm:$0xff] %v4661_v51  ;;  %v939_v7 = vmul.f32 %v4619_v42, %v4619_v42  ;;  %v941_v10 = vmul.f32 %v4621_v28, %v4621_v28  ;;  %v943_v38 = vmul.f32 %v4623_v4, %v4623_v4 }
 0x142   :  { %v896_v63 = vadd.f32 %v895_v23, %v4606_v56  ;;  %v971_v17 = vadd.f32 %v970_v18, %v923_v53  ;;  %v945_v53 = vmul.f32 %v4625_v54, %v4625_v54 }
 0x144   :  { %v897_v22 = vadd.f32 %v896_v63, %v4608_v25  ;;  %v972_v58 = vadd.f32 %v971_v17, %v925_v52  ;;  %v947_v63 = vmul.f32 %v4595_v55, %v4595_v55 }
 0x146   :  { %v4656_v46 = vpop.eup %2370  ;;  %v898_v6 = vadd.f32 %v897_v22, %v4610_v0  ;;  %v973_v24 = vadd.f32 %v972_v58, %v927_v35 }
 0x147   :  { %6716 = vst [vmem:[#allocation24_spill] sm:$0xff] %v4656_v46  ;;  %v2146_v33 = vmul.f32 %v4656_v46, %v2110_v48 }
 0x148   :  { %v899_v36 = vadd.f32 %v898_v6, %v4580_v2  ;;  %v974_v40 = vadd.f32 %v973_v24, %v929_v57 }
 0x149   :  { %v2189_v3 = vmul.f32 %v4652_v21, %v2146_v33 }
 0x14a   :  { %v900_v29 = vadd.f32 %v899_v36, %v4613_v34  ;;  %v975_v8 = vadd.f32 %v974_v40, %v931_v5 }
 0x14b   :  { %v2232_v16 = vadd.f32 %v4661_v51, %v2189_v3 }
 0x14c   :  { %v901_v26 = vadd.f32 %v900_v29, %v4615_v59  ;;  %v976_v43 = vadd.f32 %v975_v8, %v933_v49 }
 0x14d   :  { %v2264_v39 = vadd.f32 %v2390_v9, %v2232_v16 }
 0x14e   :  { %v902_v12 = vadd.f32 %v901_v26, %v4617_v19  ;;  %v977_v50 = vadd.f32 %v976_v43, %v935_v15 }
 0x14f   :  { %v2296_v41 = vmax.f32 %v2264_v39, 0.0 }
 0x150   :  { %v903_v11 = vadd.f32 %v902_v12, %v4619_v42  ;;  %v978_v31 = vadd.f32 %v977_v50, %v937_v47  ;;  %v6720_v50 = vld [vmem:[#allocation44_spill] sm:$0xff] }
 0x151   :  { %2328 = vst [vmem:[%s5748_s7] sm:$0xff] %v2296_v41 }
 0x152   :  { %v904_v27 = vadd.f32 %v903_v11, %v4621_v28  ;;  %v979_v30 = vadd.f32 %v978_v31, %v939_v7  ;;  %v6719_v11 = vld [vmem:[#allocation43_spill] sm:$0xff]  ;;  %v6721_v31 = vld [vmem:[#allocation49_spill] sm:$0xff] }
 0x154   :  { %v905_v44 = vadd.f32 %v904_v27, %v4623_v4  ;;  %v980_v45 = vadd.f32 %v979_v30, %v941_v10 }
 0x156   :  { %v906_v23 = vadd.f32 %v905_v44, %v4625_v54  ;;  %v981_v1 = vadd.f32 %v980_v45, %v943_v38  ;;  %v6723_v38 = vld [vmem:[#allocation50_spill] sm:$0xff] }
 0x158   :  { %v907_v62 = vadd.f32 %v906_v23, %v4595_v55  ;;  %v982_v52 = vadd.f32 %v981_v1, %v945_v53  ;;  %v6725_v23 = vld [vmem:[#allocation54_spill] sm:$0xff] }
 0x15a   :  { %v908_v48 = vrot.slane %v907_v62, 4  ;;  %v983_v37 = vadd.f32 %v982_v52, %v947_v63 }
 0x15c   :  { %v909_v18 = vadd.f32 %v908_v48, %v907_v62  ;;  %v984_v35 = vrot.slane %v983_v37, 4 }
 0x15e   :  { %v910_v22 = vrot.slane %v909_v18, 2  ;;  %v985_v6 = vadd.f32 %v984_v35, %v983_v37 }
 0x160   :  { %v911_v17 = vadd.f32 %v910_v22, %v909_v18  ;;  %v986_v57 = vrot.slane %v985_v6, 2 }
 0x162   :  { %v912_v33 = vrot.slane %v911_v17, 1  ;;  %v987_v36 = vadd.f32 %v986_v57, %v985_v6 }
 0x164   :  { %v913_v58 = vadd.f32 %v912_v33, %v911_v17  ;;  %v988_v5 = vrot.slane %v987_v36, 1 }
 0x166   :  { %v915_v3 = vmul.f32 0.0078125, %v913_v58  ;;  %v989_v40 = vadd.f32 %v988_v5, %v987_v36 }
 0x168   :  { %v993_v24 = vmul.f32 %v915_v3, %v915_v3  ;;  %v999_v29 = vsub.f32 %v4598_v60, %v915_v3  ;;  %v1001_v16 = vsub.f32 %v4600_v32, %v915_v3  ;;  %v1003_v49 = vsub.f32 %v4602_v13, %v915_v3 }
 0x169   :  { %v1005_v26 = vsub.f32 %v4604_v14, %v915_v3  ;;  %v1007_v9 = vsub.f32 %v4606_v56, %v915_v3  ;;  %v1009_v39 = vsub.f32 %v4608_v25, %v915_v3  ;;  %v1011_v15 = vsub.f32 %v4610_v0, %v915_v3 }
 0x16a   :  { %v1013_v8 = vsub.f32 %v4580_v2, %v915_v3  ;;  %v1015_v12 = vsub.f32 %v4613_v34, %v915_v3  ;;  %v1017_v41 = vsub.f32 %v4615_v59, %v915_v3  ;;  %v991_v60 = vmul.f32 0.0078125, %v989_v40  ;;  %v63_v34 = vld [vmem:[%s5745_s4 + $0x8] sm:$0xff]  ;;  %v2391_v59 = vld [vmem:[%s5743_s2] sm:$0x3] }
 0x16b   :  { %v1019_v32 = vsub.f32 %v4617_v19, %v915_v3  ;;  %v1021_v13 = vsub.f32 %v4619_v42, %v915_v3  ;;  %v1023_v47 = vsub.f32 %v4621_v28, %v915_v3  ;;  %v1025_v14 = vsub.f32 %v4623_v4, %v915_v3  ;;  %v6718_v19 = vld [vmem:[#allocation40_spill] sm:$0xff]  ;;  %v2392_v28 = vld [vmem:[%s5744_s3] sm:$0x3] }
 0x16c   :  { %v1027_v56 = vsub.f32 %v4625_v54, %v915_v3  ;;  %v1029_v25 = vsub.f32 %v4595_v55, %v915_v3  ;;  %v995_v0 = vsub.f32 %v991_v60, %v993_v24  ;;  %v1074_v42 = vrot.slane %v2391_v59, %v6718_v19 }
 0x16d   :  { %v1117_v55 = vrot.slane %v2392_v28, %v6718_v19  ;;  %v4728_v4 = vrot.slane %v63_v34, %v6714_v61  ;;  %v4731_v54 = vrot.slane %v63_v34, %v6718_v19  ;;  %v4734_v7 = vrot.slane %v63_v34, %v6719_v11  ;;  %v6727_v61 = vld [vmem:[#allocation55_spill] sm:$0xff] }
 0x16e   :  { %v997_v43 = vmax.f32 %v995_v0, 0.0  ;;  %v4737_v27 = vrot.slane %v63_v34, %v6720_v50  ;;  %v4740_v44 = vrot.slane %v63_v34, %v6721_v31  ;;  %v4743_v30 = vrot.slane %v63_v34, %v6723_v38 }
 0x16f   :  { %v4746_v53 = vrot.slane %v63_v34, %v6725_v23  ;;  %v4749_v45 = vrot.slane %v63_v34, %v6727_v61 }
 0x170   :  { %v1031_v2 = vadd.f32 1e-05, %v997_v43  ;;  %6722 = vst [vmem:[#allocation30_spill] sm:$0xff] %v4740_v44  ;;  %6724 = vst [vmem:[#allocation104_spill] sm:$0xff] %v4743_v30 }
 0x171   :  { %6726 = vst [vmem:[#allocation105_spill] sm:$0xff] %v4746_v53  ;;  %6728 = vst [vmem:[#allocation106_spill] sm:$0xff] %v4749_v45 }
 0x172   :  { %2372 = vrsqrt.f32 %v1031_v2 }
 0x17c   :  { %v2373_v10 = vpop.eup %2372 }
 0x17d   :  { %v1035_v62 = vmul.f32 %v2373_v10, %v999_v29  ;;  %v1037_v63 = vmul.f32 %v2373_v10, %v1001_v16  ;;  %v1039_v1 = vmul.f32 %v2373_v10, %v1003_v49  ;;  %v1041_v48 = vmul.f32 %v2373_v10, %v1005_v26 }
 0x17e   :  { %v1043_v52 = vmul.f32 %v2373_v10, %v1007_v9  ;;  %v1045_v18 = vmul.f32 %v2373_v10, %v1009_v39  ;;  %v1047_v37 = vmul.f32 %v2373_v10, %v1011_v15  ;;  %v1049_v22 = vmul.f32 %v2373_v10, %v1013_v8 }
 0x17f   :  { %v1051_v35 = vmul.f32 %v2373_v10, %v1015_v12  ;;  %v1053_v17 = vmul.f32 %v2373_v10, %v1017_v41  ;;  %v1055_v6 = vmul.f32 %v2373_v10, %v1019_v32  ;;  %v1057_v33 = vmul.f32 %v2373_v10, %v1021_v13 }
 0x180   :  { %v1059_v57 = vmul.f32 %v2373_v10, %v1023_v47  ;;  %v1061_v58 = vmul.f32 %v2373_v10, %v1025_v14  ;;  %v1063_v36 = vmul.f32 %v2373_v10, %v1027_v56  ;;  %v1065_v3 = vmul.f32 %v2373_v10, %v1029_v25 }
 0x181   :  { %v1078_v5 = vmul.f32 %v1074_v42, %v1035_v62  ;;  %v1080_v24 = vmul.f32 %v1074_v42, %v1037_v63  ;;  %v1082_v40 = vmul.f32 %v1074_v42, %v1039_v1  ;;  %v1084_v60 = vmul.f32 %v1074_v42, %v1041_v48 }
 0x182   :  { %v1086_v29 = vmul.f32 %v1074_v42, %v1043_v52  ;;  %v1088_v16 = vmul.f32 %v1074_v42, %v1045_v18  ;;  %v1090_v49 = vmul.f32 %v1074_v42, %v1047_v37  ;;  %v1092_v26 = vmul.f32 %v1074_v42, %v1049_v22 }
 0x183   :  { %v1094_v9 = vmul.f32 %v1074_v42, %v1051_v35  ;;  %v1096_v39 = vmul.f32 %v1074_v42, %v1053_v17  ;;  %v1098_v15 = vmul.f32 %v1074_v42, %v1055_v6  ;;  %v1100_v8 = vmul.f32 %v1074_v42, %v1057_v33 }
 0x184   :  { %v1102_v12 = vmul.f32 %v1074_v42, %v1059_v57  ;;  %v1104_v41 = vmul.f32 %v1074_v42, %v1061_v58  ;;  %v1106_v32 = vmul.f32 %v1074_v42, %v1063_v36  ;;  %v1108_v13 = vmul.f32 %v1074_v42, %v1065_v3 }
 0x185   :  { %v1121_v47 = vadd.f32 %v1117_v55, %v1078_v5  ;;  %v1123_v14 = vadd.f32 %v1117_v55, %v1080_v24  ;;  %v1125_v56 = vadd.f32 %v1117_v55, %v1082_v40  ;;  %v1127_v25 = vadd.f32 %v1117_v55, %v1084_v60 }
 0x186   :  { %v1129_v0 = vadd.f32 %v1117_v55, %v1086_v29  ;;  %v1131_v43 = vadd.f32 %v1117_v55, %v1088_v16  ;;  %v1133_v2 = vadd.f32 %v1117_v55, %v1090_v49  ;;  %v1135_v34 = vadd.f32 %v1117_v55, %v1092_v26 }
 0x187   :  { %v1137_v59 = vadd.f32 %v1117_v55, %v1094_v9  ;;  %v1139_v28 = vadd.f32 %v1117_v55, %v1096_v39  ;;  %v1141_v11 = vadd.f32 %v1117_v55, %v1098_v15  ;;  %v1143_v50 = vadd.f32 %v1117_v55, %v1100_v8 }
 0x188   :  { %v1145_v10 = vadd.f32 %v1117_v55, %v1102_v12  ;;  %v1147_v31 = vadd.f32 %v1117_v55, %v1104_v41  ;;  %v1149_v38 = vadd.f32 %v1117_v55, %v1106_v32  ;;  %v1151_v23 = vadd.f32 %v1117_v55, %v1108_v13 }
 0x189   :  { %v4751_v61 = vmax.f32 %v1121_v47, 0.0  ;;  %v4753_v62 = vmax.f32 %v1123_v14, 0.0  ;;  %v4755_v42 = vmax.f32 %v1125_v56, 0.0  ;;  %v4757_v63 = vmax.f32 %v1127_v25, 0.0 }
 0x18a   :  { %v4759_v1 = vmax.f32 %v1129_v0, 0.0  ;;  %v4761_v48 = vmax.f32 %v1131_v43, 0.0  ;;  %v4763_v52 = vmax.f32 %v1133_v2, 0.0  ;;  %v4765_v18 = vmax.f32 %v1135_v34, 0.0 }
 0x18b   :  { %6729 = vst [vmem:[#allocation107_spill] sm:$0xff] %v4751_v61  ;;  %6730 = vst [vmem:[#allocation31_spill] sm:$0xff] %v4753_v62  ;;  %v4767_v37 = vmax.f32 %v1137_v59, 0.0  ;;  %v4769_v22 = vmax.f32 %v1139_v28, 0.0  ;;  %v4771_v55 = vmax.f32 %v1141_v11, 0.0  ;;  %v4773_v35 = vmax.f32 %v1143_v50, 0.0 }
 0x18c   :  { %6731 = vst [vmem:[#allocation32_spill] sm:$0xff] %v4755_v42  ;;  %6732 = vst [vmem:[#allocation4_spill] sm:$0xff] %v4757_v63  ;;  %v4775_v17 = vmax.f32 %v1145_v10, 0.0  ;;  %v4777_v6 = vmax.f32 %v1147_v31, 0.0  ;;  %v4779_v33 = vmax.f32 %v1149_v38, 0.0  ;;  %v4781_v57 = vmax.f32 %v1151_v23, 0.0 }
 0x18d   :  { %6733 = vst [vmem:[#allocation128_spill] sm:$0xff] %v4759_v1  ;;  %6734 = vst [vmem:[#allocation129_spill] sm:$0xff] %v4761_v48  ;;  %v1217_v58 = vrot.slane %v4751_v61, 7  ;;  %v1219_v36 = vrot.slane %v4753_v62, 7  ;;  %v1221_v3 = vrot.slane %v4755_v42, 7  ;;  %v1223_v5 = vrot.slane %v4757_v63, 7 }
 0x18e   :  { %6735 = vst [vmem:[#allocation130_spill] sm:$0xff] %v4763_v52  ;;  %6736 = vst [vmem:[#allocation131_spill] sm:$0xff] %v4765_v18  ;;  %v1225_v24 = vrot.slane %v4759_v1, 7  ;;  %v1227_v40 = vrot.slane %v4761_v48, 7  ;;  %v1229_v60 = vrot.slane %v4763_v52, 7  ;;  %v1231_v29 = vrot.slane %v4765_v18, 7 }
 0x18f   :  { %6737 = vst [vmem:[#allocation132_spill] sm:$0xff] %v4767_v37  ;;  %6738 = vst [vmem:[#allocation116_spill] sm:$0xff] %v4769_v22  ;;  %v1233_v16 = vrot.slane %v4767_v37, 7  ;;  %v1235_v49 = vrot.slane %v4769_v22, 7  ;;  %v1237_v26 = vrot.slane %v4771_v55, 7  ;;  %v1239_v9 = vrot.slane %v4773_v35, 7 }
 0x190   :  { %6739 = vst [vmem:[#allocation134_spill] sm:$0xff] %v4771_v55  ;;  %6740 = vst [vmem:[#allocation25_spill] sm:$0xff] %v4773_v35  ;;  %v1241_v39 = vrot.slane %v4775_v17, 7  ;;  %v1243_v15 = vrot.slane %v4777_v6, 7  ;;  %v1245_v8 = vrot.slane %v4779_v33, 7  ;;  %v1247_v12 = vrot.slane %v4781_v57, 7 }
 0x191   :  { %6741 = vst [vmem:[#allocation135_spill] sm:$0xff] %v4775_v17  ;;  %6742 = vst [vmem:[#allocation108_spill] sm:$0xff] %v4777_v6  ;;  %v4800_v41 = vsel %vm166_vm0, 0.0, %v1217_v58  ;;  %v4803_v32 = vsel %vm166_vm0, 0.0, %v1219_v36  ;;  %v4806_v13 = vsel %vm166_vm0, 0.0, %v1221_v3  ;;  %v4809_v47 = vsel %vm166_vm0, 0.0, %v1223_v5 }
 0x192   :  { %6743 = vst [vmem:[#allocation136_spill] sm:$0xff] %v4779_v33  ;;  %6744 = vst [vmem:[#allocation11_spill] sm:$0xff] %v4781_v57  ;;  %v4812_v14 = vsel %vm166_vm0, 0.0, %v1225_v24  ;;  %v4815_v56 = vsel %vm166_vm0, 0.0, %v1227_v40  ;;  %v4818_v25 = vsel %vm166_vm0, 0.0, %v1229_v60  ;;  %v4821_v0 = vsel %vm166_vm0, 0.0, %v1231_v29 }
 0x193   :  { %6745 = vst [vmem:[#allocation137_spill] sm:$0xff] %v4803_v32  ;;  %6746 = vst [vmem:[#allocation124_spill] sm:$0xff] %v4806_v13  ;;  %v4824_v43 = vsel %vm166_vm0, 0.0, %v1233_v16  ;;  %v4827_v2 = vsel %vm166_vm0, 0.0, %v1235_v49  ;;  %v4830_v34 = vsel %vm166_vm0, 0.0, %v1237_v26  ;;  %v4833_v59 = vsel %vm166_vm0, 0.0, %v1239_v9 }
 0x194   :  { %6747 = vst [vmem:[#allocation138_spill] sm:$0xff] %v4809_v47  ;;  %6748 = vst [vmem:[#allocation125_spill] sm:$0xff] %v4812_v14  ;;  %v4836_v28 = vsel %vm166_vm0, 0.0, %v1241_v39  ;;  %v4839_v11 = vsel %vm166_vm0, 0.0, %v1243_v15  ;;  %v4842_v50 = vsel %vm166_vm0, 0.0, %v1245_v8  ;;  %v4845_v10 = vsel %vm166_vm0, 0.0, %v1247_v12 }
 0x195   :  { %6749 = vst [vmem:[#allocation133_spill] sm:$0xff] %v4815_v56  ;;  %6750 = vst [vmem:[#allocation26_spill] sm:$0xff] %v4818_v25  ;;  %v1313_v31 = vrot.slane %v4751_v61, 1  ;;  %v1315_v38 = vrot.slane %v4753_v62, 1  ;;  %v1317_v23 = vrot.slane %v4755_v42, 1  ;;  %v1319_v58 = vrot.slane %v4757_v63, 1 }
 0x196   :  { %6751 = vst [vmem:[#allocation139_spill] sm:$0xff] %v4821_v0  ;;  %6752 = vst [vmem:[#allocation126_spill] sm:$0xff] %v4824_v43  ;;  %v1321_v36 = vrot.slane %v4759_v1, 1  ;;  %v1323_v3 = vrot.slane %v4761_v48, 1  ;;  %v1325_v5 = vrot.slane %v4763_v52, 1  ;;  %v1327_v24 = vrot.slane %v4765_v18, 1 }
 0x197   :  { %6753 = vst [vmem:[#allocation5_spill] sm:$0xff] %v4827_v2  ;;  %6754 = vst [vmem:[#allocation6_spill] sm:$0xff] %v4830_v34  ;;  %v1329_v40 = vrot.slane %v4767_v37, 1  ;;  %v1331_v60 = vrot.slane %v4769_v22, 1  ;;  %v1333_v29 = vrot.slane %v4771_v55, 1  ;;  %v1335_v16 = vrot.slane %v4773_v35, 1 }
 0x198   :  { %6755 = vst [vmem:[#allocation18_spill] sm:$0xff] %v4833_v59  ;;  %6756 = vst [vmem:[#allocation127_spill] sm:$0xff] %v4836_v28  ;;  %v1337_v49 = vrot.slane %v4775_v17, 1  ;;  %v1339_v26 = vrot.slane %v4777_v6, 1  ;;  %v1341_v9 = vrot.slane %v4779_v33, 1  ;;  %v1343_v39 = vrot.slane %v4781_v57, 1 }
 0x199   :  { %6757 = vst [vmem:[#allocation62_spill] sm:$0xff] %v4839_v11  ;;  %6758 = vst [vmem:[#allocation33_spill] sm:$0xff] %v4842_v50  ;;  %v4864_v15 = vsel %vm263_vm1, %v1313_v31, 0.0  ;;  %v4867_v8 = vsel %vm263_vm1, %v1315_v38, 0.0  ;;  %v4870_v12 = vsel %vm263_vm1, %v1317_v23, 0.0  ;;  %v4873_v19 = vsel %vm263_vm1, %v1319_v58, 0.0 }
 0x19a   :  { %6759 = vst [vmem:[#allocation90_spill] sm:$0xff] %v4845_v10  ;;  %v4876_v51 = vsel %vm263_vm1, %v1321_v36, 0.0  ;;  %v4879_v21 = vsel %vm263_vm1, %v1323_v3, 0.0  ;;  %v4882_v46 = vsel %vm263_vm1, %v1325_v5, 0.0  ;;  %v4885_v31 = vsel %vm263_vm1, %v1327_v24, 0.0 }
 0x19b   :  { %6760 = vst [vmem:[#allocation3_spill] sm:$0xff] %v4885_v31  ;;  %v4888_v38 = vsel %vm263_vm1, %v1329_v40, 0.0  ;;  %v4891_v23 = vsel %vm263_vm1, %v1331_v60, 0.0  ;;  %v4894_v58 = vsel %vm263_vm1, %v1333_v29, 0.0  ;;  %v4897_v36 = vsel %vm263_vm1, %v1335_v16, 0.0 }
 0x19c   :  { %v4900_v3 = vsel %vm263_vm1, %v1337_v49, 0.0  ;;  %v4903_v5 = vsel %vm263_vm1, %v1339_v26, 0.0  ;;  %v4906_v24 = vsel %vm263_vm1, %v1341_v9, 0.0  ;;  %v4909_v40 = vsel %vm263_vm1, %v1343_v39, 0.0 }
 0x19d   :  { %6761 = vst [vmem:[#allocation91_spill] sm:$0xff] %v4903_v5  ;;  %6762 = vst [vmem:[#allocation34_spill] sm:$0xff] %v4906_v24  ;;  %v1417_v60 = vmul.f32 %v4728_v4, %v4800_v41  ;;  %v1419_v29 = vmul.f32 %v4728_v4, %v4803_v32  ;;  %v1421_v16 = vmul.f32 %v4728_v4, %v4806_v13 }
 0x19e   :  { %6763 = vst [vmem:[#allocation92_spill] sm:$0xff] %v4909_v40  ;;  %v1423_v49 = vmul.f32 %v4728_v4, %v4809_v47  ;;  %v1425_v26 = vmul.f32 %v4728_v4, %v4812_v14  ;;  %v1427_v9 = vmul.f32 %v4728_v4, %v4815_v56  ;;  %v1429_v39 = vmul.f32 %v4728_v4, %v4818_v25 }
 0x19f   :  { %v1431_v20 = vmul.f32 %v4728_v4, %v4824_v43  ;;  %v1433_v45 = vmul.f32 %v4728_v4, %v4827_v2  ;;  %v1435_v53 = vmul.f32 %v4728_v4, %v4830_v34  ;;  %v1437_v40 = vmul.f32 %v4728_v4, %v4833_v59 }
 0x1a0   :  { %v1439_v31 = vmul.f32 %v4728_v4, %v4836_v28  ;;  %v1441_v30 = vmul.f32 %v4728_v4, %v4839_v11  ;;  %v1443_v57 = vmul.f32 %v4728_v4, %v4842_v50  ;;  %v1453_v18 = vmul.f32 %v4731_v54, %v4751_v61 }
 0x1a1   :  { %v1455_v44 = vmul.f32 %v4731_v54, %v4753_v62  ;;  %v1457_v10 = vmul.f32 %v4731_v54, %v4755_v42  ;;  %v1459_v59 = vmul.f32 %v4731_v54, %v4757_v63  ;;  %v1461_v28 = vmul.f32 %v4731_v54, %v4759_v1 }
 0x1a2   :  { %v1463_v11 = vmul.f32 %v4731_v54, %v4761_v48  ;;  %v1465_v4 = vmul.f32 %v4731_v54, %v4763_v52  ;;  %v1467_v61 = vmul.f32 %v4731_v54, %v4767_v37  ;;  %v1469_v62 = vmul.f32 %v4731_v54, %v4769_v22 }
 0x1a3   :  { %v1471_v42 = vmul.f32 %v4731_v54, %v4771_v55  ;;  %v1473_v63 = vmul.f32 %v4731_v54, %v4773_v35  ;;  %v1475_v1 = vmul.f32 %v4731_v54, %v4775_v17  ;;  %v1477_v48 = vmul.f32 %v4731_v54, %v4777_v6 }
 0x1a4   :  { %v1479_v52 = vmul.f32 %v4731_v54, %v4779_v33  ;;  %v1481_v50 = vadd.f32 %v1453_v18, %v1417_v60  ;;  %v1483_v37 = vadd.f32 %v1455_v44, %v1419_v29  ;;  %v1485_v34 = vadd.f32 %v1457_v10, %v1421_v16  ;;  %v6783_v16 = vld [vmem:[#allocation126_spill] sm:$0xff] }
 0x1a5   :  { %v1487_v2 = vadd.f32 %v1459_v59, %v1423_v49  ;;  %v1489_v22 = vadd.f32 %v1461_v28, %v1425_v26  ;;  %v1491_v43 = vadd.f32 %v1463_v11, %v1427_v9  ;;  %v1493_v0 = vadd.f32 %v1465_v4, %v1429_v39  ;;  %v6784_v26 = vld [vmem:[#allocation5_spill] sm:$0xff]  ;;  %v6785_v39 = vld [vmem:[#allocation6_spill] sm:$0xff] }
 0x1a6   :  { %v1495_v55 = vadd.f32 %v1467_v61, %v1431_v20  ;;  %v1497_v25 = vadd.f32 %v1469_v62, %v1433_v45  ;;  %v1499_v56 = vadd.f32 %v1471_v42, %v1435_v53  ;;  %v1501_v35 = vadd.f32 %v1473_v63, %v1437_v40 }
 0x1a7   :  { %v1503_v14 = vadd.f32 %v1475_v1, %v1439_v31  ;;  %v1505_v47 = vadd.f32 %v1477_v48, %v1441_v30  ;;  %v1507_v17 = vadd.f32 %v1479_v52, %v1443_v57  ;;  %v1517_v6 = vmul.f32 %v4734_v7, %v4864_v15 }
 0x1a8   :  { %v1519_v54 = vmul.f32 %v4734_v7, %v4867_v8  ;;  %v1521_v44 = vmul.f32 %v4734_v7, %v4870_v12  ;;  %v1523_v18 = vmul.f32 %v4734_v7, %v4873_v19  ;;  %v1525_v20 = vmul.f32 %v4734_v7, %v4876_v51 }
 0x1a9   :  { %v1527_v53 = vmul.f32 %v4734_v7, %v4879_v21  ;;  %v1529_v30 = vmul.f32 %v4734_v7, %v4882_v46  ;;  %v1531_v45 = vmul.f32 %v4734_v7, %v4888_v38  ;;  %v1533_v61 = vmul.f32 %v4734_v7, %v4891_v23 }
 0x1aa   :  { %v1535_v62 = vmul.f32 %v4734_v7, %v4894_v58  ;;  %v1537_v42 = vmul.f32 %v4734_v7, %v4897_v36  ;;  %v1539_v63 = vmul.f32 %v4734_v7, %v4900_v3  ;;  %v1541_v1 = vmul.f32 %v4734_v7, %v4903_v5 }
 0x1ab   :  { %v1543_v48 = vmul.f32 %v4734_v7, %v4906_v24  ;;  %v4995_v52 = vadd.f32 %v1517_v6, %v1481_v50  ;;  %v4997_v57 = vadd.f32 %v1519_v54, %v1483_v37  ;;  %v4999_v59 = vadd.f32 %v1521_v44, %v1485_v34  ;;  %v6782_v50 = vld [vmem:[#allocation139_spill] sm:$0xff]  ;;  %v6786_v54 = vld [vmem:[#allocation18_spill] sm:$0xff] }
 0x1ac   :  { %v5001_v28 = vadd.f32 %v1523_v18, %v1487_v2  ;;  %v5003_v11 = vadd.f32 %v1525_v20, %v1489_v22  ;;  %v5005_v10 = vadd.f32 %v1527_v53, %v1491_v43  ;;  %v5007_v31 = vadd.f32 %v1529_v30, %v1493_v0  ;;  %v6780_v43 = vld [vmem:[#allocation133_spill] sm:$0xff]  ;;  %v6787_v18 = vld [vmem:[#allocation127_spill] sm:$0xff]  ;;  %v6788_v53 = vld [vmem:[#allocation62_spill] sm:$0xff] }
 0x1ad   :  { %6764 = vst [vmem:[#allocation7_spill] sm:$0xff] %v4995_v52  ;;  %6765 = vst [vmem:[#allocation93_spill] sm:$0xff] %v4997_v57  ;;  %v5009_v40 = vadd.f32 %v1531_v45, %v1495_v55  ;;  %v5011_v60 = vadd.f32 %v1533_v61, %v1497_v25  ;;  %v5013_v29 = vadd.f32 %v1535_v62, %v1499_v56  ;;  %v6778_v25 = vld [vmem:[#allocation138_spill] sm:$0xff]  ;;  %v6789_v45 = vld [vmem:[#allocation33_spill] sm:$0xff] }
 0x1ae   :  { %6766 = vst [vmem:[#allocation8_spill] sm:$0xff] %v4999_v59  ;;  %6767 = vst [vmem:[#allocation94_spill] sm:$0xff] %v5001_v28  ;;  %v5015_v7 = vadd.f32 %v1537_v42, %v1501_v35  ;;  %v5017_v37 = vadd.f32 %v1539_v63, %v1503_v14  ;;  %v5019_v6 = vadd.f32 %v1541_v1, %v1505_v47  ;;  %v6779_v35 = vld [vmem:[#allocation125_spill] sm:$0xff]  ;;  %v6790_v62 = vld [vmem:[#allocation90_spill] sm:$0xff] }
 0x1af   :  { %6768 = vst [vmem:[#allocation9_spill] sm:$0xff] %v5003_v11  ;;  %6769 = vst [vmem:[#allocation95_spill] sm:$0xff] %v5005_v10  ;;  %v5021_v2 = vadd.f32 %v1543_v48, %v1507_v17  ;;  %v1581_v22 = vmul.f32 %v4737_v27, %v4800_v41  ;;  %v1583_v0 = vmul.f32 %v4737_v27, %v4803_v32  ;;  %v6781_v17 = vld [vmem:[#allocation26_spill] sm:$0xff]  ;;  %v6791_v63 = vld [vmem:[#allocation107_spill] sm:$0xff] }
 0x1b0   :  { %6770 = vst [vmem:[#allocation14_spill] sm:$0xff] %v5007_v31  ;;  %6771 = vst [vmem:[#allocation96_spill] sm:$0xff] %v5009_v40  ;;  %v1585_v55 = vmul.f32 %v4737_v27, %v4806_v13  ;;  %v1587_v56 = vmul.f32 %v4737_v27, %v6778_v25  ;;  %v1589_v14 = vmul.f32 %v4737_v27, %v6779_v35  ;;  %v6792_v1 = vld [vmem:[#allocation30_spill] sm:$0xff]  ;;  %v6797_v31 = vld [vmem:[#allocation129_spill] sm:$0xff] }
 0x1b1   :  { %6772 = vst [vmem:[#allocation15_spill] sm:$0xff] %v5011_v60  ;;  %6773 = vst [vmem:[#allocation61_spill] sm:$0xff] %v5013_v29  ;;  %v1591_v47 = vmul.f32 %v4737_v27, %v6780_v43  ;;  %v1593_v34 = vmul.f32 %v4737_v27, %v6781_v17  ;;  %v1595_v41 = vmul.f32 %v4737_v27, %v6782_v50  ;;  %v6796_v60 = vld [vmem:[#allocation128_spill] sm:$0xff]  ;;  %v6798_v11 = vld [vmem:[#allocation130_spill] sm:$0xff] }
 0x1b2   :  { %6774 = vst [vmem:[#allocation16_spill] sm:$0xff] %v5015_v7  ;;  %6775 = vst [vmem:[#allocation97_spill] sm:$0xff] %v5017_v37  ;;  %v1597_v49 = vmul.f32 %v4737_v27, %v6783_v16  ;;  %v1599_v9 = vmul.f32 %v4737_v27, %v6784_v26  ;;  %v1601_v4 = vmul.f32 %v4737_v27, %v6785_v39  ;;  %v6793_v16 = vld [vmem:[#allocation31_spill] sm:$0xff]  ;;  %v6795_v7 = vld [vmem:[#allocation4_spill] sm:$0xff] }
 0x1b3   :  { %6776 = vst [vmem:[#allocation45_spill] sm:$0xff] %v5019_v6  ;;  %6777 = vst [vmem:[#allocation98_spill] sm:$0xff] %v5021_v2  ;;  %v1603_v44 = vmul.f32 %v4737_v27, %v6786_v54  ;;  %v1605_v20 = vmul.f32 %v4737_v27, %v6787_v18  ;;  %v1607_v30 = vmul.f32 %v4737_v27, %v6788_v53  ;;  %v6794_v6 = vld [vmem:[#allocation32_spill] sm:$0xff]  ;;  %v6799_v28 = vld [vmem:[#allocation131_spill] sm:$0xff] }
 0x1b4   :  { %v1609_v61 = vmul.f32 %v4737_v27, %v6789_v45  ;;  %v1611_v42 = vmul.f32 %v4737_v27, %v6790_v62  ;;  %v1621_v48 = vmul.f32 %v6792_v1, %v6791_v63  ;;  %v1623_v2 = vmul.f32 %v6792_v1, %v6793_v16  ;;  %v6800_v59 = vld [vmem:[#allocation132_spill] sm:$0xff]  ;;  %v6802_v16 = vld [vmem:[#allocation134_spill] sm:$0xff]  ;;  %v6803_v62 = vld [vmem:[#allocation25_spill] sm:$0xff] }
 0x1b5   :  { %v1625_v37 = vmul.f32 %v6792_v1, %v6794_v6  ;;  %v1627_v29 = vmul.f32 %v6792_v1, %v6795_v7  ;;  %v1629_v40 = vmul.f32 %v6792_v1, %v6796_v60  ;;  %v1631_v10 = vmul.f32 %v6792_v1, %v6797_v31  ;;  %v6801_v52 = vld [vmem:[#allocation116_spill] sm:$0xff]  ;;  %v6804_v45 = vld [vmem:[#allocation135_spill] sm:$0xff] }
 0x1b6   :  { %v1633_v27 = vmul.f32 %v6792_v1, %v6798_v11  ;;  %v1635_v63 = vmul.f32 %v6792_v1, %v6799_v28  ;;  %v1637_v57 = vmul.f32 %v6792_v1, %v6800_v59  ;;  %v1639_v6 = vmul.f32 %v6792_v1, %v6801_v52  ;;  %v6805_v53 = vld [vmem:[#allocation108_spill] sm:$0xff]  ;;  %v6806_v18 = vld [vmem:[#allocation11_spill] sm:$0xff] }
 0x1b7   :  { %v1641_v7 = vmul.f32 %v6792_v1, %v6802_v16  ;;  %v1643_v60 = vmul.f32 %v6792_v1, %v6803_v62  ;;  %v1645_v31 = vmul.f32 %v6792_v1, %v6804_v45  ;;  %v1647_v11 = vmul.f32 %v6792_v1, %v6805_v53 }
 0x1b8   :  { %v1649_v28 = vmul.f32 %v6792_v1, %v4779_v33  ;;  %v1651_v59 = vmul.f32 %v6792_v1, %v6806_v18  ;;  %v1653_v54 = vadd.f32 %v1621_v48, %v1581_v22  ;;  %v1655_v52 = vadd.f32 %v1623_v2, %v1583_v0  ;;  %v6807_v33 = vld [vmem:[#allocation104_spill] sm:$0xff]  ;;  %v6809_v22 = vld [vmem:[#allocation91_spill] sm:$0xff]  ;;  %v6827_v1 = vld [vmem:[#allocation125_spill] sm:$0xff] }
 0x1b9   :  { %v1657_v39 = vadd.f32 %v1625_v37, %v1585_v55  ;;  %v1659_v26 = vadd.f32 %v1627_v29, %v1587_v56  ;;  %v1661_v16 = vadd.f32 %v1629_v40, %v1589_v14  ;;  %v1663_v50 = vadd.f32 %v1631_v10, %v1591_v47  ;;  %v6810_v55 = vld [vmem:[#allocation34_spill] sm:$0xff]  ;;  %v6811_v14 = vld [vmem:[#allocation92_spill] sm:$0xff] }
 0x1ba   :  { %v1665_v17 = vadd.f32 %v1633_v27, %v1593_v34  ;;  %v1667_v62 = vadd.f32 %v1635_v63, %v1595_v41  ;;  %v1669_v43 = vadd.f32 %v1637_v57, %v1597_v49  ;;  %v1671_v35 = vadd.f32 %v1639_v6, %v1599_v9  ;;  %v6829_v48 = vld [vmem:[#allocation26_spill] sm:$0xff]  ;;  %v6831_v27 = vld [vmem:[#allocation5_spill] sm:$0xff] }
 0x1bb   :  { %v1673_v45 = vadd.f32 %v1641_v7, %v1601_v4  ;;  %v1675_v25 = vadd.f32 %v1643_v60, %v1603_v44  ;;  %v1677_v13 = vadd.f32 %v1645_v31, %v1605_v20  ;;  %v1679_v53 = vadd.f32 %v1647_v11, %v1607_v30  ;;  %v6808_v31 = vld [vmem:[#allocation3_spill] sm:$0xff] }
 0x1bc   :  { %v1681_v32 = vadd.f32 %v1649_v28, %v1609_v61  ;;  %v1683_v24 = vadd.f32 %v1651_v59, %v1611_v42  ;;  %v1693_v5 = vmul.f32 %v6807_v33, %v4864_v15  ;;  %v1695_v2 = vmul.f32 %v6807_v33, %v4867_v8  ;;  %v6825_v42 = vld [vmem:[#allocation124_spill] sm:$0xff]  ;;  %v6832_v59 = vld [vmem:[#allocation6_spill] sm:$0xff] }
 0x1bd   :  { %v1697_v40 = vmul.f32 %v6807_v33, %v4870_v12  ;;  %v1699_v10 = vmul.f32 %v6807_v33, %v4873_v19  ;;  %v1701_v57 = vmul.f32 %v6807_v33, %v4876_v51  ;;  %v1703_v11 = vmul.f32 %v6807_v33, %v4879_v21 }
 0x1be   :  { %v1705_v28 = vmul.f32 %v6807_v33, %v4882_v46  ;;  %v1707_v15 = vmul.f32 %v6807_v33, %v6808_v31  ;;  %v1709_v60 = vmul.f32 %v6807_v33, %v4888_v38  ;;  %v1711_v29 = vmul.f32 %v6807_v33, %v4891_v23 }
 0x1bf   :  { %v1713_v7 = vmul.f32 %v6807_v33, %v4894_v58  ;;  %v1715_v37 = vmul.f32 %v6807_v33, %v4897_v36  ;;  %v1717_v6 = vmul.f32 %v6807_v33, %v4900_v3  ;;  %v1719_v0 = vmul.f32 %v6807_v33, %v6809_v22 }
 0x1c0   :  { %v1721_v56 = vmul.f32 %v6807_v33, %v6810_v55  ;;  %v1723_v38 = vmul.f32 %v6807_v33, %v6811_v14  ;;  %v5119_v47 = vadd.f32 %v1693_v5, %v1653_v54  ;;  %v5121_v34 = vadd.f32 %v1695_v2, %v1655_v52  ;;  %v6824_v54 = vld [vmem:[#allocation105_spill] sm:$0xff] }
 0x1c1   :  { %v5123_v41 = vadd.f32 %v1697_v40, %v1657_v39  ;;  %v5125_v49 = vadd.f32 %v1699_v10, %v1659_v26  ;;  %v5127_v9 = vadd.f32 %v1701_v57, %v1661_v16  ;;  %v5129_v4 = vadd.f32 %v1703_v11, %v1663_v50  ;;  %v6833_v40 = vld [vmem:[#allocation18_spill] sm:$0xff]  ;;  %v6834_v57 = vld [vmem:[#allocation127_spill] sm:$0xff] }
 0x1c2   :  { %6812 = vst [vmem:[#allocation99_spill] sm:$0xff] %v5119_v47  ;;  %v5131_v44 = vadd.f32 %v1705_v28, %v1665_v17  ;;  %v5133_v20 = vadd.f32 %v1707_v15, %v1667_v62  ;;  %v5135_v30 = vadd.f32 %v1709_v60, %v1669_v43  ;;  %v5137_v61 = vadd.f32 %v1711_v29, %v1671_v35  ;;  %v6823_v17 = vld [vmem:[#allocation137_spill] sm:$0xff]  ;;  %v6826_v35 = vld [vmem:[#allocation138_spill] sm:$0xff]  ;;  %v6851_v47 = vld [vmem:[#allocation136_spill] sm:$0xff] }
 0x1c3   :  { %v5139_v33 = vadd.f32 %v1713_v7, %v1673_v45  ;;  %v5141_v5 = vadd.f32 %v1715_v37, %v1675_v25  ;;  %v5143_v52 = vadd.f32 %v1717_v6, %v1677_v13  ;;  %v5145_v26 = vadd.f32 %v1719_v0, %v1679_v53  ;;  %v6828_v13 = vld [vmem:[#allocation133_spill] sm:$0xff]  ;;  %v6835_v28 = vld [vmem:[#allocation62_spill] sm:$0xff]  ;;  %v6838_v6 = vld [vmem:[#allocation31_spill] sm:$0xff] }
 0x1c4   :  { %6813 = vst [vmem:[#allocation100_spill] sm:$0xff] %v5131_v44  ;;  %6814 = vst [vmem:[#allocation101_spill] sm:$0xff] %v5133_v20  ;;  %v5147_v39 = vadd.f32 %v1721_v56, %v1681_v32  ;;  %v5149_v50 = vadd.f32 %v1723_v38, %v1683_v24  ;;  %v1765_v62 = vmul.f32 %v6824_v54, %v6823_v17  ;;  %v6830_v24 = vld [vmem:[#allocation139_spill] sm:$0xff]  ;;  %v6836_v60 = vld [vmem:[#allocation33_spill] sm:$0xff] }
 0x1c5   :  { %6815 = vst [vmem:[#allocation102_spill] sm:$0xff] %v5135_v30  ;;  %6816 = vst [vmem:[#allocation103_spill] sm:$0xff] %v5137_v61  ;;  %v1767_v43 = vmul.f32 %v6824_v54, %v6825_v42  ;;  %v1769_v45 = vmul.f32 %v6824_v54, %v6826_v35  ;;  %v1771_v25 = vmul.f32 %v6824_v54, %v6827_v1  ;;  %v6837_v7 = vld [vmem:[#allocation90_spill] sm:$0xff]  ;;  %v6840_v38 = vld [vmem:[#allocation32_spill] sm:$0xff] }
 0x1c6   :  { %6817 = vst [vmem:[#allocation10_spill] sm:$0xff] %v5139_v33  ;;  %6818 = vst [vmem:[#allocation58_spill] sm:$0xff] %v5141_v5  ;;  %v1773_v53 = vmul.f32 %v6824_v54, %v6828_v13  ;;  %v1775_v32 = vmul.f32 %v6824_v54, %v6829_v48  ;;  %v1777_v16 = vmul.f32 %v6824_v54, %v6830_v24  ;;  %v6839_v0 = vld [vmem:[#allocation106_spill] sm:$0xff]  ;;  %v6841_v42 = vld [vmem:[#allocation4_spill] sm:$0xff] }
 0x1c7   :  { %6819 = vst [vmem:[#allocation39_spill] sm:$0xff] %v5143_v52  ;;  %6820 = vst [vmem:[#allocation75_spill] sm:$0xff] %v5145_v26  ;;  %v1779_v63 = vmul.f32 %v6824_v54, %v6831_v27  ;;  %v1781_v2 = vmul.f32 %v6824_v54, %v6832_v59  ;;  %v1783_v10 = vmul.f32 %v6824_v54, %v6833_v40  ;;  %v6842_v1 = vld [vmem:[#allocation128_spill] sm:$0xff]  ;;  %v6843_v48 = vld [vmem:[#allocation129_spill] sm:$0xff] }
 0x1c8   :  { %6821 = vst [vmem:[#allocation80_spill] sm:$0xff] %v5147_v39  ;;  %6822 = vst [vmem:[#allocation46_spill] sm:$0xff] %v5149_v50  ;;  %v1785_v11 = vmul.f32 %v6824_v54, %v6834_v57  ;;  %v1787_v15 = vmul.f32 %v6824_v54, %v6835_v28  ;;  %v1789_v29 = vmul.f32 %v6824_v54, %v6836_v60  ;;  %v6844_v27 = vld [vmem:[#allocation130_spill] sm:$0xff]  ;;  %v6845_v40 = vld [vmem:[#allocation131_spill] sm:$0xff] }
 0x1c9   :  { %v1791_v37 = vmul.f32 %v6824_v54, %v6837_v7  ;;  %v1801_v56 = vmul.f32 %v6839_v0, %v6838_v6  ;;  %v1803_v17 = vmul.f32 %v6839_v0, %v6840_v38  ;;  %v1805_v35 = vmul.f32 %v6839_v0, %v6841_v42  ;;  %v6846_v57 = vld [vmem:[#allocation116_spill] sm:$0xff]  ;;  %v6847_v60 = vld [vmem:[#allocation134_spill] sm:$0xff]  ;;  %v6848_v6 = vld [vmem:[#allocation25_spill] sm:$0xff] }
 0x1ca   :  { %v1807_v13 = vmul.f32 %v6839_v0, %v6842_v1  ;;  %v1809_v24 = vmul.f32 %v6839_v0, %v6843_v48  ;;  %v1811_v59 = vmul.f32 %v6839_v0, %v6844_v27  ;;  %v1813_v54 = vmul.f32 %v6839_v0, %v6845_v40  ;;  %v6849_v42 = vld [vmem:[#allocation135_spill] sm:$0xff]  ;;  %v6850_v30 = vld [vmem:[#allocation108_spill] sm:$0xff] }
 0x1cb   :  { %v1815_v28 = vmul.f32 %v6839_v0, %v6846_v57  ;;  %v1817_v7 = vmul.f32 %v6839_v0, %v6847_v60  ;;  %v1819_v38 = vmul.f32 %v6839_v0, %v6848_v6  ;;  %v1821_v1 = vmul.f32 %v6839_v0, %v6849_v42  ;;  %v2367_v60 = vld [vmem:[%s5745_s4 + $0x18] ss:$0 sm:$0xff] }
 0x1cc   :  { %v1823_v48 = vmul.f32 %v6839_v0, %v6850_v30  ;;  %v1825_v27 = vmul.f32 %v6839_v0, %v6851_v47  ;;  %v1827_v40 = vmul.f32 %v6839_v0, %v6806_v18  ;;  %v1829_v50 = vadd.f32 %v1801_v56, %v1765_v62 }
 0x1cd   :  { %v1831_v57 = vadd.f32 %v1803_v17, %v1767_v43  ;;  %v1833_v39 = vadd.f32 %v1805_v35, %v1769_v45  ;;  %v1835_v6 = vadd.f32 %v1807_v13, %v1771_v25  ;;  %v1837_v26 = vadd.f32 %v1809_v24, %v1773_v53  ;;  %v6852_v17 = vld [vmem:[#allocation7_spill] sm:$0xff]  ;;  %v6855_v35 = vld [vmem:[#allocation94_spill] sm:$0xff] }
 0x1ce   :  { %v1839_v52 = vadd.f32 %v1811_v59, %v1775_v32  ;;  %v1841_v42 = vadd.f32 %v1813_v54, %v1777_v16  ;;  %v1843_v5 = vadd.f32 %v1815_v28, %v1779_v63  ;;  %v1845_v33 = vadd.f32 %v1817_v7, %v1781_v2  ;;  %v6859_v13 = vld [vmem:[#allocation14_spill] sm:$0xff]  ;;  %v6862_v59 = vld [vmem:[#allocation103_spill] sm:$0xff] }
 0x1cf   :  { %v1847_v30 = vadd.f32 %v1819_v38, %v1783_v10  ;;  %v1849_v61 = vadd.f32 %v1821_v1, %v1785_v11  ;;  %v1851_v20 = vadd.f32 %v1823_v48, %v1787_v15  ;;  %v1853_v47 = vadd.f32 %v1825_v27, %v1789_v29  ;;  %v6864_v28 = vld [vmem:[#allocation10_spill] sm:$0xff]  ;;  %v6868_v48 = vld [vmem:[#allocation39_spill] sm:$0xff] }
 0x1d0   :  { %v1855_v44 = vadd.f32 %v1827_v40, %v1791_v37  ;;  %v1865_v18 = vmul.f32 %v2367_v60, %v4867_v8  ;;  %v1867_v62 = vmul.f32 %v2367_v60, %v4870_v12  ;;  %v1869_v43 = vmul.f32 %v2367_v60, %v4873_v19  ;;  %v6866_v38 = vld [vmem:[#allocation58_spill] sm:$0xff]  ;;  %v6870_v40 = vld [vmem:[#allocation75_spill] sm:$0xff] }
 0x1d1   :  { %v1871_v0 = vmul.f32 %v2367_v60, %v4876_v51  ;;  %v1873_v45 = vmul.f32 %v2367_v60, %v4879_v21  ;;  %v1875_v25 = vmul.f32 %v2367_v60, %v4882_v46  ;;  %v1877_v53 = vmul.f32 %v2367_v60, %v6808_v31 }
 0x1d2   :  { %v1879_v32 = vmul.f32 %v2367_v60, %v4891_v23  ;;  %v1881_v16 = vmul.f32 %v2367_v60, %v4894_v58  ;;  %v1883_v63 = vmul.f32 %v2367_v60, %v4897_v36  ;;  %v1885_v8 = vmul.f32 %v2367_v60, %v4900_v3 }
 0x1d3   :  { %v1887_v12 = vmul.f32 %v2367_v60, %v6809_v22  ;;  %v1889_v19 = vmul.f32 %v2367_v60, %v6810_v55  ;;  %v1891_v51 = vmul.f32 %v2367_v60, %v6811_v14  ;;  %v1893_v2 = vadd.f32 %v1865_v18, %v1829_v50  ;;  %v6853_v55 = vld [vmem:[#allocation93_spill] sm:$0xff]  ;;  %v6854_v50 = vld [vmem:[#allocation8_spill] sm:$0xff] }
 0x1d4   :  { %v1895_v21 = vadd.f32 %v1867_v62, %v1831_v57  ;;  %v1897_v10 = vadd.f32 %v1869_v43, %v1833_v39  ;;  %v1899_v46 = vadd.f32 %v1871_v0, %v1835_v6  ;;  %v1901_v11 = vadd.f32 %v1873_v45, %v1837_v26  ;;  %v6856_v26 = vld [vmem:[#allocation9_spill] sm:$0xff]  ;;  %v6872_v6 = vld [vmem:[#allocation80_spill] sm:$0xff]  ;;  %v6875_v62 = vld [vmem:[#allocation99_spill] sm:$0xff] }
 0x1d5   :  { %v1903_v31 = vadd.f32 %v1875_v25, %v1839_v52  ;;  %v1905_v15 = vadd.f32 %v1877_v53, %v1841_v42  ;;  %v1907_v23 = vadd.f32 %v1879_v32, %v1843_v5  ;;  %v1909_v29 = vadd.f32 %v1881_v16, %v1845_v33  ;;  %v6857_v5 = vld [vmem:[#allocation95_spill] sm:$0xff]  ;;  %v6871_v60 = vld [vmem:[#allocation45_spill] sm:$0xff] }
 0x1d6   :  { %v1911_v58 = vadd.f32 %v1883_v63, %v1847_v30  ;;  %v1913_v37 = vadd.f32 %v1885_v8, %v1849_v61  ;;  %v1915_v36 = vadd.f32 %v1887_v12, %v1851_v20  ;;  %v1917_v56 = vadd.f32 %v1889_v19, %v1853_v47  ;;  %v6858_v61 = vld [vmem:[#allocation100_spill] sm:$0xff]  ;;  %v6873_v30 = vld [vmem:[#allocation98_spill] sm:$0xff] }
 0x1d7   :  { %v1919_v3 = vadd.f32 %v1891_v51, %v1855_v44  ;;  %v1923_v22 = vadd.f32 %v5121_v34, %v6852_v17  ;;  %v1925_v14 = vadd.f32 %v5123_v41, %v6853_v55  ;;  %v1927_v39 = vadd.f32 %v5125_v49, %v6854_v50  ;;  %v6860_v44 = vld [vmem:[#allocation101_spill] sm:$0xff]  ;;  %v6861_v34 = vld [vmem:[#allocation96_spill] sm:$0xff]  ;;  %v6863_v41 = vld [vmem:[#allocation15_spill] sm:$0xff] }
 0x1d8   :  { %v1929_v52 = vadd.f32 %v5127_v9, %v6855_v35  ;;  %v1931_v33 = vadd.f32 %v5129_v4, %v6856_v26  ;;  %v1933_v20 = vadd.f32 %v6858_v61, %v6857_v5  ;;  %v5238_v24 = vadd.f32 %v6860_v44, %v6859_v13  ;;  %v6865_v49 = vld [vmem:[#allocation61_spill] sm:$0xff]  ;;  %v6867_v9 = vld [vmem:[#allocation16_spill] sm:$0xff]  ;;  %v6874_v47 = vld [vmem:[#allocation46_spill] sm:$0xff] }
 0x1d9   :  { %v1939_v54 = vadd.f32 %v6862_v59, %v6861_v34  ;;  %v1941_v7 = vadd.f32 %v6864_v28, %v6863_v41  ;;  %v1943_v1 = vadd.f32 %v6866_v38, %v6865_v49  ;;  %v1945_v27 = vadd.f32 %v6868_v48, %v6867_v9  ;;  %v6869_v4 = vld [vmem:[#allocation97_spill] sm:$0xff]  ;;  %v6876_v63 = vld [vmem:[#allocation102_spill] sm:$0xff]  ;;  %v6880_v59 = vld [vmem:[#allocation112_spill] sm:$0xff] }
 0x1da   :  { %v1947_v57 = vadd.f32 %v6870_v40, %v6869_v4  ;;  %v1949_v42 = vadd.f32 %v6872_v6, %v6871_v60  ;;  %v5254_v18 = vadd.f32 %v6874_v47, %v6873_v30  ;;  %v5257_v43 = vadd.f32 %v1893_v2, %v6875_v62  ;;  %v6878_v5 = vld [vmem:[#allocation110_spill] sm:$0xff]  ;;  %v6881_v41 = vld [vmem:[#allocation113_spill] sm:$0xff]  ;;  %v6884_v48 = vld [vmem:[#allocation115_spill] sm:$0xff] }
 0x1db   :  { %v5259_v0 = vadd.f32 %v1923_v22, %v1895_v21  ;;  %v5261_v45 = vadd.f32 %v1925_v14, %v1897_v10  ;;  %v5263_v25 = vadd.f32 %v1927_v39, %v1899_v46  ;;  %v5265_v53 = vadd.f32 %v1929_v52, %v1901_v11  ;;  %v6885_v6 = vld [vmem:[#allocation23_spill] sm:$0xff] }
 0x1dc   :  { %v5267_v32 = vadd.f32 %v1931_v33, %v1903_v31  ;;  %v5269_v16 = vadd.f32 %v1933_v20, %v1905_v15  ;;  %v5272_v8 = vadd.f32 %v1907_v23, %v6876_v63  ;;  %v5274_v12 = vadd.f32 %v1939_v54, %v1909_v29  ;;  %v6877_v33 = vld [vmem:[#allocation22_spill] sm:$0xff]  ;;  %v6879_v20 = vld [vmem:[#allocation111_spill] sm:$0xff] }
 0x1dd   :  { %v5276_v19 = vadd.f32 %v1941_v7, %v1911_v58  ;;  %v5278_v51 = vadd.f32 %v1943_v1, %v1913_v37  ;;  %v5280_v2 = vadd.f32 %v1945_v27, %v1915_v36  ;;  %v5282_v21 = vadd.f32 %v1947_v57, %v1917_v56  ;;  %v6882_v7 = vld [vmem:[#allocation24_spill] sm:$0xff]  ;;  %v6883_v1 = vld [vmem:[#allocation114_spill] sm:$0xff] }
 0x1de   :  { %v5284_v10 = vadd.f32 %v1949_v42, %v1919_v3  ;;  %v2005_v46 = vadd.f32 %v5259_v0, %v5257_v43  ;;  %v2029_v11 = vmul.f32 %v5257_v43, %v5257_v43  ;;  %v2031_v31 = vmul.f32 %v5259_v0, %v5259_v0 }
 0x1df   :  { %v2033_v15 = vmul.f32 %v5261_v45, %v5261_v45  ;;  %v2035_v23 = vmul.f32 %v5263_v25, %v5263_v25  ;;  %v2037_v29 = vmul.f32 %v5265_v53, %v5265_v53  ;;  %v2039_v37 = vmul.f32 %v5267_v32, %v5267_v32 }
 0x1e0   :  { %v2006_v58 = vadd.f32 %v2005_v46, %v5261_v45  ;;  %v2041_v36 = vmul.f32 %v5269_v16, %v5269_v16  ;;  %v2043_v56 = vmul.f32 %v5238_v24, %v5238_v24  ;;  %v5307_v3 = vmul.f32 %v5272_v8, %v5272_v8 }
 0x1e1   :  { %v5311_v17 = vmul.f32 %v5274_v12, %v5274_v12  ;;  %v5315_v22 = vmul.f32 %v5276_v19, %v5276_v19  ;;  %v5319_v55 = vmul.f32 %v5278_v51, %v5278_v51  ;;  %v5324_v50 = vmul.f32 %v5280_v2, %v5280_v2 }
 0x1e2   :  { %v2007_v14 = vadd.f32 %v2006_v58, %v5263_v25  ;;  %v5328_v39 = vmul.f32 %v5282_v21, %v5282_v21  ;;  %v2081_v35 = vadd.f32 %v2031_v31, %v2029_v11  ;;  %v5332_v52 = vmul.f32 %v5284_v10, %v5284_v10 }
 0x1e3   :  { %v5336_v26 = vmul.f32 %v5254_v18, %v5254_v18  ;;  %v2112_v61 = vsub.f32 %v6878_v5, %v6877_v33  ;;  %v2114_v13 = vsub.f32 %v6879_v20, %v6877_v33  ;;  %v2116_v54 = vsub.f32 %v6880_v59, %v6877_v33 }
 0x1e4   :  { %v2008_v44 = vadd.f32 %v2007_v14, %v5265_v53  ;;  %v2082_v34 = vadd.f32 %v2081_v35, %v2033_v15  ;;  %v2118_v28 = vsub.f32 %v6881_v41, %v6877_v33  ;;  %v2120_v9 = vsub.f32 %v6883_v1, %v6877_v33  ;;  %v6886_v15 = vld [vmem:[#allocation29_spill] sm:$0xff]  ;;  %v2396_v1 = vld [vmem:[%s5741_s0 + $0x40] sm:$0xff] }
 0x1e5   :  { %v2148_v49 = vmul.f32 %v6882_v7, %v2112_v61  ;;  %v2150_v38 = vmul.f32 %v6882_v7, %v2114_v13  ;;  %v2122_v27 = vsub.f32 %v6884_v48, %v6877_v33  ;;  %v2152_v57 = vmul.f32 %v6882_v7, %v2116_v54 }
 0x1e6   :  { %v2009_v4 = vadd.f32 %v2008_v44, %v5267_v32  ;;  %v2083_v40 = vadd.f32 %v2082_v34, %v2035_v23  ;;  %v2154_v60 = vmul.f32 %v6882_v7, %v2118_v28  ;;  %v2156_v47 = vmul.f32 %v6882_v7, %v2120_v9  ;;  %v2394_v34 = vld [vmem:[%s5741_s0 + $0x20] sm:$0xff] }
 0x1e7   :  { %v2191_v42 = vmul.f32 %v6885_v6, %v2148_v49  ;;  %v2193_v30 = vmul.f32 %v6885_v6, %v2150_v38  ;;  %v2158_v62 = vmul.f32 %v6882_v7, %v2122_v27  ;;  %v2195_v11 = vmul.f32 %v6885_v6, %v2152_v57  ;;  %v2395_v49 = vld [vmem:[%s5741_s0 + $0x30] sm:$0xff] }
 0x1e8   :  { %v2010_v63 = vadd.f32 %v2009_v4, %v5269_v16  ;;  %v2084_v46 = vadd.f32 %v2083_v40, %v2037_v29  ;;  %v2197_v31 = vmul.f32 %v6885_v6, %v2154_v60  ;;  %v2199_v14 = vmul.f32 %v6885_v6, %v2156_v47  ;;  %v2393_v29 = vld [vmem:[%s5741_s0 + $0x10] sm:$0xff] }
 0x1e9   :  { %v2234_v23 = vadd.f32 %v6886_v15, %v2191_v42  ;;  %v2236_v58 = vadd.f32 %v6886_v15, %v2193_v30  ;;  %v2201_v35 = vmul.f32 %v6885_v6, %v2158_v62  ;;  %v2238_v20 = vadd.f32 %v6886_v15, %v2195_v11  ;;  %v2397_v4 = vld [vmem:[%s5741_s0 + $0x50] sm:$0xff] }
 0x1ea   :  { %v2011_v5 = vadd.f32 %v2010_v63, %v5238_v24  ;;  %v2085_v61 = vadd.f32 %v2084_v46, %v2039_v37  ;;  %v2240_v13 = vadd.f32 %v6886_v15, %v2197_v31  ;;  %v2242_v54 = vadd.f32 %v6886_v15, %v2199_v14  ;;  %v6887_v46 = vld [vmem:[#allocation109_spill] sm:$0xff]  ;;  %v6889_v14 = vld [vmem:[#allocation118_spill] sm:$0xff] }
 0x1eb   :  { %v2266_v44 = vadd.f32 %v2393_v29, %v2234_v23  ;;  %v2268_v59 = vadd.f32 %v2394_v34, %v2236_v58  ;;  %v2244_v41 = vadd.f32 %v6886_v15, %v2201_v35  ;;  %v2270_v38 = vadd.f32 %v2395_v49, %v2238_v20  ;;  %v6888_v31 = vld [vmem:[#allocation117_spill] sm:$0xff] }
 0x1ec   :  { %v2012_v37 = vadd.f32 %v2011_v5, %v5272_v8  ;;  %v2086_v28 = vadd.f32 %v2085_v61, %v2041_v36  ;;  %v2272_v9 = vadd.f32 %v2396_v1, %v2240_v13  ;;  %v2274_v40 = vadd.f32 %v2397_v4, %v2242_v54  ;;  %v2398_v36 = vld [vmem:[%s5741_s0 + $0x60] sm:$0xff]  ;;  %v6890_v5 = vld [vmem:[#allocation119_spill] sm:$0xff]  ;;  %v6891_v13 = vld [vmem:[#allocation120_spill] sm:$0xff] }
 0x1ed   :  { %v2298_v48 = vmax.f32 %v2266_v44, 0.0  ;;  %v2300_v27 = vmax.f32 %v2268_v59, 0.0  ;;  %v2276_v57 = vadd.f32 %v2398_v36, %v2244_v41  ;;  %v2302_v30 = vmax.f32 %v2270_v38, 0.0  ;;  %v6892_v44 = vld [vmem:[#allocation121_spill] sm:$0xff] }
 0x1ee   :  { %v2013_v60 = vadd.f32 %v2012_v37, %v5274_v12  ;;  %v2087_v42 = vadd.f32 %v2086_v28, %v2043_v56  ;;  %v2304_v47 = vmax.f32 %v2272_v9, 0.0  ;;  %v2306_v62 = vmax.f32 %v2274_v40, 0.0 }
 0x1ef   :  { %2330 = vst [vmem:[%s5748_s7 + $0x10] sm:$0xff] %v2298_v48  ;;  %2332 = vst [vmem:[%s5748_s7 + $0x20] sm:$0xff] %v2300_v27  ;;  %v2308_v63 = vmax.f32 %v2276_v57, 0.0  ;;  %v2124_v11 = vsub.f32 %v6887_v46, %v6877_v33  ;;  %v2126_v23 = vsub.f32 %v6888_v31, %v6877_v33  ;;  %v2128_v35 = vsub.f32 %v6889_v14, %v6877_v33  ;;  %v2402_v14 = vld [vmem:[%s5741_s0 + $0xa0] sm:$0xff] }
 0x1f0   :  { %v2014_v56 = vadd.f32 %v2013_v60, %v5276_v19  ;;  %v2088_v58 = vadd.f32 %v2087_v42, %v5307_v3  ;;  %2334 = vst [vmem:[%s5748_s7 + $0x30] sm:$0xff] %v2302_v30  ;;  %2336 = vst [vmem:[%s5748_s7 + $0x40] sm:$0xff] %v2304_v47  ;;  %v2130_v61 = vsub.f32 %v6890_v5, %v6877_v33  ;;  %v2399_v47 = vld [vmem:[%s5741_s0 + $0x70] sm:$0xff] }
 0x1f1   :  { %2338 = vst [vmem:[%s5748_s7 + $0x50] sm:$0xff] %v2306_v62  ;;  %2340 = vst [vmem:[%s5748_s7 + $0x60] sm:$0xff] %v2308_v63  ;;  %v2160_v3 = vmul.f32 %v6882_v7, %v2124_v11  ;;  %v2162_v20 = vmul.f32 %v6882_v7, %v2126_v23  ;;  %v2132_v29 = vsub.f32 %v6891_v13, %v6877_v33  ;;  %v2400_v63 = vld [vmem:[%s5741_s0 + $0x80] sm:$0xff] }
 0x1f2   :  { %v2134_v34 = vsub.f32 %v6892_v44, %v6877_v33  ;;  %v2015_v59 = vadd.f32 %v2014_v56, %v5278_v51  ;;  %v2089_v54 = vadd.f32 %v2088_v58, %v5311_v17  ;;  %v2164_v41 = vmul.f32 %v6882_v7, %v2128_v35  ;;  %v2401_v56 = vld [vmem:[%s5741_s0 + $0x90] sm:$0xff] }
 0x1f3   :  { %v2166_v37 = vmul.f32 %v6882_v7, %v2130_v61  ;;  %v2203_v28 = vmul.f32 %v6885_v6, %v2160_v3  ;;  %v2205_v49 = vmul.f32 %v6885_v6, %v2162_v20  ;;  %v2168_v38 = vmul.f32 %v6882_v7, %v2132_v29  ;;  %v2403_v3 = vld [vmem:[%s5741_s0 + $0xb0] sm:$0xff] }
 0x1f4   :  { %v2170_v1 = vmul.f32 %v6882_v7, %v2134_v34  ;;  %v2016_v9 = vadd.f32 %v2015_v59, %v5280_v2  ;;  %v2090_v48 = vadd.f32 %v2089_v54, %v5315_v22  ;;  %v2207_v27 = vmul.f32 %v6885_v6, %v2164_v41 }
 0x1f5   :  { %v2209_v17 = vmul.f32 %v6885_v6, %v2166_v37  ;;  %v2246_v4 = vadd.f32 %v6886_v15, %v2203_v28  ;;  %v2248_v40 = vadd.f32 %v6886_v15, %v2205_v49  ;;  %v2211_v36 = vmul.f32 %v6885_v6, %v2168_v38  ;;  %v6893_v37 = vld [vmem:[#allocation122_spill] sm:$0xff]  ;;  %v6894_v49 = vld [vmem:[#allocation123_spill] sm:$0xff] }
 0x1f6   :  { %v2213_v57 = vmul.f32 %v6885_v6, %v2170_v1  ;;  %v2017_v60 = vadd.f32 %v2016_v9, %v5282_v21  ;;  %v2091_v42 = vadd.f32 %v2090_v48, %v5319_v55  ;;  %v2250_v30 = vadd.f32 %v6886_v15, %v2207_v27  ;;  %v6895_v9 = vld [vmem:[#allocation41_spill] sm:$0xff] }
 0x1f7   :  { %v2252_v22 = vadd.f32 %v6886_v15, %v2209_v17  ;;  %v2278_v62 = vadd.f32 %v2399_v47, %v2246_v4  ;;  %v2280_v46 = vadd.f32 %v2400_v63, %v2248_v40  ;;  %v2254_v11 = vadd.f32 %v6886_v15, %v2211_v36 }
 0x1f8   :  { %v2256_v31 = vadd.f32 %v6886_v15, %v2213_v57  ;;  %v2018_v55 = vadd.f32 %v2017_v60, %v5284_v10  ;;  %v2092_v23 = vadd.f32 %v2091_v42, %v5324_v50  ;;  %v2282_v58 = vadd.f32 %v2401_v56, %v2250_v30  ;;  %v2404_v50 = vld [vmem:[%s5741_s0 + $0xc0] sm:$0xff] }
 0x1f9   :  { %v2284_v35 = vadd.f32 %v2402_v14, %v2252_v22  ;;  %v2310_v5 = vmax.f32 %v2278_v62, 0.0  ;;  %v2312_v61 = vmax.f32 %v2280_v46, 0.0  ;;  %v2286_v20 = vadd.f32 %v2403_v3, %v2254_v11  ;;  %v2406_v46 = vld [vmem:[%s5741_s0 + $0xe0] sm:$0xff] }
 0x1fa   :  { %v2288_v13 = vadd.f32 %v2404_v50, %v2256_v31  ;;  %v2019_v29 = vadd.f32 %v2018_v55, %v5254_v18  ;;  %v2093_v44 = vadd.f32 %v2092_v23, %v5328_v39  ;;  %v2314_v34 = vmax.f32 %v2282_v58, 0.0  ;;  %v2407_v55 = vld [vmem:[%s5741_s0 + $0xf0] sm:$0xff] }
 0x1fb   :  { %v2316_v59 = vmax.f32 %v2284_v35, 0.0  ;;  %2342 = vst [vmem:[%s5748_s7 + $0x70] sm:$0xff] %v2310_v5  ;;  %2344 = vst [vmem:[%s5748_s7 + $0x80] sm:$0xff] %v2312_v61  ;;  %v2318_v54 = vmax.f32 %v2286_v20, 0.0  ;;  %v2136_v28 = vsub.f32 %v6893_v37, %v6877_v33  ;;  %v2138_v38 = vsub.f32 %v6894_v49, %v6877_v33 }
 0x1fc   :  { %v2320_v41 = vmax.f32 %v2288_v13, 0.0  ;;  %v2020_v1 = vrot.slane %v2019_v29, 4  ;;  %v2094_v39 = vadd.f32 %v2093_v44, %v5332_v52  ;;  %2346 = vst [vmem:[%s5748_s7 + $0x90] sm:$0xff] %v2314_v34  ;;  %v2140_v48 = vsub.f32 %v6895_v9, %v6877_v33 }
 0x1fd   :  { %2348 = vst [vmem:[%s5748_s7 + $0xa0] sm:$0xff] %v2316_v59  ;;  %2350 = vst [vmem:[%s5748_s7 + $0xb0] sm:$0xff] %v2318_v54  ;;  %v2172_v52 = vmul.f32 %v6882_v7, %v2136_v28  ;;  %v2174_v27 = vmul.f32 %v6882_v7, %v2138_v38 }
 0x1fe   :  { %2352 = vst [vmem:[%s5748_s7 + $0xc0] sm:$0xff] %v2320_v41  ;;  %v2021_v17 = vadd.f32 %v2020_v1, %v2019_v29  ;;  %v2095_v4 = vadd.f32 %v2094_v39, %v5336_v26  ;;  %v2176_v40 = vmul.f32 %v6882_v7, %v2140_v48  ;;  %v2405_v26 = vld [vmem:[%s5741_s0 + $0xd0] sm:$0xff]  ;;  %v2408_v1 = vld [vmem:[%s5746_s5] sm:$0x3] }
 0x1ff   :  { %v2215_v36 = vmul.f32 %v6885_v6, %v2172_v52  ;;  %v2217_v33 = vmul.f32 %v6885_v6, %v2174_v27  ;;  %v6896_v39 = vld [vmem:[#allocation40_spill] sm:$0xff]  ;;  %v2409_v52 = vld [vmem:[%s5747_s6] sm:$0x3] }
 0x200   :  { %v2022_v57 = vrot.slane %v2021_v17, 2  ;;  %v2096_v60 = vrot.slane %v2095_v4, 4  ;;  %v2219_v42 = vmul.f32 %v6885_v6, %v2176_v40  ;;  %v5563_v9 = vrot.slane %v2408_v1, %v6896_v39 }
 0x201   :  { %v2258_v30 = vadd.f32 %v6886_v15, %v2215_v36  ;;  %v2260_v22 = vadd.f32 %v6886_v15, %v2217_v33  ;;  %v5571_v27 = vrot.slane %v2409_v52, %v6896_v39 }
 0x202   :  { %v2023_v47 = vadd.f32 %v2022_v57, %v2021_v17  ;;  %v2097_v62 = vadd.f32 %v2096_v60, %v2095_v4  ;;  %v2262_v63 = vadd.f32 %v6886_v15, %v2219_v42 }
 0x203   :  { %v2290_v7 = vadd.f32 %v2405_v26, %v2258_v30  ;;  %v2292_v11 = vadd.f32 %v2406_v46, %v2260_v22 }
 0x204   :  { %v2024_v31 = vrot.slane %v2023_v47, 1  ;;  %v2098_v6 = vrot.slane %v2097_v62, 2  ;;  %v2294_v23 = vadd.f32 %v2407_v55, %v2262_v63 }
 0x205   :  { %v2322_v56 = vmax.f32 %v2290_v7, 0.0  ;;  %v2324_v58 = vmax.f32 %v2292_v11, 0.0 }
 0x206   :  { %v2025_v15 = vadd.f32 %v2024_v31, %v2023_v47  ;;  %v2099_v14 = vadd.f32 %v2098_v6, %v2097_v62  ;;  %v2326_v35 = vmax.f32 %v2294_v23, 0.0 }
 0x207   :  { %2354 = vst [vmem:[%s5748_s7 + $0xd0] sm:$0xff] %v2322_v56  ;;  %2356 = vst [vmem:[%s5748_s7 + $0xe0] sm:$0xff] %v2324_v58 }
 0x208   :  { %v5520_v5 = vmul.f32 0.0078125, %v2025_v15  ;;  %v2100_v61 = vrot.slane %v2099_v14, 1  ;;  %2358 = vst [vmem:[%s5748_s7 + $0xf0] sm:$0xff] %v2326_v35 }
 0x20a   :  { %v2101_v3 = vadd.f32 %v2100_v61, %v2099_v14  ;;  %v2105_v20 = vmul.f32 %v5520_v5, %v5520_v5  ;;  %v2111_v50 = vsub.f32 %v5257_v43, %v5520_v5  ;;  %v2113_v13 = vsub.f32 %v5259_v0, %v5520_v5  ;;  %v2410_v14 = vld [vmem:[%s5741_s0 + $0x8] sm:$0xff]  ;;  %v2411_v61 = vld [vmem:[%s5741_s0 + $0x18] sm:$0xff] }
 0x20b   :  { %v2115_v29 = vsub.f32 %v5261_v45, %v5520_v5  ;;  %v2117_v44 = vsub.f32 %v5263_v25, %v5520_v5  ;;  %v2119_v34 = vsub.f32 %v5265_v53, %v5520_v5  ;;  %v2121_v59 = vsub.f32 %v5267_v32, %v5520_v5 }
 0x20c   :  { %v2103_v54 = vmul.f32 0.0078125, %v2101_v3  ;;  %v2123_v41 = vsub.f32 %v5269_v16, %v5520_v5  ;;  %v2125_v43 = vsub.f32 %v5238_v24, %v5520_v5  ;;  %v2127_v0 = vsub.f32 %v5272_v8, %v5520_v5 }
 0x20d   :  { %v2129_v45 = vsub.f32 %v5274_v12, %v5520_v5  ;;  %v2131_v25 = vsub.f32 %v5276_v19, %v5520_v5  ;;  %v2133_v53 = vsub.f32 %v5278_v51, %v5520_v5  ;;  %v2135_v32 = vsub.f32 %v5280_v2, %v5520_v5 }
 0x20e   :  { %v2107_v37 = vsub.f32 %v2103_v54, %v2105_v20  ;;  %v2137_v16 = vsub.f32 %v5282_v21, %v5520_v5  ;;  %v2139_v24 = vsub.f32 %v5284_v10, %v5520_v5  ;;  %v2141_v28 = vsub.f32 %v5254_v18, %v5520_v5  ;;  %v2412_v20 = vld [vmem:[%s5741_s0 + $0x28] sm:$0xff] }
 0x210   :  { %v2109_v49 = vmax.f32 %v2107_v37, 0.0  ;;  %v2417_v37 = vld [vmem:[%s5741_s0 + $0x78] sm:$0xff] }
 0x212   :  { %v2143_v38 = vadd.f32 1e-05, %v2109_v49 }
 0x214   :  { %2374 = vrsqrt.f32 %v2143_v38 }
 0x21e   :  { %v5565_v48 = vpop.eup %2374 }
 0x21f   :  { %v2147_v17 = vmul.f32 %v5565_v48, %v2111_v50  ;;  %v2149_v4 = vmul.f32 %v5565_v48, %v2113_v13  ;;  %v2151_v40 = vmul.f32 %v5565_v48, %v2115_v29  ;;  %v2153_v36 = vmul.f32 %v5565_v48, %v2117_v44  ;;  %v2413_v13 = vld [vmem:[%s5741_s0 + $0x38] sm:$0xff]  ;;  %v2414_v44 = vld [vmem:[%s5741_s0 + $0x48] sm:$0xff] }
 0x220   :  { %v2155_v33 = vmul.f32 %v5565_v48, %v2119_v34  ;;  %v2157_v57 = vmul.f32 %v5565_v48, %v2121_v59  ;;  %v2159_v60 = vmul.f32 %v5565_v48, %v2123_v41  ;;  %v2161_v42 = vmul.f32 %v5565_v48, %v2125_v43  ;;  %v2415_v59 = vld [vmem:[%s5741_s0 + $0x58] sm:$0xff]  ;;  %v2416_v41 = vld [vmem:[%s5741_s0 + $0x68] sm:$0xff] }
 0x221   :  { %v2190_v30 = vmul.f32 %v5563_v9, %v2147_v17  ;;  %v2192_v22 = vmul.f32 %v5563_v9, %v2149_v4  ;;  %v2194_v47 = vmul.f32 %v5563_v9, %v2151_v40  ;;  %v2196_v62 = vmul.f32 %v5563_v9, %v2153_v36 }
 0x222   :  { %v2198_v63 = vmul.f32 %v5563_v9, %v2155_v33  ;;  %v2200_v26 = vmul.f32 %v5563_v9, %v2157_v57  ;;  %v2202_v7 = vmul.f32 %v5563_v9, %v2159_v60  ;;  %v2204_v46 = vmul.f32 %v5563_v9, %v2161_v42 }
 0x223   :  { %v2233_v11 = vadd.f32 %v5571_v27, %v2190_v30  ;;  %v2235_v31 = vadd.f32 %v5571_v27, %v2192_v22  ;;  %v2237_v6 = vadd.f32 %v5571_v27, %v2194_v47  ;;  %v2239_v55 = vadd.f32 %v5571_v27, %v2196_v62  ;;  %v2419_v62 = vld [vmem:[%s5741_s0 + $0x98] sm:$0xff] }
 0x224   :  { %v2241_v23 = vadd.f32 %v5571_v27, %v2198_v63  ;;  %v2243_v56 = vadd.f32 %v5571_v27, %v2200_v26  ;;  %v2245_v58 = vadd.f32 %v5571_v27, %v2202_v7  ;;  %v2247_v15 = vadd.f32 %v5571_v27, %v2204_v46  ;;  %v2420_v26 = vld [vmem:[%s5741_s0 + $0xa8] sm:$0xff]  ;;  %v2421_v46 = vld [vmem:[%s5741_s0 + $0xb8] sm:$0xff] }
 0x225   :  { %v2265_v35 = vadd.f32 %v2410_v14, %v2233_v11  ;;  %v2267_v3 = vadd.f32 %v2411_v61, %v2235_v31  ;;  %v2269_v50 = vadd.f32 %v2412_v20, %v2237_v6  ;;  %v2271_v29 = vadd.f32 %v2413_v13, %v2239_v55  ;;  %v2422_v11 = vld [vmem:[%s5741_s0 + $0xc8] sm:$0xff]  ;;  %v2423_v6 = vld [vmem:[%s5741_s0 + $0xd8] sm:$0xff] }
 0x226   :  { %v2273_v34 = vadd.f32 %v2414_v44, %v2241_v23  ;;  %v2275_v54 = vadd.f32 %v2415_v59, %v2243_v56  ;;  %v2277_v43 = vadd.f32 %v2416_v41, %v2245_v58  ;;  %v2279_v49 = vadd.f32 %v2417_v37, %v2247_v15  ;;  %v2424_v23 = vld [vmem:[%s5741_s0 + $0xe8] sm:$0xff]  ;;  %v2425_v58 = vld [vmem:[%s5741_s0 + $0xf8] sm:$0xff] }
 0x227   :  { %v2297_v38 = vmax.f32 %v2265_v35, 0.0  ;;  %v2299_v1 = vmax.f32 %v2267_v3, 0.0  ;;  %v2301_v39 = vmax.f32 %v2269_v50, 0.0  ;;  %v2303_v52 = vmax.f32 %v2271_v29, 0.0 }
 0x228   :  { %v2305_v17 = vmax.f32 %v2273_v34, 0.0  ;;  %v2307_v4 = vmax.f32 %v2275_v54, 0.0  ;;  %v2309_v40 = vmax.f32 %v2277_v43, 0.0  ;;  %v2311_v36 = vmax.f32 %v2279_v49, 0.0 }
 0x229   :  { %2329 = vst [vmem:[%s5748_s7 + $0x8] sm:$0xff] %v2297_v38  ;;  %2331 = vst [vmem:[%s5748_s7 + $0x18] sm:$0xff] %v2299_v1  ;;  %v2163_v33 = vmul.f32 %v5565_v48, %v2127_v0  ;;  %v2165_v57 = vmul.f32 %v5565_v48, %v2129_v45  ;;  %v2167_v60 = vmul.f32 %v5565_v48, %v2131_v25 }
 0x22a   :  { %2333 = vst [vmem:[%s5748_s7 + $0x28] sm:$0xff] %v2301_v39  ;;  %2335 = vst [vmem:[%s5748_s7 + $0x38] sm:$0xff] %v2303_v52  ;;  %v2169_v42 = vmul.f32 %v5565_v48, %v2133_v53  ;;  %v2171_v8 = vmul.f32 %v5565_v48, %v2135_v32  ;;  %v2173_v12 = vmul.f32 %v5565_v48, %v2137_v16 }
 0x22b   :  { %2337 = vst [vmem:[%s5748_s7 + $0x48] sm:$0xff] %v2305_v17  ;;  %2339 = vst [vmem:[%s5748_s7 + $0x58] sm:$0xff] %v2307_v4  ;;  %v2175_v19 = vmul.f32 %v5565_v48, %v2139_v24  ;;  %v2177_v51 = vmul.f32 %v5565_v48, %v2141_v28  ;;  %v2206_v0 = vmul.f32 %v5563_v9, %v2163_v33 }
 0x22c   :  { %2341 = vst [vmem:[%s5748_s7 + $0x68] sm:$0xff] %v2309_v40  ;;  %2343 = vst [vmem:[%s5748_s7 + $0x78] sm:$0xff] %v2311_v36  ;;  %v2208_v2 = vmul.f32 %v5563_v9, %v2165_v57  ;;  %v2210_v45 = vmul.f32 %v5563_v9, %v2167_v60  ;;  %v2212_v21 = vmul.f32 %v5563_v9, %v2169_v42 }
 0x22d   :  { %v2214_v25 = vmul.f32 %v5563_v9, %v2171_v8  ;;  %v2216_v53 = vmul.f32 %v5563_v9, %v2173_v12  ;;  %v2218_v10 = vmul.f32 %v5563_v9, %v2175_v19  ;;  %v2220_v32 = vmul.f32 %v5563_v9, %v2177_v51  ;;  %v2418_v9 = vld [vmem:[%s5741_s0 + $0x88] sm:$0xff] }
 0x22e   :  { %v2249_v18 = vadd.f32 %v5571_v27, %v2206_v0  ;;  %v2251_v5 = vadd.f32 %v5571_v27, %v2208_v2  ;;  %v2253_v16 = vadd.f32 %v5571_v27, %v2210_v45  ;;  %v2255_v24 = vadd.f32 %v5571_v27, %v2212_v21 }
 0x22f   :  { %v2257_v28 = vadd.f32 %v5571_v27, %v2214_v25  ;;  %v2259_v48 = vadd.f32 %v5571_v27, %v2216_v53  ;;  %v2261_v30 = vadd.f32 %v5571_v27, %v2218_v10  ;;  %v2263_v22 = vadd.f32 %v5571_v27, %v2220_v32 }
 0x230   :  { %v2281_v47 = vadd.f32 %v2418_v9, %v2249_v18  ;;  %v2283_v63 = vadd.f32 %v2419_v62, %v2251_v5  ;;  %v2285_v7 = vadd.f32 %v2420_v26, %v2253_v16  ;;  %v2287_v27 = vadd.f32 %v2421_v46, %v2255_v24 }
 0x231   :  { %v2289_v31 = vadd.f32 %v2422_v11, %v2257_v28  ;;  %v2291_v55 = vadd.f32 %v2423_v6, %v2259_v48  ;;  %v2293_v56 = vadd.f32 %v2424_v23, %v2261_v30  ;;  %v2295_v15 = vadd.f32 %v2425_v58, %v2263_v22 }
 0x232   :  { %v2313_v14 = vmax.f32 %v2281_v47, 0.0  ;;  %v2315_v35 = vmax.f32 %v2283_v63, 0.0  ;;  %v2317_v61 = vmax.f32 %v2285_v7, 0.0  ;;  %v2319_v3 = vmax.f32 %v2287_v27, 0.0 }
 0x233   :  { %v2321_v20 = vmax.f32 %v2289_v31, 0.0  ;;  %v2323_v50 = vmax.f32 %v2291_v55, 0.0  ;;  %v2325_v13 = vmax.f32 %v2293_v56, 0.0  ;;  %v2327_v29 = vmax.f32 %v2295_v15, 0.0 }
 0x234   :  { %2345 = vst [vmem:[%s5748_s7 + $0x88] sm:$0xff] %v2313_v14  ;;  %2347 = vst [vmem:[%s5748_s7 + $0x98] sm:$0xff] %v2315_v35 }
 0x235   :  { %2349 = vst [vmem:[%s5748_s7 + $0xa8] sm:$0xff] %v2317_v61  ;;  %2351 = vst [vmem:[%s5748_s7 + $0xb8] sm:$0xff] %v2319_v3 }
 0x236   :  { %2353 = vst [vmem:[%s5748_s7 + $0xc8] sm:$0xff] %v2321_v20  ;;  %2355 = vst [vmem:[%s5748_s7 + $0xd8] sm:$0xff] %v2323_v50 }
 0x237   :  { %2357 = vst [vmem:[%s5748_s7 + $0xe8] sm:$0xff] %v2325_v13  ;;  %2359 = vst [vmem:[%s5748_s7 + $0xf8] sm:$0xff] %v2327_v29 }

</bundles_post_ra>
